<compile_context>
chip_gen: v7x
topology: tpu7x:2x2x1
jax: 0.10.0
libtpu: 0.0.40
codegen_flags: <defaults>
</compile_context>

<pallas_src>
import functools

import numpy as np

import jax
import jax.numpy as jnp
from jax.experimental import pallas as pl
from jax.experimental.pallas import tpu as pltpu

_EPS = 1e-5
_LANES = 128

CONV_ORDER = ('conv1', 'conv2', 'conv3', 'expand1',
              'conv4', 'conv5', 'conv6', 'expand2',
              'conv7', 'conv8', 'conv9')


# ----------------------------------------------------------------------------
# Host-side operator matrices (shift / GAP / reduction) and parameter packing
# ----------------------------------------------------------------------------
def _shift_matrix(B, L, s):
    """0/1 matrix: (S @ h)[b*L+p] = h[b*L + clamp(p+s, 0, L-1)] (replicate pad)."""
    N = B * L
    m = np.zeros((N, N), np.float32)
    for b in range(B):
        for p in range(L):
            src = min(max(p + s, 0), L - 1)
            m[b * L + p, b * L + src] = 1.0
    return m


def _gap_matrix(B, L):
    """(B, B*L) averaging matrix: GAP over length as one MXU matmul."""
    m = np.zeros((B, B * L), np.float32)
    for b in range(B):
        m[b, b * L:(b + 1) * L] = 1.0 / L
    return m


def _mean_matrix(B, L):
    """(8, B*L): row 0 = 1/N (column means via MXU), rows 1..7 unused zeros."""
    m = np.zeros((8, B * L), np.float32)
    m[0, :] = 1.0 / float(B * L)
    return m


class _Packer:
    """Packs 2D blocks into one (rows, 128) buffer; each block row-aligned."""

    def __init__(self, align):
        self.align = align
        self.blocks = []
        self.off = 0

    def add(self, a):
        a = np.asarray(a, np.float32)
        r, c = a.shape
        assert c <= _LANES
        rp = (-r) % self.align
        blk = np.zeros((r + rp, _LANES), np.float32)
        blk[:r, :c] = a
        self.blocks.append(blk)
        off = self.off
        self.off += r + rp
        return off

    def finish(self, dtype):
        return jnp.asarray(np.concatenate(self.blocks, axis=0), dtype)


def pack_params(params, B, L):
    """Pack all parameters + static operator matrices into two VMEM buffers."""
    N = B * L
    assert N <= _LANES, (
        "TODO(synk): tile over batch (grid) and exchange BN statistics once "
        "B*L exceeds one 128-lane tile / v7x VMEM headroom.")

    # --- bf16 matmul-weight buffer (per-tap blocks, 16-row aligned for bf16) ---
    wp = _Packer(align=16)
    conv_meta = {}
    for name in CONV_ORDER:
        w = np.asarray(params[name + '_w'], np.float32)          # (k, cin, cout)
        k, cin, cout = w.shape
        taps = tuple(wp.add(w[t]) for t in range(k))
        conv_meta[name] = {'k': int(k), 'cin': int(cin), 'cout': int(cout),
                           'taps': taps}
    dense_w_off = wp.add(np.asarray(params['dense_w'], np.float32))
    wbuf = wp.finish(jnp.bfloat16)

    # --- f32 operator / small-parameter buffer (8-row aligned) ---
    op = _Packer(align=8)
    shift_offs = {s: op.add(_shift_matrix(B, L, s))
                  for s in (-3, -2, -1, 1, 2, 3, 4)}              # s=0 is identity
    mean_off = op.add(_mean_matrix(B, L))
    gap_off = op.add(_gap_matrix(B, L))
    for name in CONV_ORDER:
        conv_meta[name]['b_off'] = op.add(np.asarray(params[name + '_b'], np.float32))
    bn_off = {j: op.add(np.asarray(params[f'bn{j}_gb'], np.float32))
              for j in range(1, 10)}
    dense_b_off = op.add(np.asarray(params['dense_b'], np.float32))
    obuf = op.finish(jnp.float32)

    meta = dict(B=int(B), L=int(L), conv_meta=conv_meta, bn_off=bn_off,
                shift_offs=shift_offs, mean_off=mean_off, gap_off=gap_off,
                dense_w_off=dense_w_off, dense_b_off=dense_b_off,
                c2=int(params['dense_w'].shape[0]))
    return wbuf, obuf, meta


# ----------------------------------------------------------------------------
# Single fused kernel: whole network forward, gridless, everything in VMEM.
# ----------------------------------------------------------------------------
def _resnet_kernel(x_ref, wbuf, obuf, out_ref, *, meta):
    B, L = meta['B'], meta['L']
    N = B * L
    conv_meta = meta['conv_meta']
    bn_off = meta['bn_off']
    shift_offs = meta['shift_offs']

    x = x_ref[...].astype(jnp.float32)                           # (N, Cin)

    # Hoisted once: (8, N) reduction operator (row 0 = 1/N) for BN statistics.
    red = obuf[meta['mean_off']:meta['mean_off'] + 8, 0:N]

    def shift(h, s):
        """Within-batch shift by s with replicate-edge clamp (0/1 select matmul, MXU)."""
        if s == 0:
            return h
        off = shift_offs[s]
        return jnp.dot(obuf[off:off + N, 0:N], h,
                       preferred_element_type=jnp.float32)

    def conv(h, name):
        """Conv1d ('same', replicate edges) as K-tap accumulation of small matmuls."""
        m = conv_meta[name]
        k, cin, cout = m['k'], m['cin'], m['cout']
        left = (k - 1) // 2
        acc = None
        for t in range(k):
            sh = shift(h, t - left)
            wt = wbuf[m['taps'][t]:m['taps'][t] + cin, 0:cout]   # bf16 (cin, cout)
            c = jnp.dot(sh.astype(jnp.bfloat16), wt,
                        preferred_element_type=jnp.float32)
            acc = c if acc is None else acc + c
        return acc + obuf[m['b_off']:m['b_off'] + 1, 0:cout]

    def standardize(y):
        """Training-mode batch standardization; column stats on the MXU, f32 math."""
        mean = jnp.dot(red, y, preferred_element_type=jnp.float32)[0:1, :]
        ex2 = jnp.dot(red, y * y, preferred_element_type=jnp.float32)[0:1, :]
        var = jnp.maximum(ex2 - mean * mean, 0.0)                # clamp cancellation
        return (y - mean) * jax.lax.rsqrt(var + _EPS)

    def bn(y, j, residual=None, relu=True):
        c = y.shape[1]
        gb = obuf[bn_off[j]:bn_off[j] + 2, 0:c]                  # (2, C): gamma, beta
        out = standardize(y) * gb[0:1, :] + gb[1:2, :]
        if residual is not None:
            out = out + residual
        if relu:
            out = jnp.maximum(out, 0.0)
        return out

    # ---- residual block 1 ----
    y = bn(conv(x, 'conv1'), 1)
    y = bn(conv(y, 'conv2'), 2)
    y = conv(y, 'conv3')
    s = standardize(conv(x, 'expand1'))                          # shortcut "self.bn"
    y1 = bn(y, 3, residual=s)

    # ---- residual block 2 ----
    y = bn(conv(y1, 'conv4'), 4)
    y = bn(conv(y, 'conv5'), 5)
    y = conv(y, 'conv6')
    s = standardize(conv(y1, 'expand2'))                         # shortcut "self.bn"
    y2 = bn(y, 6, residual=s)

    # ---- residual block 3 ----
    y = bn(conv(y2, 'conv7'), 7)
    y = bn(conv(y, 'conv8'), 8)
    y = conv(y, 'conv9')
    s = standardize(y2)                                          # shortcut "self.bn"
    y3 = bn(y, 9, residual=s)

    # ---- head: GAP (MXU matmul) -> dense -> sigmoid ----
    c2 = meta['c2']
    pooled = jnp.dot(obuf[meta['gap_off']:meta['gap_off'] + B, 0:N], y3,
                     preferred_element_type=jnp.float32)         # (B, C2)
    wd = wbuf[meta['dense_w_off']:meta['dense_w_off'] + c2, 0:1]  # bf16 (C2, 1)
    logits = jnp.dot(pooled.astype(jnp.bfloat16), wd,
                     preferred_element_type=jnp.float32)
    logits = logits + obuf[meta['dense_b_off']:meta['dense_b_off'] + 1, 0:1]
    out_ref[...] = (1.0 / (1.0 + jnp.exp(-logits))).astype(out_ref.dtype)


# ----------------------------------------------------------------------------
# Forward pass: one pallas_call, 3 inputs total (x + 2 packed buffers).
# ----------------------------------------------------------------------------
def resnet_forward(x_ncl, wbuf, obuf, meta):
    B, Cin, L = x_ncl.shape
    assert (B, L) == (meta['B'], meta['L']), "packed operators built for a different (B, L)"
    # One boundary transpose: PyTorch NCL -> row-major (B*L, C).
    x2 = jnp.transpose(x_ncl, (0, 2, 1)).reshape(B * L, Cin)

    return pl.pallas_call(
        functools.partial(_resnet_kernel, meta=meta),
        out_shape=jax.ShapeDtypeStruct((B, 1), jnp.float32),
        in_specs=[pl.BlockSpec(memory_space=pltpu.MemorySpace.VMEM)] * 3,
        out_specs=pl.BlockSpec(memory_space=pltpu.MemorySpace.VMEM),
    )(x2, wbuf, obuf)


# ----------------------------------------------------------------------------
# Parameter init (deterministic, PyTorch-style fan-in uniform; BN weight=1, bias=0)
# ----------------------------------------------------------------------------
def init_params(key, c_in, n_channels):
    C1, C2 = n_channels, n_channels * 2
    conv_defs = {
        'conv1': (8, c_in, C1), 'conv2': (5, C1, C1), 'conv3': (3, C1, C1),
        'expand1': (1, c_in, C1),
        'conv4': (8, C1, C2), 'conv5': (5, C2, C2), 'conv6': (3, C2, C2),
        'expand2': (1, C1, C2),
        'conv7': (8, C2, C2), 'conv8': (5, C2, C2), 'conv9': (3, C2, C2),
    }
    keys = jax.random.split(key, len(conv_defs) + 1)
    p = {}
    for (name, (k, cin, cout)), kk in zip(conv_defs.items(), keys[:-1]):
        kw, kb = jax.random.split(kk)
        bound = 1.0 / float(cin * k) ** 0.5
        p[name + '_w'] = jax.random.uniform(kw, (k, cin, cout), jnp.float32, -bound, bound)
        p[name + '_b'] = jax.random.uniform(kb, (1, cout), jnp.float32, -bound, bound)
    bn_channels = [C1, C1, C1, C2, C2, C2, C2, C2, C2]
    for i, c in enumerate(bn_channels, start=1):
        p[f'bn{i}_gb'] = jnp.stack([jnp.ones((c,), jnp.float32),
                                    jnp.zeros((c,), jnp.float32)])   # (2, C)
    kd1, kd2 = jax.random.split(keys[-1])
    bound = 1.0 / float(C2) ** 0.5
    p['dense_w'] = jax.random.uniform(kd1, (C2, 1), jnp.float32, -bound, bound)
    p['dense_b'] = jax.random.uniform(kd2, (1, 1), jnp.float32, -bound, bound)
    return p


if __name__ == "__main__":
    key = jax.random.PRNGKey(0)
    B, C, S = 2, 4, 16          # input_size = (b, c, s)
    n_channels = 16
    kx, kp = jax.random.split(key)
    x = jax.random.normal(kx, (B, C, S), jnp.float32)   # PyTorch NCL layout
    params = init_params(kp, C, n_channels)

    # Pack parameters + static shift/GAP/reduction operators once, host-side.
    wbuf, obuf, meta = pack_params(params, B, S)

    fwd = jax.jit(lambda a: resnet_forward(a, wbuf, obuf, meta))
    out = jax.block_until_ready(fwd(x))

    assert out.shape == (B, 1), out.shape
    assert bool(jnp.all(jnp.isfinite(out)))
    assert bool(jnp.all((out > 0.0) & (out < 1.0)))      # sigmoid range
    print("KERNEL_OK")
</pallas_src>

<mosaic_0001>
module attributes {stable_mosaic.version = 11 : i64} {
  func.func @_resnet_kernel(%arg0: memref<32x4xf32, #tpu.memory_space<vmem>>, %arg1: memref<1216x128xbf16, #tpu.memory_space<vmem>>, %arg2: memref<408x128xf32, #tpu.memory_space<vmem>>, %arg3: memref<2x1xf32, #tpu.memory_space<vmem>>) attributes {dimension_semantics = [], scalar_prefetch = 0 : i64, scratch_operands = 0 : i64, tpu.core_type = #tpu.core_type<tc>} {
    %c0 = arith.constant 0 : index
    %c0_0 = arith.constant 0 : index
    %0 = vector.load %arg0[%c0, %c0_0] : memref<32x4xf32, #tpu.memory_space<vmem>>, vector<32x4xf32>
    %c224 = arith.constant 224 : index
    %c0_1 = arith.constant 0 : index
    %1 = vector.load %arg2[%c224, %c0_1] : memref<408x128xf32, #tpu.memory_space<vmem>>, vector<8x32xf32>
    %c0_2 = arith.constant 0 : index
    %c0_3 = arith.constant 0 : index
    %2 = vector.load %arg2[%c0_2, %c0_3] : memref<408x128xf32, #tpu.memory_space<vmem>>, vector<32x32xf32>
    %cst = arith.constant dense<0.000000e+00> : vector<32x4xf32>
    %3 = tpu.matmul %2, %0, %cst {dimension_numbers = #tpu.dot_dimension_numbers<[1], [0], [0], [1], [0, 0, 1, 1], [], []>} : vector<32x32xf32>, vector<32x4xf32>, vector<32x4xf32> -> vector<32x4xf32>
    %c0_4 = arith.constant 0 : index
    %c0_5 = arith.constant 0 : index
    %4 = vector.load %arg1[%c0_4, %c0_5] : memref<1216x128xbf16, #tpu.memory_space<vmem>>, vector<4x16xbf16>
    %5 = arith.truncf %3 : vector<32x4xf32> to vector<32x4xbf16>
    %cst_6 = arith.constant dense<0.000000e+00> : vector<32x16xf32>
    %6 = tpu.matmul %5, %4, %cst_6 {dimension_numbers = #tpu.dot_dimension_numbers<[1], [0], [0], [1], [0, 0, 1, 1], [], []>} : vector<32x4xbf16>, vector<4x16xbf16>, vector<32x16xf32> -> vector<32x16xf32>
    %c32 = arith.constant 32 : index
    %c0_7 = arith.constant 0 : index
    %7 = vector.load %arg2[%c32, %c0_7] : memref<408x128xf32, #tpu.memory_space<vmem>>, vector<32x32xf32>
    %cst_8 = arith.constant dense<0.000000e+00> : vector<32x4xf32>
    %8 = tpu.matmul %7, %0, %cst_8 {dimension_numbers = #tpu.dot_dimension_numbers<[1], [0], [0], [1], [0, 0, 1, 1], [], []>} : vector<32x32xf32>, vector<32x4xf32>, vector<32x4xf32> -> vector<32x4xf32>
    %c16 = arith.constant 16 : index
    %c0_9 = arith.constant 0 : index
    %9 = vector.load %arg1[%c16, %c0_9] : memref<1216x128xbf16, #tpu.memory_space<vmem>>, vector<4x16xbf16>
    %10 = arith.truncf %8 : vector<32x4xf32> to vector<32x4xbf16>
    %cst_10 = arith.constant dense<0.000000e+00> : vector<32x16xf32>
    %11 = tpu.matmul %10, %9, %cst_10 {dimension_numbers = #tpu.dot_dimension_numbers<[1], [0], [0], [1], [0, 0, 1, 1], [], []>} : vector<32x4xbf16>, vector<4x16xbf16>, vector<32x16xf32> -> vector<32x16xf32>
    %12 = arith.addf %6, %11 : vector<32x16xf32>
    %c64 = arith.constant 64 : index
    %c0_11 = arith.constant 0 : index
    %13 = vector.load %arg2[%c64, %c0_11] : memref<408x128xf32, #tpu.memory_space<vmem>>, vector<32x32xf32>
    %cst_12 = arith.constant dense<0.000000e+00> : vector<32x4xf32>
    %14 = tpu.matmul %13, %0, %cst_12 {dimension_numbers = #tpu.dot_dimension_numbers<[1], [0], [0], [1], [0, 0, 1, 1], [], []>} : vector<32x32xf32>, vector<32x4xf32>, vector<32x4xf32> -> vector<32x4xf32>
    %c32_13 = arith.constant 32 : index
    %c0_14 = arith.constant 0 : index
    %15 = vector.load %arg1[%c32_13, %c0_14] : memref<1216x128xbf16, #tpu.memory_space<vmem>>, vector<4x16xbf16>
    %16 = arith.truncf %14 : vector<32x4xf32> to vector<32x4xbf16>
    %cst_15 = arith.constant dense<0.000000e+00> : vector<32x16xf32>
    %17 = tpu.matmul %16, %15, %cst_15 {dimension_numbers = #tpu.dot_dimension_numbers<[1], [0], [0], [1], [0, 0, 1, 1], [], []>} : vector<32x4xbf16>, vector<4x16xbf16>, vector<32x16xf32> -> vector<32x16xf32>
    %18 = arith.addf %12, %17 : vector<32x16xf32>
    %c48 = arith.constant 48 : index
    %c0_16 = arith.constant 0 : index
    %19 = vector.load %arg1[%c48, %c0_16] : memref<1216x128xbf16, #tpu.memory_space<vmem>>, vector<4x16xbf16>
    %20 = arith.truncf %0 : vector<32x4xf32> to vector<32x4xbf16>
    %cst_17 = arith.constant dense<0.000000e+00> : vector<32x16xf32>
    %21 = tpu.matmul %20, %19, %cst_17 {dimension_numbers = #tpu.dot_dimension_numbers<[1], [0], [0], [1], [0, 0, 1, 1], [], []>} : vector<32x4xbf16>, vector<4x16xbf16>, vector<32x16xf32> -> vector<32x16xf32>
    %22 = arith.addf %18, %21 : vector<32x16xf32>
    %c96 = arith.constant 96 : index
    %c0_18 = arith.constant 0 : index
    %23 = vector.load %arg2[%c96, %c0_18] : memref<408x128xf32, #tpu.memory_space<vmem>>, vector<32x32xf32>
    %cst_19 = arith.constant dense<0.000000e+00> : vector<32x4xf32>
    %24 = tpu.matmul %23, %0, %cst_19 {dimension_numbers = #tpu.dot_dimension_numbers<[1], [0], [0], [1], [0, 0, 1, 1], [], []>} : vector<32x32xf32>, vector<32x4xf32>, vector<32x4xf32> -> vector<32x4xf32>
    %c64_20 = arith.constant 64 : index
    %c0_21 = arith.constant 0 : index
    %25 = vector.load %arg1[%c64_20, %c0_21] : memref<1216x128xbf16, #tpu.memory_space<vmem>>, vector<4x16xbf16>
    %26 = arith.truncf %24 : vector<32x4xf32> to vector<32x4xbf16>
    %cst_22 = arith.constant dense<0.000000e+00> : vector<32x16xf32>
    %27 = tpu.matmul %26, %25, %cst_22 {dimension_numbers = #tpu.dot_dimension_numbers<[1], [0], [0], [1], [0, 0, 1, 1], [], []>} : vector<32x4xbf16>, vector<4x16xbf16>, vector<32x16xf32> -> vector<32x16xf32>
    %28 = arith.addf %22, %27 : vector<32x16xf32>
    %c128 = arith.constant 128 : index
    %c0_23 = arith.constant 0 : index
    %29 = vector.load %arg2[%c128, %c0_23] : memref<408x128xf32, #tpu.memory_space<vmem>>, vector<32x32xf32>
    %cst_24 = arith.constant dense<0.000000e+00> : vector<32x4xf32>
    %30 = tpu.matmul %29, %0, %cst_24 {dimension_numbers = #tpu.dot_dimension_numbers<[1], [0], [0], [1], [0, 0, 1, 1], [], []>} : vector<32x32xf32>, vector<32x4xf32>, vector<32x4xf32> -> vector<32x4xf32>
    %c80 = arith.constant 80 : index
    %c0_25 = arith.constant 0 : index
    %31 = vector.load %arg1[%c80, %c0_25] : memref<1216x128xbf16, #tpu.memory_space<vmem>>, vector<4x16xbf16>
    %32 = arith.truncf %30 : vector<32x4xf32> to vector<32x4xbf16>
    %cst_26 = arith.constant dense<0.000000e+00> : vector<32x16xf32>
    %33 = tpu.matmul %32, %31, %cst_26 {dimension_numbers = #tpu.dot_dimension_numbers<[1], [0], [0], [1], [0, 0, 1, 1], [], []>} : vector<32x4xbf16>, vector<4x16xbf16>, vector<32x16xf32> -> vector<32x16xf32>
    %34 = arith.addf %28, %33 : vector<32x16xf32>
    %c160 = arith.constant 160 : index
    %c0_27 = arith.constant 0 : index
    %35 = vector.load %arg2[%c160, %c0_27] : memref<408x128xf32, #tpu.memory_space<vmem>>, vector<32x32xf32>
    %cst_28 = arith.constant dense<0.000000e+00> : vector<32x4xf32>
    %36 = tpu.matmul %35, %0, %cst_28 {dimension_numbers = #tpu.dot_dimension_numbers<[1], [0], [0], [1], [0, 0, 1, 1], [], []>} : vector<32x32xf32>, vector<32x4xf32>, vector<32x4xf32> -> vector<32x4xf32>
    %c96_29 = arith.constant 96 : index
    %c0_30 = arith.constant 0 : index
    %37 = vector.load %arg1[%c96_29, %c0_30] : memref<1216x128xbf16, #tpu.memory_space<vmem>>, vector<4x16xbf16>
    %38 = arith.truncf %36 : vector<32x4xf32> to vector<32x4xbf16>
    %cst_31 = arith.constant dense<0.000000e+00> : vector<32x16xf32>
    %39 = tpu.matmul %38, %37, %cst_31 {dimension_numbers = #tpu.dot_dimension_numbers<[1], [0], [0], [1], [0, 0, 1, 1], [], []>} : vector<32x4xbf16>, vector<4x16xbf16>, vector<32x16xf32> -> vector<32x16xf32>
    %40 = arith.addf %34, %39 : vector<32x16xf32>
    %c192 = arith.constant 192 : index
    %c0_32 = arith.constant 0 : index
    %41 = vector.load %arg2[%c192, %c0_32] : memref<408x128xf32, #tpu.memory_space<vmem>>, vector<32x32xf32>
    %cst_33 = arith.constant dense<0.000000e+00> : vector<32x4xf32>
    %42 = tpu.matmul %41, %0, %cst_33 {dimension_numbers = #tpu.dot_dimension_numbers<[1], [0], [0], [1], [0, 0, 1, 1], [], []>} : vector<32x32xf32>, vector<32x4xf32>, vector<32x4xf32> -> vector<32x4xf32>
    %c112 = arith.constant 112 : index
    %c0_34 = arith.constant 0 : index
    %43 = vector.load %arg1[%c112, %c0_34] : memref<1216x128xbf16, #tpu.memory_space<vmem>>, vector<4x16xbf16>
    %44 = arith.truncf %42 : vector<32x4xf32> to vector<32x4xbf16>
    %cst_35 = arith.constant dense<0.000000e+00> : vector<32x16xf32>
    %45 = tpu.matmul %44, %43, %cst_35 {dimension_numbers = #tpu.dot_dimension_numbers<[1], [0], [0], [1], [0, 0, 1, 1], [], []>} : vector<32x4xbf16>, vector<4x16xbf16>, vector<32x16xf32> -> vector<32x16xf32>
    %46 = arith.addf %40, %45 : vector<32x16xf32>
    %c240 = arith.constant 240 : index
    %c0_36 = arith.constant 0 : index
    %47 = vector.load %arg2[%c240, %c0_36] : memref<408x128xf32, #tpu.memory_space<vmem>>, vector<1x16xf32>
    %48 = vector.broadcast %47 : vector<1x16xf32> to vector<32x16xf32>
    %49 = arith.addf %46, %48 : vector<32x16xf32>
    %c328 = arith.constant 328 : index
    %c0_37 = arith.constant 0 : index
    %50 = vector.load %arg2[%c328, %c0_37] : memref<408x128xf32, #tpu.memory_space<vmem>>, vector<2x16xf32>
    %cst_38 = arith.constant dense<0.000000e+00> : vector<8x16xf32>
    %51 = tpu.matmul %1, %49, %cst_38 {dimension_numbers = #tpu.dot_dimension_numbers<[1], [0], [0], [1], [0, 0, 1, 1], [], []>} : vector<8x32xf32>, vector<32x16xf32>, vector<8x16xf32> -> vector<8x16xf32>
    %52 = vector.extract_strided_slice %51 {offsets = [0, 0], sizes = [1, 16], strides = [1, 1]} : vector<8x16xf32> to vector<1x16xf32>
    %53 = arith.mulf %49, %49 : vector<32x16xf32>
    %cst_39 = arith.constant dense<0.000000e+00> : vector<8x16xf32>
    %54 = tpu.matmul %1, %53, %cst_39 {dimension_numbers = #tpu.dot_dimension_numbers<[1], [0], [0], [1], [0, 0, 1, 1], [], []>} : vector<8x32xf32>, vector<32x16xf32>, vector<8x16xf32> -> vector<8x16xf32>
    %55 = vector.extract_strided_slice %54 {offsets = [0, 0], sizes = [1, 16], strides = [1, 1]} : vector<8x16xf32> to vector<1x16xf32>
    %56 = arith.mulf %52, %52 : vector<1x16xf32>
    %57 = arith.subf %55, %56 : vector<1x16xf32>
    %cst_40 = arith.constant 0.000000e+00 : f32
    %58 = vector.broadcast %cst_40 : f32 to vector<1x16xf32>
    %59 = arith.maximumf %57, %58 : vector<1x16xf32>
    %60 = vector.broadcast %52 : vector<1x16xf32> to vector<32x16xf32>
    %61 = arith.subf %49, %60 : vector<32x16xf32>
    %cst_41 = arith.constant 9.99999974E-6 : f32
    %62 = vector.broadcast %cst_41 : f32 to vector<1x16xf32>
    %63 = arith.addf %59, %62 : vector<1x16xf32>
    %64 = math.rsqrt %63 : vector<1x16xf32>
    %65 = vector.broadcast %64 : vector<1x16xf32> to vector<32x16xf32>
    %66 = arith.mulf %61, %65 : vector<32x16xf32>
    %67 = vector.extract_strided_slice %50 {offsets = [0, 0], sizes = [1, 16], strides = [1, 1]} : vector<2x16xf32> to vector<1x16xf32>
    %68 = vector.broadcast %67 : vector<1x16xf32> to vector<32x16xf32>
    %69 = arith.mulf %66, %68 : vector<32x16xf32>
    %70 = vector.extract_strided_slice %50 {offsets = [1, 0], sizes = [1, 16], strides = [1, 1]} : vector<2x16xf32> to vector<1x16xf32>
    %71 = vector.broadcast %70 : vector<1x16xf32> to vector<32x16xf32>
    %72 = arith.addf %69, %71 : vector<32x16xf32>
    %cst_42 = arith.constant 0.000000e+00 : f32
    %73 = vector.broadcast %cst_42 : f32 to vector<32x16xf32>
    %74 = arith.maximumf %72, %73 : vector<32x16xf32>
    %c32_43 = arith.constant 32 : index
    %c0_44 = arith.constant 0 : index
    %75 = vector.load %arg2[%c32_43, %c0_44] : memref<408x128xf32, #tpu.memory_space<vmem>>, vector<32x32xf32>
    %cst_45 = arith.constant dense<0.000000e+00> : vector<32x16xf32>
    %76 = tpu.matmul %75, %74, %cst_45 {dimension_numbers = #tpu.dot_dimension_numbers<[1], [0], [0], [1], [0, 0, 1, 1], [], []>} : vector<32x32xf32>, vector<32x16xf32>, vector<32x16xf32> -> vector<32x16xf32>
    %c128_46 = arith.constant 128 : index
    %c0_47 = arith.constant 0 : index
    %77 = vector.load %arg1[%c128_46, %c0_47] : memref<1216x128xbf16, #tpu.memory_space<vmem>>, vector<16x16xbf16>
    %78 = arith.truncf %76 : vector<32x16xf32> to vector<32x16xbf16>
    %cst_48 = arith.constant dense<0.000000e+00> : vector<32x16xf32>
    %79 = tpu.matmul %78, %77, %cst_48 {dimension_numbers = #tpu.dot_dimension_numbers<[1], [0], [0], [1], [0, 0, 1, 1], [], []>} : vector<32x16xbf16>, vector<16x16xbf16>, vector<32x16xf32> -> vector<32x16xf32>
    %c64_49 = arith.constant 64 : index
    %c0_50 = arith.constant 0 : index
    %80 = vector.load %arg2[%c64_49, %c0_50] : memref<408x128xf32, #tpu.memory_space<vmem>>, vector<32x32xf32>
    %cst_51 = arith.constant dense<0.000000e+00> : vector<32x16xf32>
    %81 = tpu.matmul %80, %74, %cst_51 {dimension_numbers = #tpu.dot_dimension_numbers<[1], [0], [0], [1], [0, 0, 1, 1], [], []>} : vector<32x32xf32>, vector<32x16xf32>, vector<32x16xf32> -> vector<32x16xf32>
    %c144 = arith.constant 144 : index
    %c0_52 = arith.constant 0 : index
    %82 = vector.load %arg1[%c144, %c0_52] : memref<1216x128xbf16, #tpu.memory_space<vmem>>, vector<16x16xbf16>
    %83 = arith.truncf %81 : vector<32x16xf32> to vector<32x16xbf16>
    %cst_53 = arith.constant dense<0.000000e+00> : vector<32x16xf32>
    %84 = tpu.matmul %83, %82, %cst_53 {dimension_numbers = #tpu.dot_dimension_numbers<[1], [0], [0], [1], [0, 0, 1, 1], [], []>} : vector<32x16xbf16>, vector<16x16xbf16>, vector<32x16xf32> -> vector<32x16xf32>
    %85 = arith.addf %79, %84 : vector<32x16xf32>
    %c160_54 = arith.constant 160 : index
    %c0_55 = arith.constant 0 : index
    %86 = vector.load %arg1[%c160_54, %c0_55] : memref<1216x128xbf16, #tpu.memory_space<vmem>>, vector<16x16xbf16>
    %87 = arith.truncf %74 : vector<32x16xf32> to vector<32x16xbf16>
    %cst_56 = arith.constant dense<0.000000e+00> : vector<32x16xf32>
    %88 = tpu.matmul %87, %86, %cst_56 {dimension_numbers = #tpu.dot_dimension_numbers<[1], [0], [0], [1], [0, 0, 1, 1], [], []>} : vector<32x16xbf16>, vector<16x16xbf16>, vector<32x16xf32> -> vector<32x16xf32>
    %89 = arith.addf %85, %88 : vector<32x16xf32>
    %c96_57 = arith.constant 96 : index
    %c0_58 = arith.constant 0 : index
    %90 = vector.load %arg2[%c96_57, %c0_58] : memref<408x128xf32, #tpu.memory_space<vmem>>, vector<32x32xf32>
    %cst_59 = arith.constant dense<0.000000e+00> : vector<32x16xf32>
    %91 = tpu.matmul %90, %74, %cst_59 {dimension_numbers = #tpu.dot_dimension_numbers<[1], [0], [0], [1], [0, 0, 1, 1], [], []>} : vector<32x32xf32>, vector<32x16xf32>, vector<32x16xf32> -> vector<32x16xf32>
    %c176 = arith.constant 176 : index
    %c0_60 = arith.constant 0 : index
    %92 = vector.load %arg1[%c176, %c0_60] : memref<1216x128xbf16, #tpu.memory_space<vmem>>, vector<16x16xbf16>
    %93 = arith.truncf %91 : vector<32x16xf32> to vector<32x16xbf16>
    %cst_61 = arith.constant dense<0.000000e+00> : vector<32x16xf32>
    %94 = tpu.matmul %93, %92, %cst_61 {dimension_numbers = #tpu.dot_dimension_numbers<[1], [0], [0], [1], [0, 0, 1, 1], [], []>} : vector<32x16xbf16>, vector<16x16xbf16>, vector<32x16xf32> -> vector<32x16xf32>
    %95 = arith.addf %89, %94 : vector<32x16xf32>
    %c128_62 = arith.constant 128 : index
    %c0_63 = arith.constant 0 : index
    %96 = vector.load %arg2[%c128_62, %c0_63] : memref<408x128xf32, #tpu.memory_space<vmem>>, vector<32x32xf32>
    %cst_64 = arith.constant dense<0.000000e+00> : vector<32x16xf32>
    %97 = tpu.matmul %96, %74, %cst_64 {dimension_numbers = #tpu.dot_dimension_numbers<[1], [0], [0], [1], [0, 0, 1, 1], [], []>} : vector<32x32xf32>, vector<32x16xf32>, vector<32x16xf32> -> vector<32x16xf32>
    %c192_65 = arith.constant 192 : index
    %c0_66 = arith.constant 0 : index
    %98 = vector.load %arg1[%c192_65, %c0_66] : memref<1216x128xbf16, #tpu.memory_space<vmem>>, vector<16x16xbf16>
    %99 = arith.truncf %97 : vector<32x16xf32> to vector<32x16xbf16>
    %cst_67 = arith.constant dense<0.000000e+00> : vector<32x16xf32>
    %100 = tpu.matmul %99, %98, %cst_67 {dimension_numbers = #tpu.dot_dimension_numbers<[1], [0], [0], [1], [0, 0, 1, 1], [], []>} : vector<32x16xbf16>, vector<16x16xbf16>, vector<32x16xf32> -> vector<32x16xf32>
    %101 = arith.addf %95, %100 : vector<32x16xf32>
    %c248 = arith.constant 248 : index
    %c0_68 = arith.constant 0 : index
    %102 = vector.load %arg2[%c248, %c0_68] : memref<408x128xf32, #tpu.memory_space<vmem>>, vector<1x16xf32>
    %103 = vector.broadcast %102 : vector<1x16xf32> to vector<32x16xf32>
    %104 = arith.addf %101, %103 : vector<32x16xf32>
    %c336 = arith.constant 336 : index
    %c0_69 = arith.constant 0 : index
    %105 = vector.load %arg2[%c336, %c0_69] : memref<408x128xf32, #tpu.memory_space<vmem>>, vector<2x16xf32>
    %cst_70 = arith.constant dense<0.000000e+00> : vector<8x16xf32>
    %106 = tpu.matmul %1, %104, %cst_70 {dimension_numbers = #tpu.dot_dimension_numbers<[1], [0], [0], [1], [0, 0, 1, 1], [], []>} : vector<8x32xf32>, vector<32x16xf32>, vector<8x16xf32> -> vector<8x16xf32>
    %107 = vector.extract_strided_slice %106 {offsets = [0, 0], sizes = [1, 16], strides = [1, 1]} : vector<8x16xf32> to vector<1x16xf32>
    %108 = arith.mulf %104, %104 : vector<32x16xf32>
    %cst_71 = arith.constant dense<0.000000e+00> : vector<8x16xf32>
    %109 = tpu.matmul %1, %108, %cst_71 {dimension_numbers = #tpu.dot_dimension_numbers<[1], [0], [0], [1], [0, 0, 1, 1], [], []>} : vector<8x32xf32>, vector<32x16xf32>, vector<8x16xf32> -> vector<8x16xf32>
    %110 = vector.extract_strided_slice %109 {offsets = [0, 0], sizes = [1, 16], strides = [1, 1]} : vector<8x16xf32> to vector<1x16xf32>
    %111 = arith.mulf %107, %107 : vector<1x16xf32>
    %112 = arith.subf %110, %111 : vector<1x16xf32>
    %cst_72 = arith.constant 0.000000e+00 : f32
    %113 = vector.broadcast %cst_72 : f32 to vector<1x16xf32>
    %114 = arith.maximumf %112, %113 : vector<1x16xf32>
    %115 = vector.broadcast %107 : vector<1x16xf32> to vector<32x16xf32>
    %116 = arith.subf %104, %115 : vector<32x16xf32>
    %cst_73 = arith.constant 9.99999974E-6 : f32
    %117 = vector.broadcast %cst_73 : f32 to vector<1x16xf32>
    %118 = arith.addf %114, %117 : vector<1x16xf32>
    %119 = math.rsqrt %118 : vector<1x16xf32>
    %120 = vector.broadcast %119 : vector<1x16xf32> to vector<32x16xf32>
    %121 = arith.mulf %116, %120 : vector<32x16xf32>
    %122 = vector.extract_strided_slice %105 {offsets = [0, 0], sizes = [1, 16], strides = [1, 1]} : vector<2x16xf32> to vector<1x16xf32>
    %123 = vector.broadcast %122 : vector<1x16xf32> to vector<32x16xf32>
    %124 = arith.mulf %121, %123 : vector<32x16xf32>
    %125 = vector.extract_strided_slice %105 {offsets = [1, 0], sizes = [1, 16], strides = [1, 1]} : vector<2x16xf32> to vector<1x16xf32>
    %126 = vector.broadcast %125 : vector<1x16xf32> to vector<32x16xf32>
    %127 = arith.addf %124, %126 : vector<32x16xf32>
    %cst_74 = arith.constant 0.000000e+00 : f32
    %128 = vector.broadcast %cst_74 : f32 to vector<32x16xf32>
    %129 = arith.maximumf %127, %128 : vector<32x16xf32>
    %c64_75 = arith.constant 64 : index
    %c0_76 = arith.constant 0 : index
    %130 = vector.load %arg2[%c64_75, %c0_76] : memref<408x128xf32, #tpu.memory_space<vmem>>, vector<32x32xf32>
    %cst_77 = arith.constant dense<0.000000e+00> : vector<32x16xf32>
    %131 = tpu.matmul %130, %129, %cst_77 {dimension_numbers = #tpu.dot_dimension_numbers<[1], [0], [0], [1], [0, 0, 1, 1], [], []>} : vector<32x32xf32>, vector<32x16xf32>, vector<32x16xf32> -> vector<32x16xf32>
    %c208 = arith.constant 208 : index
    %c0_78 = arith.constant 0 : index
    %132 = vector.load %arg1[%c208, %c0_78] : memref<1216x128xbf16, #tpu.memory_space<vmem>>, vector<16x16xbf16>
    %133 = arith.truncf %131 : vector<32x16xf32> to vector<32x16xbf16>
    %cst_79 = arith.constant dense<0.000000e+00> : vector<32x16xf32>
    %134 = tpu.matmul %133, %132, %cst_79 {dimension_numbers = #tpu.dot_dimension_numbers<[1], [0], [0], [1], [0, 0, 1, 1], [], []>} : vector<32x16xbf16>, vector<16x16xbf16>, vector<32x16xf32> -> vector<32x16xf32>
    %c224_80 = arith.constant 224 : index
    %c0_81 = arith.constant 0 : index
    %135 = vector.load %arg1[%c224_80, %c0_81] : memref<1216x128xbf16, #tpu.memory_space<vmem>>, vector<16x16xbf16>
    %136 = arith.truncf %129 : vector<32x16xf32> to vector<32x16xbf16>
    %cst_82 = arith.constant dense<0.000000e+00> : vector<32x16xf32>
    %137 = tpu.matmul %136, %135, %cst_82 {dimension_numbers = #tpu.dot_dimension_numbers<[1], [0], [0], [1], [0, 0, 1, 1], [], []>} : vector<32x16xbf16>, vector<16x16xbf16>, vector<32x16xf32> -> vector<32x16xf32>
    %138 = arith.addf %134, %137 : vector<32x16xf32>
    %c96_83 = arith.constant 96 : index
    %c0_84 = arith.constant 0 : index
    %139 = vector.load %arg2[%c96_83, %c0_84] : memref<408x128xf32, #tpu.memory_space<vmem>>, vector<32x32xf32>
    %cst_85 = arith.constant dense<0.000000e+00> : vector<32x16xf32>
    %140 = tpu.matmul %139, %129, %cst_85 {dimension_numbers = #tpu.dot_dimension_numbers<[1], [0], [0], [1], [0, 0, 1, 1], [], []>} : vector<32x32xf32>, vector<32x16xf32>, vector<32x16xf32> -> vector<32x16xf32>
    %c240_86 = arith.constant 240 : index
    %c0_87 = arith.constant 0 : index
    %141 = vector.load %arg1[%c240_86, %c0_87] : memref<1216x128xbf16, #tpu.memory_space<vmem>>, vector<16x16xbf16>
    %142 = arith.truncf %140 : vector<32x16xf32> to vector<32x16xbf16>
    %cst_88 = arith.constant dense<0.000000e+00> : vector<32x16xf32>
    %143 = tpu.matmul %142, %141, %cst_88 {dimension_numbers = #tpu.dot_dimension_numbers<[1], [0], [0], [1], [0, 0, 1, 1], [], []>} : vector<32x16xbf16>, vector<16x16xbf16>, vector<32x16xf32> -> vector<32x16xf32>
    %144 = arith.addf %138, %143 : vector<32x16xf32>
    %c256 = arith.constant 256 : index
    %c0_89 = arith.constant 0 : index
    %145 = vector.load %arg2[%c256, %c0_89] : memref<408x128xf32, #tpu.memory_space<vmem>>, vector<1x16xf32>
    %146 = vector.broadcast %145 : vector<1x16xf32> to vector<32x16xf32>
    %147 = arith.addf %144, %146 : vector<32x16xf32>
    %c256_90 = arith.constant 256 : index
    %c0_91 = arith.constant 0 : index
    %148 = vector.load %arg1[%c256_90, %c0_91] : memref<1216x128xbf16, #tpu.memory_space<vmem>>, vector<4x16xbf16>
    %149 = arith.truncf %0 : vector<32x4xf32> to vector<32x4xbf16>
    %cst_92 = arith.constant dense<0.000000e+00> : vector<32x16xf32>
    %150 = tpu.matmul %149, %148, %cst_92 {dimension_numbers = #tpu.dot_dimension_numbers<[1], [0], [0], [1], [0, 0, 1, 1], [], []>} : vector<32x4xbf16>, vector<4x16xbf16>, vector<32x16xf32> -> vector<32x16xf32>
    %c264 = arith.constant 264 : index
    %c0_93 = arith.constant 0 : index
    %151 = vector.load %arg2[%c264, %c0_93] : memref<408x128xf32, #tpu.memory_space<vmem>>, vector<1x16xf32>
    %152 = vector.broadcast %151 : vector<1x16xf32> to vector<32x16xf32>
    %153 = arith.addf %150, %152 : vector<32x16xf32>
    %cst_94 = arith.constant dense<0.000000e+00> : vector<8x16xf32>
    %154 = tpu.matmul %1, %153, %cst_94 {dimension_numbers = #tpu.dot_dimension_numbers<[1], [0], [0], [1], [0, 0, 1, 1], [], []>} : vector<8x32xf32>, vector<32x16xf32>, vector<8x16xf32> -> vector<8x16xf32>
    %155 = vector.extract_strided_slice %154 {offsets = [0, 0], sizes = [1, 16], strides = [1, 1]} : vector<8x16xf32> to vector<1x16xf32>
    %156 = arith.mulf %153, %153 : vector<32x16xf32>
    %cst_95 = arith.constant dense<0.000000e+00> : vector<8x16xf32>
    %157 = tpu.matmul %1, %156, %cst_95 {dimension_numbers = #tpu.dot_dimension_numbers<[1], [0], [0], [1], [0, 0, 1, 1], [], []>} : vector<8x32xf32>, vector<32x16xf32>, vector<8x16xf32> -> vector<8x16xf32>
    %158 = vector.extract_strided_slice %157 {offsets = [0, 0], sizes = [1, 16], strides = [1, 1]} : vector<8x16xf32> to vector<1x16xf32>
    %159 = arith.mulf %155, %155 : vector<1x16xf32>
    %160 = arith.subf %158, %159 : vector<1x16xf32>
    %cst_96 = arith.constant 0.000000e+00 : f32
    %161 = vector.broadcast %cst_96 : f32 to vector<1x16xf32>
    %162 = arith.maximumf %160, %161 : vector<1x16xf32>
    %163 = vector.broadcast %155 : vector<1x16xf32> to vector<32x16xf32>
    %164 = arith.subf %153, %163 : vector<32x16xf32>
    %cst_97 = arith.constant 9.99999974E-6 : f32
    %165 = vector.broadcast %cst_97 : f32 to vector<1x16xf32>
    %166 = arith.addf %162, %165 : vector<1x16xf32>
    %167 = math.rsqrt %166 : vector<1x16xf32>
    %168 = vector.broadcast %167 : vector<1x16xf32> to vector<32x16xf32>
    %169 = arith.mulf %164, %168 : vector<32x16xf32>
    %c344 = arith.constant 344 : index
    %c0_98 = arith.constant 0 : index
    %170 = vector.load %arg2[%c344, %c0_98] : memref<408x128xf32, #tpu.memory_space<vmem>>, vector<2x16xf32>
    %cst_99 = arith.constant dense<0.000000e+00> : vector<8x16xf32>
    %171 = tpu.matmul %1, %147, %cst_99 {dimension_numbers = #tpu.dot_dimension_numbers<[1], [0], [0], [1], [0, 0, 1, 1], [], []>} : vector<8x32xf32>, vector<32x16xf32>, vector<8x16xf32> -> vector<8x16xf32>
    %172 = vector.extract_strided_slice %171 {offsets = [0, 0], sizes = [1, 16], strides = [1, 1]} : vector<8x16xf32> to vector<1x16xf32>
    %173 = arith.mulf %147, %147 : vector<32x16xf32>
    %cst_100 = arith.constant dense<0.000000e+00> : vector<8x16xf32>
    %174 = tpu.matmul %1, %173, %cst_100 {dimension_numbers = #tpu.dot_dimension_numbers<[1], [0], [0], [1], [0, 0, 1, 1], [], []>} : vector<8x32xf32>, vector<32x16xf32>, vector<8x16xf32> -> vector<8x16xf32>
    %175 = vector.extract_strided_slice %174 {offsets = [0, 0], sizes = [1, 16], strides = [1, 1]} : vector<8x16xf32> to vector<1x16xf32>
    %176 = arith.mulf %172, %172 : vector<1x16xf32>
    %177 = arith.subf %175, %176 : vector<1x16xf32>
    %cst_101 = arith.constant 0.000000e+00 : f32
    %178 = vector.broadcast %cst_101 : f32 to vector<1x16xf32>
    %179 = arith.maximumf %177, %178 : vector<1x16xf32>
    %180 = vector.broadcast %172 : vector<1x16xf32> to vector<32x16xf32>
    %181 = arith.subf %147, %180 : vector<32x16xf32>
    %cst_102 = arith.constant 9.99999974E-6 : f32
    %182 = vector.broadcast %cst_102 : f32 to vector<1x16xf32>
    %183 = arith.addf %179, %182 : vector<1x16xf32>
    %184 = math.rsqrt %183 : vector<1x16xf32>
    %185 = vector.broadcast %184 : vector<1x16xf32> to vector<32x16xf32>
    %186 = arith.mulf %181, %185 : vector<32x16xf32>
    %187 = vector.extract_strided_slice %170 {offsets = [0, 0], sizes = [1, 16], strides = [1, 1]} : vector<2x16xf32> to vector<1x16xf32>
    %188 = vector.broadcast %187 : vector<1x16xf32> to vector<32x16xf32>
    %189 = arith.mulf %186, %188 : vector<32x16xf32>
    %190 = vector.extract_strided_slice %170 {offsets = [1, 0], sizes = [1, 16], strides = [1, 1]} : vector<2x16xf32> to vector<1x16xf32>
    %191 = vector.broadcast %190 : vector<1x16xf32> to vector<32x16xf32>
    %192 = arith.addf %189, %191 : vector<32x16xf32>
    %193 = arith.addf %192, %169 : vector<32x16xf32>
    %cst_103 = arith.constant 0.000000e+00 : f32
    %194 = vector.broadcast %cst_103 : f32 to vector<32x16xf32>
    %195 = arith.maximumf %193, %194 : vector<32x16xf32>
    %c0_104 = arith.constant 0 : index
    %c0_105 = arith.constant 0 : index
    %196 = vector.load %arg2[%c0_104, %c0_105] : memref<408x128xf32, #tpu.memory_space<vmem>>, vector<32x32xf32>
    %cst_106 = arith.constant dense<0.000000e+00> : vector<32x16xf32>
    %197 = tpu.matmul %196, %195, %cst_106 {dimension_numbers = #tpu.dot_dimension_numbers<[1], [0], [0], [1], [0, 0, 1, 1], [], []>} : vector<32x32xf32>, vector<32x16xf32>, vector<32x16xf32> -> vector<32x16xf32>
    %c272 = arith.constant 272 : index
    %c0_107 = arith.constant 0 : index
    %198 = vector.load %arg1[%c272, %c0_107] : memref<1216x128xbf16, #tpu.memory_space<vmem>>, vector<16x32xbf16>
    %199 = arith.truncf %197 : vector<32x16xf32> to vector<32x16xbf16>
    %cst_108 = arith.constant dense<0.000000e+00> : vector<32x32xf32>
    %200 = tpu.matmul %199, %198, %cst_108 {dimension_numbers = #tpu.dot_dimension_numbers<[1], [0], [0], [1], [0, 0, 1, 1], [], []>} : vector<32x16xbf16>, vector<16x32xbf16>, vector<32x32xf32> -> vector<32x32xf32>
    %c32_109 = arith.constant 32 : index
    %c0_110 = arith.constant 0 : index
    %201 = vector.load %arg2[%c32_109, %c0_110] : memref<408x128xf32, #tpu.memory_space<vmem>>, vector<32x32xf32>
    %cst_111 = arith.constant dense<0.000000e+00> : vector<32x16xf32>
    %202 = tpu.matmul %201, %195, %cst_111 {dimension_numbers = #tpu.dot_dimension_numbers<[1], [0], [0], [1], [0, 0, 1, 1], [], []>} : vector<32x32xf32>, vector<32x16xf32>, vector<32x16xf32> -> vector<32x16xf32>
    %c288 = arith.constant 288 : index
    %c0_112 = arith.constant 0 : index
    %203 = vector.load %arg1[%c288, %c0_112] : memref<1216x128xbf16, #tpu.memory_space<vmem>>, vector<16x32xbf16>
    %204 = arith.truncf %202 : vector<32x16xf32> to vector<32x16xbf16>
    %cst_113 = arith.constant dense<0.000000e+00> : vector<32x32xf32>
    %205 = tpu.matmul %204, %203, %cst_113 {dimension_numbers = #tpu.dot_dimension_numbers<[1], [0], [0], [1], [0, 0, 1, 1], [], []>} : vector<32x16xbf16>, vector<16x32xbf16>, vector<32x32xf32> -> vector<32x32xf32>
    %206 = arith.addf %200, %205 : vector<32x32xf32>
    %c64_114 = arith.constant 64 : index
    %c0_115 = arith.constant 0 : index
    %207 = vector.load %arg2[%c64_114, %c0_115] : memref<408x128xf32, #tpu.memory_space<vmem>>, vector<32x32xf32>
    %cst_116 = arith.constant dense<0.000000e+00> : vector<32x16xf32>
    %208 = tpu.matmul %207, %195, %cst_116 {dimension_numbers = #tpu.dot_dimension_numbers<[1], [0], [0], [1], [0, 0, 1, 1], [], []>} : vector<32x32xf32>, vector<32x16xf32>, vector<32x16xf32> -> vector<32x16xf32>
    %c304 = arith.constant 304 : index
    %c0_117 = arith.constant 0 : index
    %209 = vector.load %arg1[%c304, %c0_117] : memref<1216x128xbf16, #tpu.memory_space<vmem>>, vector<16x32xbf16>
    %210 = arith.truncf %208 : vector<32x16xf32> to vector<32x16xbf16>
    %cst_118 = arith.constant dense<0.000000e+00> : vector<32x32xf32>
    %211 = tpu.matmul %210, %209, %cst_118 {dimension_numbers = #tpu.dot_dimension_numbers<[1], [0], [0], [1], [0, 0, 1, 1], [], []>} : vector<32x16xbf16>, vector<16x32xbf16>, vector<32x32xf32> -> vector<32x32xf32>
    %212 = arith.addf %206, %211 : vector<32x32xf32>
    %c320 = arith.constant 320 : index
    %c0_119 = arith.constant 0 : index
    %213 = vector.load %arg1[%c320, %c0_119] : memref<1216x128xbf16, #tpu.memory_space<vmem>>, vector<16x32xbf16>
    %214 = arith.truncf %195 : vector<32x16xf32> to vector<32x16xbf16>
    %cst_120 = arith.constant dense<0.000000e+00> : vector<32x32xf32>
    %215 = tpu.matmul %214, %213, %cst_120 {dimension_numbers = #tpu.dot_dimension_numbers<[1], [0], [0], [1], [0, 0, 1, 1], [], []>} : vector<32x16xbf16>, vector<16x32xbf16>, vector<32x32xf32> -> vector<32x32xf32>
    %216 = arith.addf %212, %215 : vector<32x32xf32>
    %c96_121 = arith.constant 96 : index
    %c0_122 = arith.constant 0 : index
    %217 = vector.load %arg2[%c96_121, %c0_122] : memref<408x128xf32, #tpu.memory_space<vmem>>, vector<32x32xf32>
    %cst_123 = arith.constant dense<0.000000e+00> : vector<32x16xf32>
    %218 = tpu.matmul %217, %195, %cst_123 {dimension_numbers = #tpu.dot_dimension_numbers<[1], [0], [0], [1], [0, 0, 1, 1], [], []>} : vector<32x32xf32>, vector<32x16xf32>, vector<32x16xf32> -> vector<32x16xf32>
    %c336_124 = arith.constant 336 : index
    %c0_125 = arith.constant 0 : index
    %219 = vector.load %arg1[%c336_124, %c0_125] : memref<1216x128xbf16, #tpu.memory_space<vmem>>, vector<16x32xbf16>
    %220 = arith.truncf %218 : vector<32x16xf32> to vector<32x16xbf16>
    %cst_126 = arith.constant dense<0.000000e+00> : vector<32x32xf32>
    %221 = tpu.matmul %220, %219, %cst_126 {dimension_numbers = #tpu.dot_dimension_numbers<[1], [0], [0], [1], [0, 0, 1, 1], [], []>} : vector<32x16xbf16>, vector<16x32xbf16>, vector<32x32xf32> -> vector<32x32xf32>
    %222 = arith.addf %216, %221 : vector<32x32xf32>
    %c128_127 = arith.constant 128 : index
    %c0_128 = arith.constant 0 : index
    %223 = vector.load %arg2[%c128_127, %c0_128] : memref<408x128xf32, #tpu.memory_space<vmem>>, vector<32x32xf32>
    %cst_129 = arith.constant dense<0.000000e+00> : vector<32x16xf32>
    %224 = tpu.matmul %223, %195, %cst_129 {dimension_numbers = #tpu.dot_dimension_numbers<[1], [0], [0], [1], [0, 0, 1, 1], [], []>} : vector<32x32xf32>, vector<32x16xf32>, vector<32x16xf32> -> vector<32x16xf32>
    %c352 = arith.constant 352 : index
    %c0_130 = arith.constant 0 : index
    %225 = vector.load %arg1[%c352, %c0_130] : memref<1216x128xbf16, #tpu.memory_space<vmem>>, vector<16x32xbf16>
    %226 = arith.truncf %224 : vector<32x16xf32> to vector<32x16xbf16>
    %cst_131 = arith.constant dense<0.000000e+00> : vector<32x32xf32>
    %227 = tpu.matmul %226, %225, %cst_131 {dimension_numbers = #tpu.dot_dimension_numbers<[1], [0], [0], [1], [0, 0, 1, 1], [], []>} : vector<32x16xbf16>, vector<16x32xbf16>, vector<32x32xf32> -> vector<32x32xf32>
    %228 = arith.addf %222, %227 : vector<32x32xf32>
    %c160_132 = arith.constant 160 : index
    %c0_133 = arith.constant 0 : index
    %229 = vector.load %arg2[%c160_132, %c0_133] : memref<408x128xf32, #tpu.memory_space<vmem>>, vector<32x32xf32>
    %cst_134 = arith.constant dense<0.000000e+00> : vector<32x16xf32>
    %230 = tpu.matmul %229, %195, %cst_134 {dimension_numbers = #tpu.dot_dimension_numbers<[1], [0], [0], [1], [0, 0, 1, 1], [], []>} : vector<32x32xf32>, vector<32x16xf32>, vector<32x16xf32> -> vector<32x16xf32>
    %c368 = arith.constant 368 : index
    %c0_135 = arith.constant 0 : index
    %231 = vector.load %arg1[%c368, %c0_135] : memref<1216x128xbf16, #tpu.memory_space<vmem>>, vector<16x32xbf16>
    %232 = arith.truncf %230 : vector<32x16xf32> to vector<32x16xbf16>
    %cst_136 = arith.constant dense<0.000000e+00> : vector<32x32xf32>
    %233 = tpu.matmul %232, %231, %cst_136 {dimension_numbers = #tpu.dot_dimension_numbers<[1], [0], [0], [1], [0, 0, 1, 1], [], []>} : vector<32x16xbf16>, vector<16x32xbf16>, vector<32x32xf32> -> vector<32x32xf32>
    %234 = arith.addf %228, %233 : vector<32x32xf32>
    %c192_137 = arith.constant 192 : index
    %c0_138 = arith.constant 0 : index
    %235 = vector.load %arg2[%c192_137, %c0_138] : memref<408x128xf32, #tpu.memory_space<vmem>>, vector<32x32xf32>
    %cst_139 = arith.constant dense<0.000000e+00> : vector<32x16xf32>
    %236 = tpu.matmul %235, %195, %cst_139 {dimension_numbers = #tpu.dot_dimension_numbers<[1], [0], [0], [1], [0, 0, 1, 1], [], []>} : vector<32x32xf32>, vector<32x16xf32>, vector<32x16xf32> -> vector<32x16xf32>
    %c384 = arith.constant 384 : index
    %c0_140 = arith.constant 0 : index
    %237 = vector.load %arg1[%c384, %c0_140] : memref<1216x128xbf16, #tpu.memory_space<vmem>>, vector<16x32xbf16>
    %238 = arith.truncf %236 : vector<32x16xf32> to vector<32x16xbf16>
    %cst_141 = arith.constant dense<0.000000e+00> : vector<32x32xf32>
    %239 = tpu.matmul %238, %237, %cst_141 {dimension_numbers = #tpu.dot_dimension_numbers<[1], [0], [0], [1], [0, 0, 1, 1], [], []>} : vector<32x16xbf16>, vector<16x32xbf16>, vector<32x32xf32> -> vector<32x32xf32>
    %240 = arith.addf %234, %239 : vector<32x32xf32>
    %c272_142 = arith.constant 272 : index
    %c0_143 = arith.constant 0 : index
    %241 = vector.load %arg2[%c272_142, %c0_143] : memref<408x128xf32, #tpu.memory_space<vmem>>, vector<1x32xf32>
    %242 = vector.broadcast %241 : vector<1x32xf32> to vector<32x32xf32>
    %243 = arith.addf %240, %242 : vector<32x32xf32>
    %c352_144 = arith.constant 352 : index
    %c0_145 = arith.constant 0 : index
    %244 = vector.load %arg2[%c352_144, %c0_145] : memref<408x128xf32, #tpu.memory_space<vmem>>, vector<2x32xf32>
    %cst_146 = arith.constant dense<0.000000e+00> : vector<8x32xf32>
    %245 = tpu.matmul %1, %243, %cst_146 {dimension_numbers = #tpu.dot_dimension_numbers<[1], [0], [0], [1], [0, 0, 1, 1], [], []>} : vector<8x32xf32>, vector<32x32xf32>, vector<8x32xf32> -> vector<8x32xf32>
    %246 = vector.extract_strided_slice %245 {offsets = [0, 0], sizes = [1, 32], strides = [1, 1]} : vector<8x32xf32> to vector<1x32xf32>
    %247 = arith.mulf %243, %243 : vector<32x32xf32>
    %cst_147 = arith.constant dense<0.000000e+00> : vector<8x32xf32>
    %248 = tpu.matmul %1, %247, %cst_147 {dimension_numbers = #tpu.dot_dimension_numbers<[1], [0], [0], [1], [0, 0, 1, 1], [], []>} : vector<8x32xf32>, vector<32x32xf32>, vector<8x32xf32> -> vector<8x32xf32>
    %249 = vector.extract_strided_slice %248 {offsets = [0, 0], sizes = [1, 32], strides = [1, 1]} : vector<8x32xf32> to vector<1x32xf32>
    %250 = arith.mulf %246, %246 : vector<1x32xf32>
    %251 = arith.subf %249, %250 : vector<1x32xf32>
    %cst_148 = arith.constant 0.000000e+00 : f32
    %252 = vector.broadcast %cst_148 : f32 to vector<1x32xf32>
    %253 = arith.maximumf %251, %252 : vector<1x32xf32>
    %254 = vector.broadcast %246 : vector<1x32xf32> to vector<32x32xf32>
    %255 = arith.subf %243, %254 : vector<32x32xf32>
    %cst_149 = arith.constant 9.99999974E-6 : f32
    %256 = vector.broadcast %cst_149 : f32 to vector<1x32xf32>
    %257 = arith.addf %253, %256 : vector<1x32xf32>
    %258 = math.rsqrt %257 : vector<1x32xf32>
    %259 = vector.broadcast %258 : vector<1x32xf32> to vector<32x32xf32>
    %260 = arith.mulf %255, %259 : vector<32x32xf32>
    %261 = vector.extract_strided_slice %244 {offsets = [0, 0], sizes = [1, 32], strides = [1, 1]} : vector<2x32xf32> to vector<1x32xf32>
    %262 = vector.broadcast %261 : vector<1x32xf32> to vector<32x32xf32>
    %263 = arith.mulf %260, %262 : vector<32x32xf32>
    %264 = vector.extract_strided_slice %244 {offsets = [1, 0], sizes = [1, 32], strides = [1, 1]} : vector<2x32xf32> to vector<1x32xf32>
    %265 = vector.broadcast %264 : vector<1x32xf32> to vector<32x32xf32>
    %266 = arith.addf %263, %265 : vector<32x32xf32>
    %cst_150 = arith.constant 0.000000e+00 : f32
    %267 = vector.broadcast %cst_150 : f32 to vector<32x32xf32>
    %268 = arith.maximumf %266, %267 : vector<32x32xf32>
    %c32_151 = arith.constant 32 : index
    %c0_152 = arith.constant 0 : index
    %269 = vector.load %arg2[%c32_151, %c0_152] : memref<408x128xf32, #tpu.memory_space<vmem>>, vector<32x32xf32>
    %cst_153 = arith.constant dense<0.000000e+00> : vector<32x32xf32>
    %270 = tpu.matmul %269, %268, %cst_153 {dimension_numbers = #tpu.dot_dimension_numbers<[1], [0], [0], [1], [0, 0, 1, 1], [], []>} : vector<32x32xf32>, vector<32x32xf32>, vector<32x32xf32> -> vector<32x32xf32>
    %c400 = arith.constant 400 : index
    %c0_154 = arith.constant 0 : index
    %271 = vector.load %arg1[%c400, %c0_154] : memref<1216x128xbf16, #tpu.memory_space<vmem>>, vector<32x32xbf16>
    %272 = arith.truncf %270 : vector<32x32xf32> to vector<32x32xbf16>
    %cst_155 = arith.constant dense<0.000000e+00> : vector<32x32xf32>
    %273 = tpu.matmul %272, %271, %cst_155 {dimension_numbers = #tpu.dot_dimension_numbers<[1], [0], [0], [1], [0, 0, 1, 1], [], []>} : vector<32x32xbf16>, vector<32x32xbf16>, vector<32x32xf32> -> vector<32x32xf32>
    %c64_156 = arith.constant 64 : index
    %c0_157 = arith.constant 0 : index
    %274 = vector.load %arg2[%c64_156, %c0_157] : memref<408x128xf32, #tpu.memory_space<vmem>>, vector<32x32xf32>
    %cst_158 = arith.constant dense<0.000000e+00> : vector<32x32xf32>
    %275 = tpu.matmul %274, %268, %cst_158 {dimension_numbers = #tpu.dot_dimension_numbers<[1], [0], [0], [1], [0, 0, 1, 1], [], []>} : vector<32x32xf32>, vector<32x32xf32>, vector<32x32xf32> -> vector<32x32xf32>
    %c432 = arith.constant 432 : index
    %c0_159 = arith.constant 0 : index
    %276 = vector.load %arg1[%c432, %c0_159] : memref<1216x128xbf16, #tpu.memory_space<vmem>>, vector<32x32xbf16>
    %277 = arith.truncf %275 : vector<32x32xf32> to vector<32x32xbf16>
    %cst_160 = arith.constant dense<0.000000e+00> : vector<32x32xf32>
    %278 = tpu.matmul %277, %276, %cst_160 {dimension_numbers = #tpu.dot_dimension_numbers<[1], [0], [0], [1], [0, 0, 1, 1], [], []>} : vector<32x32xbf16>, vector<32x32xbf16>, vector<32x32xf32> -> vector<32x32xf32>
    %279 = arith.addf %273, %278 : vector<32x32xf32>
    %c464 = arith.constant 464 : index
    %c0_161 = arith.constant 0 : index
    %280 = vector.load %arg1[%c464, %c0_161] : memref<1216x128xbf16, #tpu.memory_space<vmem>>, vector<32x32xbf16>
    %281 = arith.truncf %268 : vector<32x32xf32> to vector<32x32xbf16>
    %cst_162 = arith.constant dense<0.000000e+00> : vector<32x32xf32>
    %282 = tpu.matmul %281, %280, %cst_162 {dimension_numbers = #tpu.dot_dimension_numbers<[1], [0], [0], [1], [0, 0, 1, 1], [], []>} : vector<32x32xbf16>, vector<32x32xbf16>, vector<32x32xf32> -> vector<32x32xf32>
    %283 = arith.addf %279, %282 : vector<32x32xf32>
    %c96_163 = arith.constant 96 : index
    %c0_164 = arith.constant 0 : index
    %284 = vector.load %arg2[%c96_163, %c0_164] : memref<408x128xf32, #tpu.memory_space<vmem>>, vector<32x32xf32>
    %cst_165 = arith.constant dense<0.000000e+00> : vector<32x32xf32>
    %285 = tpu.matmul %284, %268, %cst_165 {dimension_numbers = #tpu.dot_dimension_numbers<[1], [0], [0], [1], [0, 0, 1, 1], [], []>} : vector<32x32xf32>, vector<32x32xf32>, vector<32x32xf32> -> vector<32x32xf32>
    %c496 = arith.constant 496 : index
    %c0_166 = arith.constant 0 : index
    %286 = vector.load %arg1[%c496, %c0_166] : memref<1216x128xbf16, #tpu.memory_space<vmem>>, vector<32x32xbf16>
    %287 = arith.truncf %285 : vector<32x32xf32> to vector<32x32xbf16>
    %cst_167 = arith.constant dense<0.000000e+00> : vector<32x32xf32>
    %288 = tpu.matmul %287, %286, %cst_167 {dimension_numbers = #tpu.dot_dimension_numbers<[1], [0], [0], [1], [0, 0, 1, 1], [], []>} : vector<32x32xbf16>, vector<32x32xbf16>, vector<32x32xf32> -> vector<32x32xf32>
    %289 = arith.addf %283, %288 : vector<32x32xf32>
    %c128_168 = arith.constant 128 : index
    %c0_169 = arith.constant 0 : index
    %290 = vector.load %arg2[%c128_168, %c0_169] : memref<408x128xf32, #tpu.memory_space<vmem>>, vector<32x32xf32>
    %cst_170 = arith.constant dense<0.000000e+00> : vector<32x32xf32>
    %291 = tpu.matmul %290, %268, %cst_170 {dimension_numbers = #tpu.dot_dimension_numbers<[1], [0], [0], [1], [0, 0, 1, 1], [], []>} : vector<32x32xf32>, vector<32x32xf32>, vector<32x32xf32> -> vector<32x32xf32>
    %c528 = arith.constant 528 : index
    %c0_171 = arith.constant 0 : index
    %292 = vector.load %arg1[%c528, %c0_171] : memref<1216x128xbf16, #tpu.memory_space<vmem>>, vector<32x32xbf16>
    %293 = arith.truncf %291 : vector<32x32xf32> to vector<32x32xbf16>
    %cst_172 = arith.constant dense<0.000000e+00> : vector<32x32xf32>
    %294 = tpu.matmul %293, %292, %cst_172 {dimension_numbers = #tpu.dot_dimension_numbers<[1], [0], [0], [1], [0, 0, 1, 1], [], []>} : vector<32x32xbf16>, vector<32x32xbf16>, vector<32x32xf32> -> vector<32x32xf32>
    %295 = arith.addf %289, %294 : vector<32x32xf32>
    %c280 = arith.constant 280 : index
    %c0_173 = arith.constant 0 : index
    %296 = vector.load %arg2[%c280, %c0_173] : memref<408x128xf32, #tpu.memory_space<vmem>>, vector<1x32xf32>
    %297 = vector.broadcast %296 : vector<1x32xf32> to vector<32x32xf32>
    %298 = arith.addf %295, %297 : vector<32x32xf32>
    %c360 = arith.constant 360 : index
    %c0_174 = arith.constant 0 : index
    %299 = vector.load %arg2[%c360, %c0_174] : memref<408x128xf32, #tpu.memory_space<vmem>>, vector<2x32xf32>
    %cst_175 = arith.constant dense<0.000000e+00> : vector<8x32xf32>
    %300 = tpu.matmul %1, %298, %cst_175 {dimension_numbers = #tpu.dot_dimension_numbers<[1], [0], [0], [1], [0, 0, 1, 1], [], []>} : vector<8x32xf32>, vector<32x32xf32>, vector<8x32xf32> -> vector<8x32xf32>
    %301 = vector.extract_strided_slice %300 {offsets = [0, 0], sizes = [1, 32], strides = [1, 1]} : vector<8x32xf32> to vector<1x32xf32>
    %302 = arith.mulf %298, %298 : vector<32x32xf32>
    %cst_176 = arith.constant dense<0.000000e+00> : vector<8x32xf32>
    %303 = tpu.matmul %1, %302, %cst_176 {dimension_numbers = #tpu.dot_dimension_numbers<[1], [0], [0], [1], [0, 0, 1, 1], [], []>} : vector<8x32xf32>, vector<32x32xf32>, vector<8x32xf32> -> vector<8x32xf32>
    %304 = vector.extract_strided_slice %303 {offsets = [0, 0], sizes = [1, 32], strides = [1, 1]} : vector<8x32xf32> to vector<1x32xf32>
    %305 = arith.mulf %301, %301 : vector<1x32xf32>
    %306 = arith.subf %304, %305 : vector<1x32xf32>
    %cst_177 = arith.constant 0.000000e+00 : f32
    %307 = vector.broadcast %cst_177 : f32 to vector<1x32xf32>
    %308 = arith.maximumf %306, %307 : vector<1x32xf32>
    %309 = vector.broadcast %301 : vector<1x32xf32> to vector<32x32xf32>
    %310 = arith.subf %298, %309 : vector<32x32xf32>
    %cst_178 = arith.constant 9.99999974E-6 : f32
    %311 = vector.broadcast %cst_178 : f32 to vector<1x32xf32>
    %312 = arith.addf %308, %311 : vector<1x32xf32>
    %313 = math.rsqrt %312 : vector<1x32xf32>
    %314 = vector.broadcast %313 : vector<1x32xf32> to vector<32x32xf32>
    %315 = arith.mulf %310, %314 : vector<32x32xf32>
    %316 = vector.extract_strided_slice %299 {offsets = [0, 0], sizes = [1, 32], strides = [1, 1]} : vector<2x32xf32> to vector<1x32xf32>
    %317 = vector.broadcast %316 : vector<1x32xf32> to vector<32x32xf32>
    %318 = arith.mulf %315, %317 : vector<32x32xf32>
    %319 = vector.extract_strided_slice %299 {offsets = [1, 0], sizes = [1, 32], strides = [1, 1]} : vector<2x32xf32> to vector<1x32xf32>
    %320 = vector.broadcast %319 : vector<1x32xf32> to vector<32x32xf32>
    %321 = arith.addf %318, %320 : vector<32x32xf32>
    %cst_179 = arith.constant 0.000000e+00 : f32
    %322 = vector.broadcast %cst_179 : f32 to vector<32x32xf32>
    %323 = arith.maximumf %321, %322 : vector<32x32xf32>
    %c64_180 = arith.constant 64 : index
    %c0_181 = arith.constant 0 : index
    %324 = vector.load %arg2[%c64_180, %c0_181] : memref<408x128xf32, #tpu.memory_space<vmem>>, vector<32x32xf32>
    %cst_182 = arith.constant dense<0.000000e+00> : vector<32x32xf32>
    %325 = tpu.matmul %324, %323, %cst_182 {dimension_numbers = #tpu.dot_dimension_numbers<[1], [0], [0], [1], [0, 0, 1, 1], [], []>} : vector<32x32xf32>, vector<32x32xf32>, vector<32x32xf32> -> vector<32x32xf32>
    %c560 = arith.constant 560 : index
    %c0_183 = arith.constant 0 : index
    %326 = vector.load %arg1[%c560, %c0_183] : memref<1216x128xbf16, #tpu.memory_space<vmem>>, vector<32x32xbf16>
    %327 = arith.truncf %325 : vector<32x32xf32> to vector<32x32xbf16>
    %cst_184 = arith.constant dense<0.000000e+00> : vector<32x32xf32>
    %328 = tpu.matmul %327, %326, %cst_184 {dimension_numbers = #tpu.dot_dimension_numbers<[1], [0], [0], [1], [0, 0, 1, 1], [], []>} : vector<32x32xbf16>, vector<32x32xbf16>, vector<32x32xf32> -> vector<32x32xf32>
    %c592 = arith.constant 592 : index
    %c0_185 = arith.constant 0 : index
    %329 = vector.load %arg1[%c592, %c0_185] : memref<1216x128xbf16, #tpu.memory_space<vmem>>, vector<32x32xbf16>
    %330 = arith.truncf %323 : vector<32x32xf32> to vector<32x32xbf16>
    %cst_186 = arith.constant dense<0.000000e+00> : vector<32x32xf32>
    %331 = tpu.matmul %330, %329, %cst_186 {dimension_numbers = #tpu.dot_dimension_numbers<[1], [0], [0], [1], [0, 0, 1, 1], [], []>} : vector<32x32xbf16>, vector<32x32xbf16>, vector<32x32xf32> -> vector<32x32xf32>
    %332 = arith.addf %328, %331 : vector<32x32xf32>
    %c96_187 = arith.constant 96 : index
    %c0_188 = arith.constant 0 : index
    %333 = vector.load %arg2[%c96_187, %c0_188] : memref<408x128xf32, #tpu.memory_space<vmem>>, vector<32x32xf32>
    %cst_189 = arith.constant dense<0.000000e+00> : vector<32x32xf32>
    %334 = tpu.matmul %333, %323, %cst_189 {dimension_numbers = #tpu.dot_dimension_numbers<[1], [0], [0], [1], [0, 0, 1, 1], [], []>} : vector<32x32xf32>, vector<32x32xf32>, vector<32x32xf32> -> vector<32x32xf32>
    %c624 = arith.constant 624 : index
    %c0_190 = arith.constant 0 : index
    %335 = vector.load %arg1[%c624, %c0_190] : memref<1216x128xbf16, #tpu.memory_space<vmem>>, vector<32x32xbf16>
    %336 = arith.truncf %334 : vector<32x32xf32> to vector<32x32xbf16>
    %cst_191 = arith.constant dense<0.000000e+00> : vector<32x32xf32>
    %337 = tpu.matmul %336, %335, %cst_191 {dimension_numbers = #tpu.dot_dimension_numbers<[1], [0], [0], [1], [0, 0, 1, 1], [], []>} : vector<32x32xbf16>, vector<32x32xbf16>, vector<32x32xf32> -> vector<32x32xf32>
    %338 = arith.addf %332, %337 : vector<32x32xf32>
    %c288_192 = arith.constant 288 : index
    %c0_193 = arith.constant 0 : index
    %339 = vector.load %arg2[%c288_192, %c0_193] : memref<408x128xf32, #tpu.memory_space<vmem>>, vector<1x32xf32>
    %340 = vector.broadcast %339 : vector<1x32xf32> to vector<32x32xf32>
    %341 = arith.addf %338, %340 : vector<32x32xf32>
    %c656 = arith.constant 656 : index
    %c0_194 = arith.constant 0 : index
    %342 = vector.load %arg1[%c656, %c0_194] : memref<1216x128xbf16, #tpu.memory_space<vmem>>, vector<16x32xbf16>
    %343 = arith.truncf %195 : vector<32x16xf32> to vector<32x16xbf16>
    %cst_195 = arith.constant dense<0.000000e+00> : vector<32x32xf32>
    %344 = tpu.matmul %343, %342, %cst_195 {dimension_numbers = #tpu.dot_dimension_numbers<[1], [0], [0], [1], [0, 0, 1, 1], [], []>} : vector<32x16xbf16>, vector<16x32xbf16>, vector<32x32xf32> -> vector<32x32xf32>
    %c296 = arith.constant 296 : index
    %c0_196 = arith.constant 0 : index
    %345 = vector.load %arg2[%c296, %c0_196] : memref<408x128xf32, #tpu.memory_space<vmem>>, vector<1x32xf32>
    %346 = vector.broadcast %345 : vector<1x32xf32> to vector<32x32xf32>
    %347 = arith.addf %344, %346 : vector<32x32xf32>
    %cst_197 = arith.constant dense<0.000000e+00> : vector<8x32xf32>
    %348 = tpu.matmul %1, %347, %cst_197 {dimension_numbers = #tpu.dot_dimension_numbers<[1], [0], [0], [1], [0, 0, 1, 1], [], []>} : vector<8x32xf32>, vector<32x32xf32>, vector<8x32xf32> -> vector<8x32xf32>
    %349 = vector.extract_strided_slice %348 {offsets = [0, 0], sizes = [1, 32], strides = [1, 1]} : vector<8x32xf32> to vector<1x32xf32>
    %350 = arith.mulf %347, %347 : vector<32x32xf32>
    %cst_198 = arith.constant dense<0.000000e+00> : vector<8x32xf32>
    %351 = tpu.matmul %1, %350, %cst_198 {dimension_numbers = #tpu.dot_dimension_numbers<[1], [0], [0], [1], [0, 0, 1, 1], [], []>} : vector<8x32xf32>, vector<32x32xf32>, vector<8x32xf32> -> vector<8x32xf32>
    %352 = vector.extract_strided_slice %351 {offsets = [0, 0], sizes = [1, 32], strides = [1, 1]} : vector<8x32xf32> to vector<1x32xf32>
    %353 = arith.mulf %349, %349 : vector<1x32xf32>
    %354 = arith.subf %352, %353 : vector<1x32xf32>
    %cst_199 = arith.constant 0.000000e+00 : f32
    %355 = vector.broadcast %cst_199 : f32 to vector<1x32xf32>
    %356 = arith.maximumf %354, %355 : vector<1x32xf32>
    %357 = vector.broadcast %349 : vector<1x32xf32> to vector<32x32xf32>
    %358 = arith.subf %347, %357 : vector<32x32xf32>
    %cst_200 = arith.constant 9.99999974E-6 : f32
    %359 = vector.broadcast %cst_200 : f32 to vector<1x32xf32>
    %360 = arith.addf %356, %359 : vector<1x32xf32>
    %361 = math.rsqrt %360 : vector<1x32xf32>
    %362 = vector.broadcast %361 : vector<1x32xf32> to vector<32x32xf32>
    %363 = arith.mulf %358, %362 : vector<32x32xf32>
    %c368_201 = arith.constant 368 : index
    %c0_202 = arith.constant 0 : index
    %364 = vector.load %arg2[%c368_201, %c0_202] : memref<408x128xf32, #tpu.memory_space<vmem>>, vector<2x32xf32>
    %cst_203 = arith.constant dense<0.000000e+00> : vector<8x32xf32>
    %365 = tpu.matmul %1, %341, %cst_203 {dimension_numbers = #tpu.dot_dimension_numbers<[1], [0], [0], [1], [0, 0, 1, 1], [], []>} : vector<8x32xf32>, vector<32x32xf32>, vector<8x32xf32> -> vector<8x32xf32>
    %366 = vector.extract_strided_slice %365 {offsets = [0, 0], sizes = [1, 32], strides = [1, 1]} : vector<8x32xf32> to vector<1x32xf32>
    %367 = arith.mulf %341, %341 : vector<32x32xf32>
    %cst_204 = arith.constant dense<0.000000e+00> : vector<8x32xf32>
    %368 = tpu.matmul %1, %367, %cst_204 {dimension_numbers = #tpu.dot_dimension_numbers<[1], [0], [0], [1], [0, 0, 1, 1], [], []>} : vector<8x32xf32>, vector<32x32xf32>, vector<8x32xf32> -> vector<8x32xf32>
    %369 = vector.extract_strided_slice %368 {offsets = [0, 0], sizes = [1, 32], strides = [1, 1]} : vector<8x32xf32> to vector<1x32xf32>
    %370 = arith.mulf %366, %366 : vector<1x32xf32>
    %371 = arith.subf %369, %370 : vector<1x32xf32>
    %cst_205 = arith.constant 0.000000e+00 : f32
    %372 = vector.broadcast %cst_205 : f32 to vector<1x32xf32>
    %373 = arith.maximumf %371, %372 : vector<1x32xf32>
    %374 = vector.broadcast %366 : vector<1x32xf32> to vector<32x32xf32>
    %375 = arith.subf %341, %374 : vector<32x32xf32>
    %cst_206 = arith.constant 9.99999974E-6 : f32
    %376 = vector.broadcast %cst_206 : f32 to vector<1x32xf32>
    %377 = arith.addf %373, %376 : vector<1x32xf32>
    %378 = math.rsqrt %377 : vector<1x32xf32>
    %379 = vector.broadcast %378 : vector<1x32xf32> to vector<32x32xf32>
    %380 = arith.mulf %375, %379 : vector<32x32xf32>
    %381 = vector.extract_strided_slice %364 {offsets = [0, 0], sizes = [1, 32], strides = [1, 1]} : vector<2x32xf32> to vector<1x32xf32>
    %382 = vector.broadcast %381 : vector<1x32xf32> to vector<32x32xf32>
    %383 = arith.mulf %380, %382 : vector<32x32xf32>
    %384 = vector.extract_strided_slice %364 {offsets = [1, 0], sizes = [1, 32], strides = [1, 1]} : vector<2x32xf32> to vector<1x32xf32>
    %385 = vector.broadcast %384 : vector<1x32xf32> to vector<32x32xf32>
    %386 = arith.addf %383, %385 : vector<32x32xf32>
    %387 = arith.addf %386, %363 : vector<32x32xf32>
    %cst_207 = arith.constant 0.000000e+00 : f32
    %388 = vector.broadcast %cst_207 : f32 to vector<32x32xf32>
    %389 = arith.maximumf %387, %388 : vector<32x32xf32>
    %c0_208 = arith.constant 0 : index
    %c0_209 = arith.constant 0 : index
    %390 = vector.load %arg2[%c0_208, %c0_209] : memref<408x128xf32, #tpu.memory_space<vmem>>, vector<32x32xf32>
    %cst_210 = arith.constant dense<0.000000e+00> : vector<32x32xf32>
    %391 = tpu.matmul %390, %389, %cst_210 {dimension_numbers = #tpu.dot_dimension_numbers<[1], [0], [0], [1], [0, 0, 1, 1], [], []>} : vector<32x32xf32>, vector<32x32xf32>, vector<32x32xf32> -> vector<32x32xf32>
    %c672 = arith.constant 672 : index
    %c0_211 = arith.constant 0 : index
    %392 = vector.load %arg1[%c672, %c0_211] : memref<1216x128xbf16, #tpu.memory_space<vmem>>, vector<32x32xbf16>
    %393 = arith.truncf %391 : vector<32x32xf32> to vector<32x32xbf16>
    %cst_212 = arith.constant dense<0.000000e+00> : vector<32x32xf32>
    %394 = tpu.matmul %393, %392, %cst_212 {dimension_numbers = #tpu.dot_dimension_numbers<[1], [0], [0], [1], [0, 0, 1, 1], [], []>} : vector<32x32xbf16>, vector<32x32xbf16>, vector<32x32xf32> -> vector<32x32xf32>
    %c32_213 = arith.constant 32 : index
    %c0_214 = arith.constant 0 : index
    %395 = vector.load %arg2[%c32_213, %c0_214] : memref<408x128xf32, #tpu.memory_space<vmem>>, vector<32x32xf32>
    %cst_215 = arith.constant dense<0.000000e+00> : vector<32x32xf32>
    %396 = tpu.matmul %395, %389, %cst_215 {dimension_numbers = #tpu.dot_dimension_numbers<[1], [0], [0], [1], [0, 0, 1, 1], [], []>} : vector<32x32xf32>, vector<32x32xf32>, vector<32x32xf32> -> vector<32x32xf32>
    %c704 = arith.constant 704 : index
    %c0_216 = arith.constant 0 : index
    %397 = vector.load %arg1[%c704, %c0_216] : memref<1216x128xbf16, #tpu.memory_space<vmem>>, vector<32x32xbf16>
    %398 = arith.truncf %396 : vector<32x32xf32> to vector<32x32xbf16>
    %cst_217 = arith.constant dense<0.000000e+00> : vector<32x32xf32>
    %399 = tpu.matmul %398, %397, %cst_217 {dimension_numbers = #tpu.dot_dimension_numbers<[1], [0], [0], [1], [0, 0, 1, 1], [], []>} : vector<32x32xbf16>, vector<32x32xbf16>, vector<32x32xf32> -> vector<32x32xf32>
    %400 = arith.addf %394, %399 : vector<32x32xf32>
    %c64_218 = arith.constant 64 : index
    %c0_219 = arith.constant 0 : index
    %401 = vector.load %arg2[%c64_218, %c0_219] : memref<408x128xf32, #tpu.memory_space<vmem>>, vector<32x32xf32>
    %cst_220 = arith.constant dense<0.000000e+00> : vector<32x32xf32>
    %402 = tpu.matmul %401, %389, %cst_220 {dimension_numbers = #tpu.dot_dimension_numbers<[1], [0], [0], [1], [0, 0, 1, 1], [], []>} : vector<32x32xf32>, vector<32x32xf32>, vector<32x32xf32> -> vector<32x32xf32>
    %c736 = arith.constant 736 : index
    %c0_221 = arith.constant 0 : index
    %403 = vector.load %arg1[%c736, %c0_221] : memref<1216x128xbf16, #tpu.memory_space<vmem>>, vector<32x32xbf16>
    %404 = arith.truncf %402 : vector<32x32xf32> to vector<32x32xbf16>
    %cst_222 = arith.constant dense<0.000000e+00> : vector<32x32xf32>
    %405 = tpu.matmul %404, %403, %cst_222 {dimension_numbers = #tpu.dot_dimension_numbers<[1], [0], [0], [1], [0, 0, 1, 1], [], []>} : vector<32x32xbf16>, vector<32x32xbf16>, vector<32x32xf32> -> vector<32x32xf32>
    %406 = arith.addf %400, %405 : vector<32x32xf32>
    %c768 = arith.constant 768 : index
    %c0_223 = arith.constant 0 : index
    %407 = vector.load %arg1[%c768, %c0_223] : memref<1216x128xbf16, #tpu.memory_space<vmem>>, vector<32x32xbf16>
    %408 = arith.truncf %389 : vector<32x32xf32> to vector<32x32xbf16>
    %cst_224 = arith.constant dense<0.000000e+00> : vector<32x32xf32>
    %409 = tpu.matmul %408, %407, %cst_224 {dimension_numbers = #tpu.dot_dimension_numbers<[1], [0], [0], [1], [0, 0, 1, 1], [], []>} : vector<32x32xbf16>, vector<32x32xbf16>, vector<32x32xf32> -> vector<32x32xf32>
    %410 = arith.addf %406, %409 : vector<32x32xf32>
    %c96_225 = arith.constant 96 : index
    %c0_226 = arith.constant 0 : index
    %411 = vector.load %arg2[%c96_225, %c0_226] : memref<408x128xf32, #tpu.memory_space<vmem>>, vector<32x32xf32>
    %cst_227 = arith.constant dense<0.000000e+00> : vector<32x32xf32>
    %412 = tpu.matmul %411, %389, %cst_227 {dimension_numbers = #tpu.dot_dimension_numbers<[1], [0], [0], [1], [0, 0, 1, 1], [], []>} : vector<32x32xf32>, vector<32x32xf32>, vector<32x32xf32> -> vector<32x32xf32>
    %c800 = arith.constant 800 : index
    %c0_228 = arith.constant 0 : index
    %413 = vector.load %arg1[%c800, %c0_228] : memref<1216x128xbf16, #tpu.memory_space<vmem>>, vector<32x32xbf16>
    %414 = arith.truncf %412 : vector<32x32xf32> to vector<32x32xbf16>
    %cst_229 = arith.constant dense<0.000000e+00> : vector<32x32xf32>
    %415 = tpu.matmul %414, %413, %cst_229 {dimension_numbers = #tpu.dot_dimension_numbers<[1], [0], [0], [1], [0, 0, 1, 1], [], []>} : vector<32x32xbf16>, vector<32x32xbf16>, vector<32x32xf32> -> vector<32x32xf32>
    %416 = arith.addf %410, %415 : vector<32x32xf32>
    %c128_230 = arith.constant 128 : index
    %c0_231 = arith.constant 0 : index
    %417 = vector.load %arg2[%c128_230, %c0_231] : memref<408x128xf32, #tpu.memory_space<vmem>>, vector<32x32xf32>
    %cst_232 = arith.constant dense<0.000000e+00> : vector<32x32xf32>
    %418 = tpu.matmul %417, %389, %cst_232 {dimension_numbers = #tpu.dot_dimension_numbers<[1], [0], [0], [1], [0, 0, 1, 1], [], []>} : vector<32x32xf32>, vector<32x32xf32>, vector<32x32xf32> -> vector<32x32xf32>
    %c832 = arith.constant 832 : index
    %c0_233 = arith.constant 0 : index
    %419 = vector.load %arg1[%c832, %c0_233] : memref<1216x128xbf16, #tpu.memory_space<vmem>>, vector<32x32xbf16>
    %420 = arith.truncf %418 : vector<32x32xf32> to vector<32x32xbf16>
    %cst_234 = arith.constant dense<0.000000e+00> : vector<32x32xf32>
    %421 = tpu.matmul %420, %419, %cst_234 {dimension_numbers = #tpu.dot_dimension_numbers<[1], [0], [0], [1], [0, 0, 1, 1], [], []>} : vector<32x32xbf16>, vector<32x32xbf16>, vector<32x32xf32> -> vector<32x32xf32>
    %422 = arith.addf %416, %421 : vector<32x32xf32>
    %c160_235 = arith.constant 160 : index
    %c0_236 = arith.constant 0 : index
    %423 = vector.load %arg2[%c160_235, %c0_236] : memref<408x128xf32, #tpu.memory_space<vmem>>, vector<32x32xf32>
    %cst_237 = arith.constant dense<0.000000e+00> : vector<32x32xf32>
    %424 = tpu.matmul %423, %389, %cst_237 {dimension_numbers = #tpu.dot_dimension_numbers<[1], [0], [0], [1], [0, 0, 1, 1], [], []>} : vector<32x32xf32>, vector<32x32xf32>, vector<32x32xf32> -> vector<32x32xf32>
    %c864 = arith.constant 864 : index
    %c0_238 = arith.constant 0 : index
    %425 = vector.load %arg1[%c864, %c0_238] : memref<1216x128xbf16, #tpu.memory_space<vmem>>, vector<32x32xbf16>
    %426 = arith.truncf %424 : vector<32x32xf32> to vector<32x32xbf16>
    %cst_239 = arith.constant dense<0.000000e+00> : vector<32x32xf32>
    %427 = tpu.matmul %426, %425, %cst_239 {dimension_numbers = #tpu.dot_dimension_numbers<[1], [0], [0], [1], [0, 0, 1, 1], [], []>} : vector<32x32xbf16>, vector<32x32xbf16>, vector<32x32xf32> -> vector<32x32xf32>
    %428 = arith.addf %422, %427 : vector<32x32xf32>
    %c192_240 = arith.constant 192 : index
    %c0_241 = arith.constant 0 : index
    %429 = vector.load %arg2[%c192_240, %c0_241] : memref<408x128xf32, #tpu.memory_space<vmem>>, vector<32x32xf32>
    %cst_242 = arith.constant dense<0.000000e+00> : vector<32x32xf32>
    %430 = tpu.matmul %429, %389, %cst_242 {dimension_numbers = #tpu.dot_dimension_numbers<[1], [0], [0], [1], [0, 0, 1, 1], [], []>} : vector<32x32xf32>, vector<32x32xf32>, vector<32x32xf32> -> vector<32x32xf32>
    %c896 = arith.constant 896 : index
    %c0_243 = arith.constant 0 : index
    %431 = vector.load %arg1[%c896, %c0_243] : memref<1216x128xbf16, #tpu.memory_space<vmem>>, vector<32x32xbf16>
    %432 = arith.truncf %430 : vector<32x32xf32> to vector<32x32xbf16>
    %cst_244 = arith.constant dense<0.000000e+00> : vector<32x32xf32>
    %433 = tpu.matmul %432, %431, %cst_244 {dimension_numbers = #tpu.dot_dimension_numbers<[1], [0], [0], [1], [0, 0, 1, 1], [], []>} : vector<32x32xbf16>, vector<32x32xbf16>, vector<32x32xf32> -> vector<32x32xf32>
    %434 = arith.addf %428, %433 : vector<32x32xf32>
    %c304_245 = arith.constant 304 : index
    %c0_246 = arith.constant 0 : index
    %435 = vector.load %arg2[%c304_245, %c0_246] : memref<408x128xf32, #tpu.memory_space<vmem>>, vector<1x32xf32>
    %436 = vector.broadcast %435 : vector<1x32xf32> to vector<32x32xf32>
    %437 = arith.addf %434, %436 : vector<32x32xf32>
    %c376 = arith.constant 376 : index
    %c0_247 = arith.constant 0 : index
    %438 = vector.load %arg2[%c376, %c0_247] : memref<408x128xf32, #tpu.memory_space<vmem>>, vector<2x32xf32>
    %cst_248 = arith.constant dense<0.000000e+00> : vector<8x32xf32>
    %439 = tpu.matmul %1, %437, %cst_248 {dimension_numbers = #tpu.dot_dimension_numbers<[1], [0], [0], [1], [0, 0, 1, 1], [], []>} : vector<8x32xf32>, vector<32x32xf32>, vector<8x32xf32> -> vector<8x32xf32>
    %440 = vector.extract_strided_slice %439 {offsets = [0, 0], sizes = [1, 32], strides = [1, 1]} : vector<8x32xf32> to vector<1x32xf32>
    %441 = arith.mulf %437, %437 : vector<32x32xf32>
    %cst_249 = arith.constant dense<0.000000e+00> : vector<8x32xf32>
    %442 = tpu.matmul %1, %441, %cst_249 {dimension_numbers = #tpu.dot_dimension_numbers<[1], [0], [0], [1], [0, 0, 1, 1], [], []>} : vector<8x32xf32>, vector<32x32xf32>, vector<8x32xf32> -> vector<8x32xf32>
    %443 = vector.extract_strided_slice %442 {offsets = [0, 0], sizes = [1, 32], strides = [1, 1]} : vector<8x32xf32> to vector<1x32xf32>
    %444 = arith.mulf %440, %440 : vector<1x32xf32>
    %445 = arith.subf %443, %444 : vector<1x32xf32>
    %cst_250 = arith.constant 0.000000e+00 : f32
    %446 = vector.broadcast %cst_250 : f32 to vector<1x32xf32>
    %447 = arith.maximumf %445, %446 : vector<1x32xf32>
    %448 = vector.broadcast %440 : vector<1x32xf32> to vector<32x32xf32>
    %449 = arith.subf %437, %448 : vector<32x32xf32>
    %cst_251 = arith.constant 9.99999974E-6 : f32
    %450 = vector.broadcast %cst_251 : f32 to vector<1x32xf32>
    %451 = arith.addf %447, %450 : vector<1x32xf32>
    %452 = math.rsqrt %451 : vector<1x32xf32>
    %453 = vector.broadcast %452 : vector<1x32xf32> to vector<32x32xf32>
    %454 = arith.mulf %449, %453 : vector<32x32xf32>
    %455 = vector.extract_strided_slice %438 {offsets = [0, 0], sizes = [1, 32], strides = [1, 1]} : vector<2x32xf32> to vector<1x32xf32>
    %456 = vector.broadcast %455 : vector<1x32xf32> to vector<32x32xf32>
    %457 = arith.mulf %454, %456 : vector<32x32xf32>
    %458 = vector.extract_strided_slice %438 {offsets = [1, 0], sizes = [1, 32], strides = [1, 1]} : vector<2x32xf32> to vector<1x32xf32>
    %459 = vector.broadcast %458 : vector<1x32xf32> to vector<32x32xf32>
    %460 = arith.addf %457, %459 : vector<32x32xf32>
    %cst_252 = arith.constant 0.000000e+00 : f32
    %461 = vector.broadcast %cst_252 : f32 to vector<32x32xf32>
    %462 = arith.maximumf %460, %461 : vector<32x32xf32>
    %c32_253 = arith.constant 32 : index
    %c0_254 = arith.constant 0 : index
    %463 = vector.load %arg2[%c32_253, %c0_254] : memref<408x128xf32, #tpu.memory_space<vmem>>, vector<32x32xf32>
    %cst_255 = arith.constant dense<0.000000e+00> : vector<32x32xf32>
    %464 = tpu.matmul %463, %462, %cst_255 {dimension_numbers = #tpu.dot_dimension_numbers<[1], [0], [0], [1], [0, 0, 1, 1], [], []>} : vector<32x32xf32>, vector<32x32xf32>, vector<32x32xf32> -> vector<32x32xf32>
    %c928 = arith.constant 928 : index
    %c0_256 = arith.constant 0 : index
    %465 = vector.load %arg1[%c928, %c0_256] : memref<1216x128xbf16, #tpu.memory_space<vmem>>, vector<32x32xbf16>
    %466 = arith.truncf %464 : vector<32x32xf32> to vector<32x32xbf16>
    %cst_257 = arith.constant dense<0.000000e+00> : vector<32x32xf32>
    %467 = tpu.matmul %466, %465, %cst_257 {dimension_numbers = #tpu.dot_dimension_numbers<[1], [0], [0], [1], [0, 0, 1, 1], [], []>} : vector<32x32xbf16>, vector<32x32xbf16>, vector<32x32xf32> -> vector<32x32xf32>
    %c64_258 = arith.constant 64 : index
    %c0_259 = arith.constant 0 : index
    %468 = vector.load %arg2[%c64_258, %c0_259] : memref<408x128xf32, #tpu.memory_space<vmem>>, vector<32x32xf32>
    %cst_260 = arith.constant dense<0.000000e+00> : vector<32x32xf32>
    %469 = tpu.matmul %468, %462, %cst_260 {dimension_numbers = #tpu.dot_dimension_numbers<[1], [0], [0], [1], [0, 0, 1, 1], [], []>} : vector<32x32xf32>, vector<32x32xf32>, vector<32x32xf32> -> vector<32x32xf32>
    %c960 = arith.constant 960 : index
    %c0_261 = arith.constant 0 : index
    %470 = vector.load %arg1[%c960, %c0_261] : memref<1216x128xbf16, #tpu.memory_space<vmem>>, vector<32x32xbf16>
    %471 = arith.truncf %469 : vector<32x32xf32> to vector<32x32xbf16>
    %cst_262 = arith.constant dense<0.000000e+00> : vector<32x32xf32>
    %472 = tpu.matmul %471, %470, %cst_262 {dimension_numbers = #tpu.dot_dimension_numbers<[1], [0], [0], [1], [0, 0, 1, 1], [], []>} : vector<32x32xbf16>, vector<32x32xbf16>, vector<32x32xf32> -> vector<32x32xf32>
    %473 = arith.addf %467, %472 : vector<32x32xf32>
    %c992 = arith.constant 992 : index
    %c0_263 = arith.constant 0 : index
    %474 = vector.load %arg1[%c992, %c0_263] : memref<1216x128xbf16, #tpu.memory_space<vmem>>, vector<32x32xbf16>
    %475 = arith.truncf %462 : vector<32x32xf32> to vector<32x32xbf16>
    %cst_264 = arith.constant dense<0.000000e+00> : vector<32x32xf32>
    %476 = tpu.matmul %475, %474, %cst_264 {dimension_numbers = #tpu.dot_dimension_numbers<[1], [0], [0], [1], [0, 0, 1, 1], [], []>} : vector<32x32xbf16>, vector<32x32xbf16>, vector<32x32xf32> -> vector<32x32xf32>
    %477 = arith.addf %473, %476 : vector<32x32xf32>
    %c96_265 = arith.constant 96 : index
    %c0_266 = arith.constant 0 : index
    %478 = vector.load %arg2[%c96_265, %c0_266] : memref<408x128xf32, #tpu.memory_space<vmem>>, vector<32x32xf32>
    %cst_267 = arith.constant dense<0.000000e+00> : vector<32x32xf32>
    %479 = tpu.matmul %478, %462, %cst_267 {dimension_numbers = #tpu.dot_dimension_numbers<[1], [0], [0], [1], [0, 0, 1, 1], [], []>} : vector<32x32xf32>, vector<32x32xf32>, vector<32x32xf32> -> vector<32x32xf32>
    %c1024 = arith.constant 1024 : index
    %c0_268 = arith.constant 0 : index
    %480 = vector.load %arg1[%c1024, %c0_268] : memref<1216x128xbf16, #tpu.memory_space<vmem>>, vector<32x32xbf16>
    %481 = arith.truncf %479 : vector<32x32xf32> to vector<32x32xbf16>
    %cst_269 = arith.constant dense<0.000000e+00> : vector<32x32xf32>
    %482 = tpu.matmul %481, %480, %cst_269 {dimension_numbers = #tpu.dot_dimension_numbers<[1], [0], [0], [1], [0, 0, 1, 1], [], []>} : vector<32x32xbf16>, vector<32x32xbf16>, vector<32x32xf32> -> vector<32x32xf32>
    %483 = arith.addf %477, %482 : vector<32x32xf32>
    %c128_270 = arith.constant 128 : index
    %c0_271 = arith.constant 0 : index
    %484 = vector.load %arg2[%c128_270, %c0_271] : memref<408x128xf32, #tpu.memory_space<vmem>>, vector<32x32xf32>
    %cst_272 = arith.constant dense<0.000000e+00> : vector<32x32xf32>
    %485 = tpu.matmul %484, %462, %cst_272 {dimension_numbers = #tpu.dot_dimension_numbers<[1], [0], [0], [1], [0, 0, 1, 1], [], []>} : vector<32x32xf32>, vector<32x32xf32>, vector<32x32xf32> -> vector<32x32xf32>
    %c1056 = arith.constant 1056 : index
    %c0_273 = arith.constant 0 : index
    %486 = vector.load %arg1[%c1056, %c0_273] : memref<1216x128xbf16, #tpu.memory_space<vmem>>, vector<32x32xbf16>
    %487 = arith.truncf %485 : vector<32x32xf32> to vector<32x32xbf16>
    %cst_274 = arith.constant dense<0.000000e+00> : vector<32x32xf32>
    %488 = tpu.matmul %487, %486, %cst_274 {dimension_numbers = #tpu.dot_dimension_numbers<[1], [0], [0], [1], [0, 0, 1, 1], [], []>} : vector<32x32xbf16>, vector<32x32xbf16>, vector<32x32xf32> -> vector<32x32xf32>
    %489 = arith.addf %483, %488 : vector<32x32xf32>
    %c312 = arith.constant 312 : index
    %c0_275 = arith.constant 0 : index
    %490 = vector.load %arg2[%c312, %c0_275] : memref<408x128xf32, #tpu.memory_space<vmem>>, vector<1x32xf32>
    %491 = vector.broadcast %490 : vector<1x32xf32> to vector<32x32xf32>
    %492 = arith.addf %489, %491 : vector<32x32xf32>
    %c384_276 = arith.constant 384 : index
    %c0_277 = arith.constant 0 : index
    %493 = vector.load %arg2[%c384_276, %c0_277] : memref<408x128xf32, #tpu.memory_space<vmem>>, vector<2x32xf32>
    %cst_278 = arith.constant dense<0.000000e+00> : vector<8x32xf32>
    %494 = tpu.matmul %1, %492, %cst_278 {dimension_numbers = #tpu.dot_dimension_numbers<[1], [0], [0], [1], [0, 0, 1, 1], [], []>} : vector<8x32xf32>, vector<32x32xf32>, vector<8x32xf32> -> vector<8x32xf32>
    %495 = vector.extract_strided_slice %494 {offsets = [0, 0], sizes = [1, 32], strides = [1, 1]} : vector<8x32xf32> to vector<1x32xf32>
    %496 = arith.mulf %492, %492 : vector<32x32xf32>
    %cst_279 = arith.constant dense<0.000000e+00> : vector<8x32xf32>
    %497 = tpu.matmul %1, %496, %cst_279 {dimension_numbers = #tpu.dot_dimension_numbers<[1], [0], [0], [1], [0, 0, 1, 1], [], []>} : vector<8x32xf32>, vector<32x32xf32>, vector<8x32xf32> -> vector<8x32xf32>
    %498 = vector.extract_strided_slice %497 {offsets = [0, 0], sizes = [1, 32], strides = [1, 1]} : vector<8x32xf32> to vector<1x32xf32>
    %499 = arith.mulf %495, %495 : vector<1x32xf32>
    %500 = arith.subf %498, %499 : vector<1x32xf32>
    %cst_280 = arith.constant 0.000000e+00 : f32
    %501 = vector.broadcast %cst_280 : f32 to vector<1x32xf32>
    %502 = arith.maximumf %500, %501 : vector<1x32xf32>
    %503 = vector.broadcast %495 : vector<1x32xf32> to vector<32x32xf32>
    %504 = arith.subf %492, %503 : vector<32x32xf32>
    %cst_281 = arith.constant 9.99999974E-6 : f32
    %505 = vector.broadcast %cst_281 : f32 to vector<1x32xf32>
    %506 = arith.addf %502, %505 : vector<1x32xf32>
    %507 = math.rsqrt %506 : vector<1x32xf32>
    %508 = vector.broadcast %507 : vector<1x32xf32> to vector<32x32xf32>
    %509 = arith.mulf %504, %508 : vector<32x32xf32>
    %510 = vector.extract_strided_slice %493 {offsets = [0, 0], sizes = [1, 32], strides = [1, 1]} : vector<2x32xf32> to vector<1x32xf32>
    %511 = vector.broadcast %510 : vector<1x32xf32> to vector<32x32xf32>
    %512 = arith.mulf %509, %511 : vector<32x32xf32>
    %513 = vector.extract_strided_slice %493 {offsets = [1, 0], sizes = [1, 32], strides = [1, 1]} : vector<2x32xf32> to vector<1x32xf32>
    %514 = vector.broadcast %513 : vector<1x32xf32> to vector<32x32xf32>
    %515 = arith.addf %512, %514 : vector<32x32xf32>
    %cst_282 = arith.constant 0.000000e+00 : f32
    %516 = vector.broadcast %cst_282 : f32 to vector<32x32xf32>
    %517 = arith.maximumf %515, %516 : vector<32x32xf32>
    %c64_283 = arith.constant 64 : index
    %c0_284 = arith.constant 0 : index
    %518 = vector.load %arg2[%c64_283, %c0_284] : memref<408x128xf32, #tpu.memory_space<vmem>>, vector<32x32xf32>
    %cst_285 = arith.constant dense<0.000000e+00> : vector<32x32xf32>
    %519 = tpu.matmul %518, %517, %cst_285 {dimension_numbers = #tpu.dot_dimension_numbers<[1], [0], [0], [1], [0, 0, 1, 1], [], []>} : vector<32x32xf32>, vector<32x32xf32>, vector<32x32xf32> -> vector<32x32xf32>
    %c1088 = arith.constant 1088 : index
    %c0_286 = arith.constant 0 : index
    %520 = vector.load %arg1[%c1088, %c0_286] : memref<1216x128xbf16, #tpu.memory_space<vmem>>, vector<32x32xbf16>
    %521 = arith.truncf %519 : vector<32x32xf32> to vector<32x32xbf16>
    %cst_287 = arith.constant dense<0.000000e+00> : vector<32x32xf32>
    %522 = tpu.matmul %521, %520, %cst_287 {dimension_numbers = #tpu.dot_dimension_numbers<[1], [0], [0], [1], [0, 0, 1, 1], [], []>} : vector<32x32xbf16>, vector<32x32xbf16>, vector<32x32xf32> -> vector<32x32xf32>
    %c1120 = arith.constant 1120 : index
    %c0_288 = arith.constant 0 : index
    %523 = vector.load %arg1[%c1120, %c0_288] : memref<1216x128xbf16, #tpu.memory_space<vmem>>, vector<32x32xbf16>
    %524 = arith.truncf %517 : vector<32x32xf32> to vector<32x32xbf16>
    %cst_289 = arith.constant dense<0.000000e+00> : vector<32x32xf32>
    %525 = tpu.matmul %524, %523, %cst_289 {dimension_numbers = #tpu.dot_dimension_numbers<[1], [0], [0], [1], [0, 0, 1, 1], [], []>} : vector<32x32xbf16>, vector<32x32xbf16>, vector<32x32xf32> -> vector<32x32xf32>
    %526 = arith.addf %522, %525 : vector<32x32xf32>
    %c96_290 = arith.constant 96 : index
    %c0_291 = arith.constant 0 : index
    %527 = vector.load %arg2[%c96_290, %c0_291] : memref<408x128xf32, #tpu.memory_space<vmem>>, vector<32x32xf32>
    %cst_292 = arith.constant dense<0.000000e+00> : vector<32x32xf32>
    %528 = tpu.matmul %527, %517, %cst_292 {dimension_numbers = #tpu.dot_dimension_numbers<[1], [0], [0], [1], [0, 0, 1, 1], [], []>} : vector<32x32xf32>, vector<32x32xf32>, vector<32x32xf32> -> vector<32x32xf32>
    %c1152 = arith.constant 1152 : index
    %c0_293 = arith.constant 0 : index
    %529 = vector.load %arg1[%c1152, %c0_293] : memref<1216x128xbf16, #tpu.memory_space<vmem>>, vector<32x32xbf16>
    %530 = arith.truncf %528 : vector<32x32xf32> to vector<32x32xbf16>
    %cst_294 = arith.constant dense<0.000000e+00> : vector<32x32xf32>
    %531 = tpu.matmul %530, %529, %cst_294 {dimension_numbers = #tpu.dot_dimension_numbers<[1], [0], [0], [1], [0, 0, 1, 1], [], []>} : vector<32x32xbf16>, vector<32x32xbf16>, vector<32x32xf32> -> vector<32x32xf32>
    %532 = arith.addf %526, %531 : vector<32x32xf32>
    %c320_295 = arith.constant 320 : index
    %c0_296 = arith.constant 0 : index
    %533 = vector.load %arg2[%c320_295, %c0_296] : memref<408x128xf32, #tpu.memory_space<vmem>>, vector<1x32xf32>
    %534 = vector.broadcast %533 : vector<1x32xf32> to vector<32x32xf32>
    %535 = arith.addf %532, %534 : vector<32x32xf32>
    %cst_297 = arith.constant dense<0.000000e+00> : vector<8x32xf32>
    %536 = tpu.matmul %1, %389, %cst_297 {dimension_numbers = #tpu.dot_dimension_numbers<[1], [0], [0], [1], [0, 0, 1, 1], [], []>} : vector<8x32xf32>, vector<32x32xf32>, vector<8x32xf32> -> vector<8x32xf32>
    %537 = vector.extract_strided_slice %536 {offsets = [0, 0], sizes = [1, 32], strides = [1, 1]} : vector<8x32xf32> to vector<1x32xf32>
    %538 = arith.mulf %389, %389 : vector<32x32xf32>
    %cst_298 = arith.constant dense<0.000000e+00> : vector<8x32xf32>
    %539 = tpu.matmul %1, %538, %cst_298 {dimension_numbers = #tpu.dot_dimension_numbers<[1], [0], [0], [1], [0, 0, 1, 1], [], []>} : vector<8x32xf32>, vector<32x32xf32>, vector<8x32xf32> -> vector<8x32xf32>
    %540 = vector.extract_strided_slice %539 {offsets = [0, 0], sizes = [1, 32], strides = [1, 1]} : vector<8x32xf32> to vector<1x32xf32>
    %541 = arith.mulf %537, %537 : vector<1x32xf32>
    %542 = arith.subf %540, %541 : vector<1x32xf32>
    %cst_299 = arith.constant 0.000000e+00 : f32
    %543 = vector.broadcast %cst_299 : f32 to vector<1x32xf32>
    %544 = arith.maximumf %542, %543 : vector<1x32xf32>
    %545 = vector.broadcast %537 : vector<1x32xf32> to vector<32x32xf32>
    %546 = arith.subf %389, %545 : vector<32x32xf32>
    %cst_300 = arith.constant 9.99999974E-6 : f32
    %547 = vector.broadcast %cst_300 : f32 to vector<1x32xf32>
    %548 = arith.addf %544, %547 : vector<1x32xf32>
    %549 = math.rsqrt %548 : vector<1x32xf32>
    %550 = vector.broadcast %549 : vector<1x32xf32> to vector<32x32xf32>
    %551 = arith.mulf %546, %550 : vector<32x32xf32>
    %c392 = arith.constant 392 : index
    %c0_301 = arith.constant 0 : index
    %552 = vector.load %arg2[%c392, %c0_301] : memref<408x128xf32, #tpu.memory_space<vmem>>, vector<2x32xf32>
    %cst_302 = arith.constant dense<0.000000e+00> : vector<8x32xf32>
    %553 = tpu.matmul %1, %535, %cst_302 {dimension_numbers = #tpu.dot_dimension_numbers<[1], [0], [0], [1], [0, 0, 1, 1], [], []>} : vector<8x32xf32>, vector<32x32xf32>, vector<8x32xf32> -> vector<8x32xf32>
    %554 = vector.extract_strided_slice %553 {offsets = [0, 0], sizes = [1, 32], strides = [1, 1]} : vector<8x32xf32> to vector<1x32xf32>
    %555 = arith.mulf %535, %535 : vector<32x32xf32>
    %cst_303 = arith.constant dense<0.000000e+00> : vector<8x32xf32>
    %556 = tpu.matmul %1, %555, %cst_303 {dimension_numbers = #tpu.dot_dimension_numbers<[1], [0], [0], [1], [0, 0, 1, 1], [], []>} : vector<8x32xf32>, vector<32x32xf32>, vector<8x32xf32> -> vector<8x32xf32>
    %557 = vector.extract_strided_slice %556 {offsets = [0, 0], sizes = [1, 32], strides = [1, 1]} : vector<8x32xf32> to vector<1x32xf32>
    %558 = arith.mulf %554, %554 : vector<1x32xf32>
    %559 = arith.subf %557, %558 : vector<1x32xf32>
    %cst_304 = arith.constant 0.000000e+00 : f32
    %560 = vector.broadcast %cst_304 : f32 to vector<1x32xf32>
    %561 = arith.maximumf %559, %560 : vector<1x32xf32>
    %562 = vector.broadcast %554 : vector<1x32xf32> to vector<32x32xf32>
    %563 = arith.subf %535, %562 : vector<32x32xf32>
    %cst_305 = arith.constant 9.99999974E-6 : f32
    %564 = vector.broadcast %cst_305 : f32 to vector<1x32xf32>
    %565 = arith.addf %561, %564 : vector<1x32xf32>
    %566 = math.rsqrt %565 : vector<1x32xf32>
    %567 = vector.broadcast %566 : vector<1x32xf32> to vector<32x32xf32>
    %568 = arith.mulf %563, %567 : vector<32x32xf32>
    %569 = vector.extract_strided_slice %552 {offsets = [0, 0], sizes = [1, 32], strides = [1, 1]} : vector<2x32xf32> to vector<1x32xf32>
    %570 = vector.broadcast %569 : vector<1x32xf32> to vector<32x32xf32>
    %571 = arith.mulf %568, %570 : vector<32x32xf32>
    %572 = vector.extract_strided_slice %552 {offsets = [1, 0], sizes = [1, 32], strides = [1, 1]} : vector<2x32xf32> to vector<1x32xf32>
    %573 = vector.broadcast %572 : vector<1x32xf32> to vector<32x32xf32>
    %574 = arith.addf %571, %573 : vector<32x32xf32>
    %575 = arith.addf %574, %551 : vector<32x32xf32>
    %cst_306 = arith.constant 0.000000e+00 : f32
    %576 = vector.broadcast %cst_306 : f32 to vector<32x32xf32>
    %577 = arith.maximumf %575, %576 : vector<32x32xf32>
    %c232 = arith.constant 232 : index
    %c0_307 = arith.constant 0 : index
    %578 = vector.load %arg2[%c232, %c0_307] : memref<408x128xf32, #tpu.memory_space<vmem>>, vector<2x32xf32>
    %cst_308 = arith.constant dense<0.000000e+00> : vector<2x32xf32>
    %579 = tpu.matmul %578, %577, %cst_308 {dimension_numbers = #tpu.dot_dimension_numbers<[1], [0], [0], [1], [0, 0, 1, 1], [], []>} : vector<2x32xf32>, vector<32x32xf32>, vector<2x32xf32> -> vector<2x32xf32>
    %c1184 = arith.constant 1184 : index
    %c0_309 = arith.constant 0 : index
    %580 = vector.load %arg1[%c1184, %c0_309] : memref<1216x128xbf16, #tpu.memory_space<vmem>>, vector<32x1xbf16>
    %581 = arith.truncf %579 : vector<2x32xf32> to vector<2x32xbf16>
    %cst_310 = arith.constant dense<0.000000e+00> : vector<2x1xf32>
    %582 = tpu.matmul %581, %580, %cst_310 {dimension_numbers = #tpu.dot_dimension_numbers<[1], [0], [0], [1], [0, 0, 1, 1], [], []>} : vector<2x32xbf16>, vector<32x1xbf16>, vector<2x1xf32> -> vector<2x1xf32>
    %c400_311 = arith.constant 400 : index
    %c0_312 = arith.constant 0 : index
    %583 = vector.load %arg2[%c400_311, %c0_312] : memref<408x128xf32, #tpu.memory_space<vmem>>, vector<1x1xf32>
    %584 = vector.broadcast %583 : vector<1x1xf32> to vector<2x1xf32>
    %585 = arith.addf %582, %584 : vector<2x1xf32>
    %cst_313 = arith.constant 0.000000e+00 : f32
    %586 = vector.broadcast %cst_313 : f32 to vector<2x1xf32>
    %587 = arith.subf %586, %585 : vector<2x1xf32>
    %588 = math.exp %587 : vector<2x1xf32>
    %cst_314 = arith.constant 1.000000e+00 : f32
    %589 = vector.broadcast %cst_314 : f32 to vector<2x1xf32>
    %590 = arith.addf %589, %588 : vector<2x1xf32>
    %cst_315 = arith.constant 1.000000e+00 : f32
    %591 = vector.broadcast %cst_315 : f32 to vector<2x1xf32>
    %592 = arith.divf %591, %590 : vector<2x1xf32>
    %c0_316 = arith.constant 0 : index
    %c0_317 = arith.constant 0 : index
    %593 = vector.load %arg3[%c0_316, %c0_317] : memref<2x1xf32, #tpu.memory_space<vmem>>, vector<2x1xf32>
    tpu.vector_store %arg3[%c0_316, %c0_317], %592 {strides = array<i32>} : memref<2x1xf32, #tpu.memory_space<vmem>>, vector<2x1xf32>,
    return
  }
}

</mosaic_0001>

<bundles_post_ra>
// kernel: _lambda_.1
= control target key start
LH: loop header
LB: loop body
LE: loop exit
PB: predicated region body
PF: predicated region fallthrough
CT: control target
= control target key end

     0   :  { %8 = vsyncpa [#allocation3], 0  ;;  %s13476_s0 = inlined_call_operand.vmem [shape: f32[32,4], index: 0, kind: input, shape index: {}]   ;;  %s13477_s1 = inlined_call_operand.hbm [shape: bf16[1216,128], index: 1, kind: input, shape index: {}]   ;;  %s13478_s2 = inlined_call_operand.hbm [shape: f32[408,128], index: 2, kind: input, shape index: {}]   ;;  %s13479_s3 = inlined_call_operand.vmem [shape: f32[2,1], index: 3, kind: output, shape index: {}]  }
   0x1   :  { %9 = vsyncpa [#allocation5], 0  ;;  %s12406_s12 = smov [#allocation2]   ;;  %s12358_s16 = scalar_lea.hbm %s13477_s1, 9728 }
   0x2   :  { %s17_s13 = sshll.u32 %s12406_s12, 4  ;;  %p12359_p0 = scmp.ne.s32.totalorder %s13477_s1, %s12358_s16  ;;  %s18_s13 = int_to_ptr.vmem [resolvable:$true] %s17_s13 }
   0x3   :  { %p12362_p1 = scmp.lt.u32.totalorder %s12358_s16, %s13477_s1 }
   0x5   :  { %p12364_p2 = pnand %p12362_p1, %p12359_p0 }
   0x7   :  { %12367 = shalt.err (!%p12364_p2)
}
   0x8   :  { %s12368_s21 = scalar_lea.vmem %s18_s13, 9728  ;;  %p12373_p4 = scmp.lt.s32.totalorder %s18_s13, %s18_s13 }
   0x9   :  { %p12369_p3 = scmp.ne.s32.totalorder %s18_s13, %s12368_s21  ;;  %p12374_p5 = scmp.lt.s32.totalorder %s12368_s21, %s12368_s21 }
   0xb   :  { %p12375_p6 = por %p12374_p5, %p12373_p4 }
   0xd   :  { %p12376_p7 = pnand %p12375_p6, %p12369_p3 }
   0xf   :  { %12379 = shalt.err (!%p12376_p7)
}
  0x10   :  { %s12407_s22 = smov 64   ;;  %s12408_s23 = smov 4  }
  0x11   :  { %23 = dma.hbm_to_vmem [thread:$0]  %s13477_s1, 9728, %s18_s13, [#allocation3], %s12407_s22, %s12407_s22, %s12408_s23  }
  0x12   :  { %s12409_s26 = smov [#allocation4]   ;;  %s12380_s30 = scalar_lea.hbm %s13478_s2, 6528 }
  0x13   :  { %s29_s27 = sshll.u32 %s12409_s26, 4  ;;  %p12381_p8 = scmp.ne.s32.totalorder %s13478_s2, %s12380_s30  ;;  %s30_s27 = int_to_ptr.vmem [resolvable:$true] %s29_s27 }
  0x14   :  { %p12384_p9 = scmp.lt.u32.totalorder %s12380_s30, %s13478_s2 }
  0x16   :  { %p12386_p10 = pnand %p12384_p9, %p12381_p8 }
  0x18   :  { %12389 = shalt.err (!%p12386_p10)
}
  0x19   :  { %s12390_s8 = scalar_lea.vmem %s30_s27, 6528  ;;  %p12395_p12 = scmp.lt.s32.totalorder %s30_s27, %s30_s27 }
  0x1a   :  { %p12391_p11 = scmp.ne.s32.totalorder %s30_s27, %s12390_s8  ;;  %p12396_p13 = scmp.lt.s32.totalorder %s12390_s8, %s12390_s8 }
  0x1c   :  { %p12397_p0 = por %p12396_p13, %p12395_p12 }
  0x1e   :  { %p12398_p1 = pnand %p12397_p0, %p12391_p11 }
  0x20   :  { %12401 = shalt.err (!%p12398_p1)
}
  0x21   :  { %s12410_s1 = smov 128   ;;  %s12411_s9 = smov 8  }
  0x22   :  { %35 = dma.hbm_to_vmem [thread:$0]  %s13478_s2, 6528, %s30_s27, [#allocation5], %s12410_s1, %s12410_s1, %s12411_s9  }
  0x23   :  { %12402 = dma.done.wait [#allocation3], 9728  }
  0x24   :  { %12403 = vsyncadd [#allocation3], 4294957568 }
  0x25   :  { %12404 = dma.done.wait [#allocation5], 6528  }
  0x26   :  { %12405 = vsyncadd [#allocation5], 4294960768  ;;  %vm52_vm0 = vcmask 261120   ;;  %v43_v0 = vld [vmem:[%s13476_s0] sm:$0xff]  ;;  %v44_v1 = vld [vmem:[%s13476_s0 + $0x8] sm:$0xff]  ;;  %vm264_vm1 = vcmask 1041408  }
  0x27   :  { %v45_v2 = vld [vmem:[%s13476_s0 + $0x10] sm:$0xff]  ;;  %v12468_v3 = vpack.c.bf16 %v44_v1, %v43_v0  ;;  %v46_v4 = vld [vmem:[%s13476_s0 + $0x18] sm:$0xff]  ;;  %v12473_v5 = vld [vmem:[#allocation4 + $0x20] sm:$0xff]  ;;  %vm257_vm2 = vcmask 31744   ;;  %vm12413_vm3 = vmmov 0   ;;  %vm1652_vm4 = vcmask 130048  }
  0x28   :  { %v12475_v6 = vpack.c.bf16 %v46_v4, %v45_v2  ;;  %10414 = vmatprep.mubr.msk.f32.mxu1 %vm52_vm0, %v12473_v5  ;;  %v48_v7 = vld [vmem:[#allocation4] sm:$0xff]  ;;  %v12487_v8 = vld [vmem:[#allocation4 + $0x28] sm:$0xff]  ;;  %v12490_v10 = vld [vmem:[#allocation4 + $0x30] sm:$0xff]  ;;  %vm9409_vm5 = vcmask 1024  }
  0x29   :  { %11578 = vmatprep.subr.bf16.mxu1 %v12468_v3  ;;  %11570 = vmatprep.subr.bf16.mxu0 %v12468_v3  ;;  %v49_v9 = vld [vmem:[#allocation4 + $0x8] sm:$0xff]  ;;  %v50_v11 = vld [vmem:[#allocation4 + $0x10] sm:$0xff]  ;;  %v12493_v12 = vld [vmem:[#allocation4 + $0x38] sm:$0xff] }
  0x2a   :  { %11580 = vmatpush3.bf16.msra.mxu1 %v12468_v3  ;;  %11572 = vmatpush3.bf16.msra.mxu0 %v12468_v3  ;;  %v51_v13 = vld [vmem:[#allocation4 + $0x18] sm:$0xff]  ;;  %v12498_v14 = vld [vmem:[#allocation4 + $0x40] sm:$0xff]  ;;  %v12508_v15 = vld [vmem:[#allocation4 + $0x48] sm:$0xff] }
  0x2b   :  { %11582 = vmatprep.subr.bf16.mxu1 %v12475_v6  ;;  %11574 = vmatprep.subr.bf16.mxu0 %v12475_v6  ;;  %v12512_v16 = vld [vmem:[#allocation4 + $0x50] sm:$0xff]  ;;  %v12516_v17 = vld [vmem:[#allocation4 + $0x58] sm:$0xff]  ;;  %v12520_v18 = vld [vmem:[#allocation4 + $0x60] sm:$0xff] }
  0x2c   :  { %10400 = vmatprep.mubr.msk.f32.mxu0 %vm52_vm0, %v48_v7  ;;  %v12526_v19 = vld [vmem:[#allocation4 + $0x68] sm:$0xff]  ;;  %v12530_v20 = vld [vmem:[#allocation4 + $0x70] sm:$0xff]  ;;  %v12536_v21 = vld [vmem:[#allocation4 + $0x78] sm:$0xff] }
  0x2d   :  { %v12540_v22 = vld [vmem:[#allocation4 + $0x80] sm:$0xff]  ;;  %v12546_v23 = vld [vmem:[#allocation4 + $0x88] sm:$0xff]  ;;  %v12550_v24 = vld [vmem:[#allocation4 + $0x90] sm:$0xff] }
  0x2e   :  { %11584 = vmatpush3.bf16.msra.mxu1 %v12475_v6  ;;  %11576 = vmatpush3.bf16.msra.mxu0 %v12475_v6  ;;  %v12556_v25 = vld [vmem:[#allocation4 + $0x98] sm:$0xff]  ;;  %v938_v26 = vld [vmem:[#allocation4 + $0xa0] sm:$0xff]  ;;  %v939_v27 = vld [vmem:[#allocation4 + $0xa8] sm:$0xff] }
  0x2f   :  { %11586 = vmatprep.subr.bf16.mxu1 %v12468_v3  ;;  %v940_v28 = vld [vmem:[#allocation4 + $0xb0] sm:$0xff]  ;;  %v941_v29 = vld [vmem:[#allocation4 + $0xb8] sm:$0xff]  ;;  %v1104_v30 = vld [vmem:[#allocation4 + $0xc0] sm:$0xff] }
  0x30   :  { %v1105_v31 = vld [vmem:[#allocation4 + $0xc8] sm:$0xff]  ;;  %v1106_v32 = vld [vmem:[#allocation4 + $0xd0] sm:$0xff]  ;;  %v1107_v33 = vld [vmem:[#allocation4 + $0xd8] sm:$0xff] }
  0x31   :  { %10415 = vmatmul.mubr.msk.f32.vlgmr.msra.gmra.mrb[0].mxu1 %vm52_vm0, %v12487_v8  ;;  %10401 = vmatmul.mubr.msk.f32.vlgmr.msra.gmra.mrb[0].mxu0 %vm52_vm0, %v49_v9  ;;  %v254_v34 = vld [vmem:[#allocation2 + $0x8] sm:$0x3]  ;;  %v150_v36 = vld [vmem:[#allocation2] sm:$0x3]  ;;  %v476_v50 = vld [vmem:[#allocation2 + $0x10] sm:$0x3] }
  0x32   :  { %10417 = vmatprep.mubr.msk.f32.mxu1 %vm52_vm0, %v12490_v10  ;;  %10403 = vmatprep.mubr.msk.f32.mxu0 %vm52_vm0, %v50_v11  ;;  %v266_v35 = vsel %vm264_vm1, %v254_v34, 0  ;;  %v324_v48 = vsel %vm264_vm1, %v150_v36, 0  ;;  %v486_v58 = vsel %vm264_vm1, %v476_v50, 0  ;;  %v541_v60 = vld [vmem:[#allocation2 + $0x18] sm:$0x3] }
  0x33   :  { %11588 = vmatpush3.bf16.msra.mxu1 %v12468_v3  ;;  %12187 = vmatprep.subr.msk.bf16.mxu0 %vm264_vm1, %v254_v34  ;;  %v551_v9 = vsel %vm264_vm1, %v541_v60, 0 }
  0x34   :  { %11590 = vmatprep.subr.bf16.mxu1 %v12475_v6  ;;  %10421 = vmatpush3.bf16.msra.mxu0 %v266_v35 }
  0x35   :  { %10418 = vmatmul.mubr.msk.f32.gmra.mrb[2].mxu1 %vm52_vm0, %v12493_v12  ;;  %10404 = vmatmul.mubr.msk.f32.gmra.mrb[2].mxu0 %vm52_vm0, %v51_v13  ;;  %v707_v13 = vld [vmem:[#allocation2 + $0x20] sm:$0x3] }
  0x36   :  { %10440 = vmatprep.mubr.msk.f32.mxu1 %vm52_vm0, %v12498_v14  ;;  %12188 = vmatprep.subr.msk.bf16.mxu0 %vm264_vm1, %v150_v36  ;;  %v717_v34 = vsel %vm264_vm1, %v707_v13, 0  ;;  %v873_v36 = vld [vmem:[#allocation2 + $0x28] sm:$0x3] }
  0x37   :  { %11592 = vmatpush3.bf16.msra.mxu1 %v12475_v6 }
  0x38   :  { %11594 = vmatprep.subr.bf16.mxu1 %v12468_v3 }
  0x3a   :  { %10441 = vmatmul.mubr.msk.f32.vlgmr.msra.gmra.mrb[4].mxu1 %vm52_vm0, %v12508_v15 }
  0x3b   :  { %10443 = vmatprep.mubr.msk.f32.mxu1 %vm52_vm0, %v12512_v16  ;;  %11596 = vmatpush3.bf16.msra.mxu1 %v12468_v3 }
  0x3c   :  { %11598 = vmatprep.subr.bf16.mxu1 %v12475_v6 }
  0x3e   :  { %10444 = vmatmul.mubr.msk.f32.gmra.mrb[6].mxu1 %vm52_vm0, %v12516_v17 }
  0x3f   :  { %11600 = vmatpush3.bf16.msra.mxu1 %v12475_v6  ;;  %10466 = vmatprep.mubr.msk.f32.mxu1 %vm52_vm0, %v12520_v18 }
  0x40   :  { %11602 = vmatprep.subr.bf16.mxu1 %v12468_v3 }
  0x42   :  { %10467 = vmatmul.mubr.msk.f32.vlgmr.msra.gmra.mrb[8].mxu1 %vm52_vm0, %v12526_v19 }
  0x43   :  { %10469 = vmatprep.mubr.msk.f32.mxu1 %vm52_vm0, %v12530_v20  ;;  %11604 = vmatpush3.bf16.msra.mxu1 %v12468_v3 }
  0x44   :  { %11606 = vmatprep.subr.bf16.mxu1 %v12475_v6 }
  0x46   :  { %10470 = vmatmul.mubr.msk.f32.gmra.mrb[10].mxu1 %vm52_vm0, %v12536_v21 }
  0x47   :  { %11608 = vmatpush3.bf16.msra.mxu1 %v12475_v6  ;;  %10486 = vmatprep.mubr.msk.f32.mxu1 %vm52_vm0, %v12540_v22 }
  0x48   :  { %11610 = vmatprep.subr.bf16.mxu1 %v12468_v3 }
  0x4a   :  { %10487 = vmatmul.mubr.msk.f32.vlgmr.msra.gmra.mrb[12].mxu1 %vm52_vm0, %v12546_v23 }
  0x4b   :  { %10489 = vmatprep.mubr.msk.f32.mxu1 %vm52_vm0, %v12550_v24  ;;  %11612 = vmatpush3.bf16.msra.mxu1 %v12468_v3 }
  0x4c   :  { %11614 = vmatprep.subr.bf16.mxu1 %v12475_v6 }
  0x4e   :  { %10490 = vmatmul.mubr.msk.f32.gmra.mrb[14].mxu1 %vm52_vm0, %v12556_v25 }
  0x4f   :  { %11616 = vmatpush3.bf16.msra.mxu1 %v12475_v6  ;;  %10506 = vmatprep.mubr.msk.f32.mxu1 %vm52_vm0, %v938_v26 }
  0x50   :  { %11618 = vmatprep.subr.bf16.mxu1 %v12468_v3 }
  0x52   :  { %10507 = vmatmul.mubr.msk.f32.vlgmr.msra.gmra.mrb[16].mxu1 %vm52_vm0, %v939_v27 }
  0x53   :  { %10509 = vmatprep.mubr.msk.f32.mxu1 %vm52_vm0, %v940_v28  ;;  %11620 = vmatpush3.bf16.msra.mxu1 %v12468_v3 }
  0x54   :  { %11622 = vmatprep.subr.bf16.mxu1 %v12475_v6 }
  0x56   :  { %10510 = vmatmul.mubr.msk.f32.gmra.mrb[18].mxu1 %vm52_vm0, %v941_v29 }
  0x57   :  { %11624 = vmatpush3.bf16.msra.mxu1 %v12475_v6  ;;  %10526 = vmatprep.mubr.msk.f32.mxu1 %vm52_vm0, %v1104_v30 }
  0x5a   :  { %10527 = vmatmul.mubr.msk.f32.vlgmr.msra.gmra.mrb[20].mxu1 %vm52_vm0, %v1105_v31 }
  0x5b   :  { %10529 = vmatprep.mubr.msk.f32.mxu1 %vm52_vm0, %v1106_v32 }
  0x5e   :  { %10530 = vmatmul.mubr.msk.f32.gmra.mrb[22].mxu1 %vm52_vm0, %v1107_v33 }
 0x104   :  { %v10416_v37 = vpop.f32.mrb[0].mxu1  ;;  %v10402_v38 = vpop.f32.mrb[0].mxu0 }
 0x105   :  { %v235_v39 = vpop.f32.mrb[1].mxu1  ;;  %v131_v40 = vpop.f32.mrb[1].mxu0 }
 0x106   :  { %v255_v41 = vpack.c.bf16 %v10416_v37, %v235_v39  ;;  %v151_v42 = vpack.c.bf16 %v10402_v38, %v131_v40 }
 0x108   :  { %v10419_v43 = vpop.f32.mrb[2].mxu1  ;;  %10422 = vmatprep.mubr.msk.bf16.mxu0 %vm257_vm2, %v255_v41  ;;  %v10405_v44 = vpop.f32.mrb[2].mxu0  ;;  %v883_v41 = vsel %vm264_vm1, %v873_v36, 0 }
 0x109   :  { %v245_v45 = vpop.f32.mrb[3].mxu1  ;;  %v141_v46 = vpop.f32.mrb[3].mxu0 }
 0x10a   :  { %v256_v47 = vpack.c.bf16 %v10419_v43, %v245_v45  ;;  %v152_v49 = vpack.c.bf16 %v10405_v44, %v141_v46  ;;  %v1205_v44 = vld [vmem:[#allocation2 + $0x38] sm:$0x3]  ;;  %v12412_v46 = vmov 0.0|0.0  }
 0x10b   :  { %v1215_v45 = vsel %vm264_vm1, %v1205_v44, 0  ;;  %11625 = vmatprep.subr.bf16.mxu1 %v12412_v46 }
 0x10c   :  { %10423 = vmatmul.mubr.msk.bf16.vlgmr.msra.gmra.mrb[4].mxu0 %vm257_vm2, %v256_v47  ;;  %v12414_v47 = vmov 0.0  }
 0x10d   :  { %10427 = vmatpush3.bf16.msra.mxu0 %v324_v48  ;;  %10428 = vmatprep.mubr.msk.bf16.mxu0 %vm257_vm2, %v151_v42  ;;  %v10442_v51 = vpop.f32.mrb[4].mxu1  ;;  %v1039_v42 = vld [vmem:[#allocation2 + $0x30] sm:$0x3] }
 0x10e   :  { %12189 = vmatprep.subr.msk.bf16.mxu0 %vm264_vm1, %v476_v50  ;;  %v457_v52 = vpop.f32.mrb[5].mxu1  ;;  %v1049_v43 = vsel %vm264_vm1, %v1039_v42, 0  ;;  %10546 = vmatprep.mubr.msk.f32.mxu1 %vm12413_vm3, %v12414_v47 }
 0x10f   :  { %v477_v53 = vpack.c.bf16 %v10442_v51, %v457_v52 }
 0x111   :  { %v10445_v54 = vpop.f32.mrb[6].mxu1 }
 0x112   :  { %v467_v55 = vpop.f32.mrb[7].mxu1 }
 0x113   :  { %v478_v56 = vpack.c.bf16 %v10445_v54, %v467_v55 }
 0x115   :  { %v10468_v57 = vpop.f32.mrb[8].mxu1 }
 0x116   :  { %v688_v59 = vpop.f32.mrb[9].mxu1 }
 0x117   :  { %v708_v61 = vpack.c.bf16 %v10468_v57, %v688_v59 }
 0x118   :  { %10429 = vmatmul.mubr.msk.bf16.vlgmr.msra.gmra.mrb[4].mxu0 %vm257_vm2, %v152_v49  ;;  %v9461_v49 = vld [vmem:[#allocation4 + $0xf0] ss:$0 sm:$0xff] }
 0x119   :  { %10447 = vmatpush3.bf16.msra.mxu0 %v486_v58  ;;  %10448 = vmatprep.mubr.msk.bf16.mxu0 %vm257_vm2, %v477_v53  ;;  %v10471_v62 = vpop.f32.mrb[10].mxu1 }
 0x11a   :  { %12190 = vmatprep.subr.msk.bf16.mxu0 %vm264_vm1, %v541_v60  ;;  %v698_v63 = vpop.f32.mrb[11].mxu1 }
 0x11b   :  { %v709_v0 = vpack.c.bf16 %v10471_v62, %v698_v63 }
 0x11d   :  { %v10488_v1 = vpop.f32.mrb[12].mxu1 }
 0x11e   :  { %v854_v2 = vpop.f32.mrb[13].mxu1 }
 0x11f   :  { %v874_v4 = vpack.c.bf16 %v10488_v1, %v854_v2 }
 0x121   :  { %v10491_v7 = vpop.f32.mrb[14].mxu1 }
 0x122   :  { %v864_v11 = vpop.f32.mrb[15].mxu1 }
 0x123   :  { %v875_v26 = vpack.c.bf16 %v10491_v7, %v864_v11  ;;  %v1430_v11 = vlaneseq }
 0x124   :  { %10449 = vmatmul.mubr.msk.bf16.vlgmr.msra.gmra.mrb[4].mxu0 %vm257_vm2, %v478_v56 }
 0x125   :  { %10453 = vmatpush3.bf16.msra.mxu0 %v551_v9  ;;  %10454 = vmatprep.mubr.msk.bf16.mxu0 %vm257_vm2, %v12468_v3  ;;  %v10508_v27 = vpop.f32.mrb[16].mxu1 }
 0x126   :  { %12191 = vmatprep.subr.msk.bf16.mxu0 %vm264_vm1, %v707_v13  ;;  %v1020_v28 = vpop.f32.mrb[17].mxu1 }
 0x127   :  { %v1040_v29 = vpack.c.bf16 %v10508_v27, %v1020_v28  ;;  %v1431_v28 = vshrl.u32 %v1430_v11, 7 }
 0x129   :  { %v10511_v30 = vpop.f32.mrb[18].mxu1 }
 0x12a   :  { %v1030_v31 = vpop.f32.mrb[19].mxu1 }
 0x12b   :  { %v1041_v32 = vpack.c.bf16 %v10511_v30, %v1030_v31  ;;  %v12631_v30 = vsub.s32 0, %v1431_v28 }
 0x12d   :  { %v10528_v33 = vpop.f32.mrb[20].mxu1 }
 0x12e   :  { %v1186_v35 = vpop.f32.mrb[21].mxu1 }
 0x12f   :  { %v1206_v37 = vpack.c.bf16 %v10528_v33, %v1186_v35  ;;  %v12634_v33 = vsub.s32 1, %v1431_v28 }
 0x130   :  { %10455 = vmatmul.mubr.msk.bf16.vlgmr.msra.gmra.mrb[4].mxu0 %vm257_vm2, %v12475_v6 }
 0x131   :  { %10473 = vmatpush3.bf16.msra.mxu0 %v717_v34  ;;  %10474 = vmatprep.mubr.msk.bf16.mxu0 %vm257_vm2, %v708_v61  ;;  %v10531_v38 = vpop.f32.mrb[22].mxu1  ;;  %v12619_v61 = vld [vmem:[#allocation4 + $0xe0] sm:$0xff] }
 0x132   :  { %12192 = vmatprep.subr.msk.bf16.mxu0 %vm264_vm1, %v873_v36  ;;  %v1196_v39 = vpop.f32.mrb[23].mxu1 }
 0x133   :  { %v1207_v40 = vpack.c.bf16 %v10531_v38, %v1196_v39 }
 0x13c   :  { %10475 = vmatmul.mubr.msk.bf16.vlgmr.msra.gmra.mrb[4].mxu0 %vm257_vm2, %v709_v0 }
 0x13d   :  { %10493 = vmatpush3.bf16.msra.mxu0 %v883_v41  ;;  %10494 = vmatprep.mubr.msk.bf16.mxu0 %vm257_vm2, %v874_v4 }
 0x13e   :  { %12193 = vmatprep.subr.msk.bf16.mxu0 %vm264_vm1, %v1039_v42 }
 0x148   :  { %10495 = vmatmul.mubr.msk.bf16.vlgmr.msra.gmra.mrb[4].mxu0 %vm257_vm2, %v875_v26 }
 0x149   :  { %10513 = vmatpush3.bf16.msra.mxu0 %v1049_v43  ;;  %10514 = vmatprep.mubr.msk.bf16.mxu0 %vm257_vm2, %v1040_v29 }
 0x14a   :  { %12194 = vmatprep.subr.msk.bf16.mxu0 %vm264_vm1, %v1205_v44 }
 0x154   :  { %10515 = vmatmul.mubr.msk.bf16.vlgmr.msra.gmra.mrb[4].mxu0 %vm257_vm2, %v1041_v32  ;;  %v1279_v32 = vld [vmem:[#allocation4 + $0x148] sm:$0x3] }
 0x155   :  { %10533 = vmatpush3.bf16.msra.mxu0 %v1215_v45  ;;  %10534 = vmatprep.mubr.msk.bf16.mxu0 %vm257_vm2, %v1206_v37  ;;  %v1451_v35 = vrot.slane %v1279_v32, %v12631_v30 }
 0x160   :  { %10535 = vmatmul.mubr.msk.bf16.vlgmr.msra.gmra.mrb[4].mxu0 %vm257_vm2, %v1207_v40  ;;  %v1459_v40 = vrot.slane %v1279_v32, %v12634_v33 }
 0x161   :  { %10582 = vmatprep.mubr.msk.f32.mxu0 %vm52_vm0, %v12498_v14 }
 0x233   :  { %v10536_v48 = vpop.f32.mrb[4].mxu0 }
 0x234   :  { %v1251_v50 = vpop.f32.mrb[5].mxu0  ;;  %v1277_v57 = vadd.f32 %v10536_v48, %v9461_v49 }
 0x235   :  { %v10537_v51 = vpop.f32.mrb[6].mxu0  ;;  %v1275_v53 = vadd.f32 %v9461_v49, %v1251_v50 }
 0x236   :  { %v1254_v52 = vpop.f32.mrb[7].mxu0  ;;  %v1278_v55 = vadd.f32 %v10537_v51, %v9461_v49  ;;  %v1355_v0 = vmul.f32 %v1277_v57, %v1277_v57 }
 0x237   :  { %v1276_v54 = vadd.f32 %v9461_v49, %v1254_v52  ;;  %v1353_v60 = vmul.f32 %v1275_v53, %v1275_v53 }
 0x238   :  { %v11629_v58 = vpack.c.bf16 %v1278_v55, %v1277_v57  ;;  %v1356_v62 = vmul.f32 %v1278_v55, %v1278_v55 }
 0x239   :  { %v11626_v56 = vpack.c.bf16 %v1276_v54, %v1275_v53  ;;  %v1354_v59 = vmul.f32 %v1276_v54, %v1276_v54 }
 0x23a   :  { %v11635_v1 = vpack.c.bf16 %v1356_v62, %v1355_v0 }
 0x23b   :  { %11627 = vmatpush3.bf16.msra.mxu1 %v11626_v56  ;;  %v11632_v63 = vpack.c.bf16 %v1354_v59, %v1353_v60 }
 0x23c   :  { %11628 = vmatprep.subr.bf16.mxu1 %v12412_v46 }
 0x23f   :  { %11630 = vmatpush3.bf16.msra.mxu1 %v11629_v58 }
 0x240   :  { %11631 = vmatprep.subr.bf16.mxu1 %v12412_v46 }
 0x242   :  { %10547 = vmatmul.mubr.msk.f32.vlgmr.msra.gmra.mrb[24].mxu1 %vm52_vm0, %v12619_v61 }
 0x243   :  { %11633 = vmatpush3.bf16.msra.mxu1 %v11632_v63  ;;  %10557 = vmatprep.mubr.msk.f32.mxu1 %vm12413_vm3, %v12414_v47 }
 0x244   :  { %11634 = vmatprep.subr.bf16.mxu1 %v12412_v46 }
 0x247   :  { %11636 = vmatpush3.bf16.msra.mxu1 %v11635_v1 }
 0x24a   :  { %10558 = vmatmul.mubr.msk.f32.vlgmr.msra.gmra.mrb[26].mxu1 %vm52_vm0, %v12619_v61 }
 0x24b   :  { %10568 = vmatprep.mubr.msk.f32.mxu1 %vm52_vm0, %v12473_v5 }
 0x315   :  { %v1349_v2 = vpop.f32.mrb[24].mxu1 }
 0x316   :  { %v10548_v4 = vpop.f32.mrb[25].mxu1  ;;  %v1427_v7 = vmul.f32 %v1349_v2, %v1349_v2  ;;  %v1433_v31 = vrot.slane %v1349_v2, %v12631_v30 }
 0x318   :  { %v1434_v5 = vsub.f32 %v1275_v53, %v1433_v31  ;;  %v1435_v36 = vsub.f32 %v1276_v54, %v1433_v31  ;;  %v1436_v37 = vsub.f32 %v1277_v57, %v1433_v31  ;;  %v1437_v38 = vsub.f32 %v1278_v55, %v1433_v31 }
 0x31d   :  { %v1423_v9 = vpop.f32.mrb[26].mxu1 }
 0x31e   :  { %v1428_v13 = vsub.f32 %v1423_v9, %v1427_v7  ;;  %v10559_v26 = vpop.f32.mrb[27].mxu1  ;;  %v12207_v9 = vld [vmem:[#allocation2 + $0x50] sm:$0xff]  }
 0x320   :  { %v1429_v27 = vmax.f32 %v1428_v13, 0.0 }
 0x322   :  { %v1438_v29 = vadd.f32 1e-05, %v1429_v27 }
 0x324   :  { %12272 = vrsqrt.f32 %v1438_v29 }
 0x32e   :  { %v12273_v34 = vpop.eup %12272 }
 0x32f   :  { %v1443_v39 = vrot.slane %v12273_v34, %v12631_v30  ;;  %v12208_v34 = vld [vmem:[#allocation2 + $0x58] sm:$0xff]  }
 0x331   :  { %v1444_v41 = vmul.f32 %v1443_v39, %v1434_v5  ;;  %v1445_v42 = vmul.f32 %v1443_v39, %v1435_v36  ;;  %v1446_v43 = vmul.f32 %v1443_v39, %v1436_v37  ;;  %v1447_v44 = vmul.f32 %v1443_v39, %v1437_v38  ;;  %v12209_v38 = vld [vmem:[#allocation2 + $0x60] sm:$0xff]   ;;  %v9495_v39 = vld [vmem:[#allocation4 + $0xf8] ss:$0 sm:$0xff] }
 0x333   :  { %v1452_v45 = vmul.f32 %v1451_v35, %v1444_v41  ;;  %v1453_v48 = vmul.f32 %v1451_v35, %v1445_v42  ;;  %v1454_v49 = vmul.f32 %v1451_v35, %v1446_v43  ;;  %v1455_v50 = vmul.f32 %v1451_v35, %v1447_v44 }
 0x335   :  { %v1460_v51 = vadd.f32 %v1459_v40, %v1452_v45  ;;  %v1461_v52 = vadd.f32 %v1459_v40, %v1453_v48  ;;  %v1462_v53 = vadd.f32 %v1459_v40, %v1454_v49  ;;  %v1463_v56 = vadd.f32 %v1459_v40, %v1455_v50 }
 0x337   :  { %v1464_v58 = vmax.f32 %v1460_v51, 0.0  ;;  %v1465_v54 = vmax.f32 %v1461_v52, 0.0  ;;  %v1466_v57 = vmax.f32 %v1462_v53, 0.0  ;;  %v1467_v55 = vmax.f32 %v1463_v56, 0.0 }
 0x339   :  { %v12639_v59 = vpack.c.bf16 %v1465_v54, %v1464_v58  ;;  %v12641_v60 = vpack.c.bf16 %v1467_v55, %v1466_v57  ;;  %v12210_v55 = vld [vmem:[#allocation2 + $0x70] sm:$0xff]  }
 0x33b   :  { %11638 = vmatprep.subr.bf16.mxu1 %v12639_v59  ;;  %11646 = vmatprep.subr.bf16.mxu0 %v12639_v59 }
 0x33c   :  { %11640 = vmatpush3.bf16.msra.mxu1 %v12639_v59  ;;  %11648 = vmatpush3.bf16.msra.mxu0 %v12639_v59 }
 0x33d   :  { %11642 = vmatprep.subr.bf16.mxu1 %v12641_v60  ;;  %11650 = vmatprep.subr.bf16.mxu0 %v12641_v60 }
 0x340   :  { %11644 = vmatpush3.bf16.msra.mxu1 %v12641_v60  ;;  %11652 = vmatpush3.bf16.msra.mxu0 %v12641_v60 }
 0x341   :  { %11654 = vmatprep.subr.bf16.mxu0 %v12639_v59 }
 0x343   :  { %10583 = vmatmul.mubr.msk.f32.vlgmr.msra.gmra.mrb[8].mxu0 %vm52_vm0, %v12508_v15  ;;  %10569 = vmatmul.mubr.msk.f32.vlgmr.msra.gmra.mrb[28].mxu1 %vm52_vm0, %v12487_v8  ;;  %v12205_v8 = vld [vmem:[#allocation2 + $0x48] sm:$0xff]  }
 0x344   :  { %11656 = vmatpush3.bf16.msra.mxu0 %v12639_v59  ;;  %10585 = vmatprep.mubr.msk.f32.mxu0 %vm52_vm0, %v12512_v16 }
 0x345   :  { %11658 = vmatprep.subr.bf16.mxu0 %v12641_v60  ;;  %10571 = vmatprep.mubr.msk.f32.mxu1 %vm52_vm0, %v12490_v10  ;;  %v12206_v10 = vld [vmem:[#allocation2 + $0x40] sm:$0xff]  }
 0x346   :  { %10588 = vmatprep.subr.bf16.mxu1 %v12205_v8 }
 0x347   :  { %10586 = vmatmul.mubr.msk.f32.gmra.mrb[10].mxu0 %vm52_vm0, %v12516_v17  ;;  %10572 = vmatmul.mubr.msk.f32.gmra.mrb[30].mxu1 %vm52_vm0, %v12493_v12 }
 0x348   :  { %11660 = vmatpush3.bf16.msra.mxu0 %v12641_v60  ;;  %10614 = vmatprep.mubr.msk.f32.mxu0 %vm52_vm0, %v12520_v18 }
 0x349   :  { %11662 = vmatprep.subr.bf16.mxu0 %v12639_v59  ;;  %10589 = vmatpush3.bf16.msra.mxu1 %v12205_v8 }
 0x34a   :  { %10594 = vmatprep.subr.bf16.mxu1 %v12206_v10 }
 0x34b   :  { %10615 = vmatmul.mubr.msk.f32.vlgmr.msra.gmra.mrb[12].mxu0 %vm52_vm0, %v12526_v19 }
 0x34c   :  { %11664 = vmatpush3.bf16.msra.mxu0 %v12639_v59  ;;  %10617 = vmatprep.mubr.msk.f32.mxu0 %vm52_vm0, %v12530_v20 }
 0x34d   :  { %11666 = vmatprep.subr.bf16.mxu0 %v12641_v60 }
 0x34f   :  { %10618 = vmatmul.mubr.msk.f32.gmra.mrb[14].mxu0 %vm52_vm0, %v12536_v21 }
 0x350   :  { %11668 = vmatpush3.bf16.msra.mxu0 %v12641_v60  ;;  %10634 = vmatprep.mubr.msk.f32.mxu0 %vm52_vm0, %v12540_v22 }
 0x351   :  { %11675 = vmatprep.subr.bf16.mxu0 %v12412_v46 }
 0x353   :  { %10635 = vmatmul.mubr.msk.f32.vlgmr.msra.gmra.mrb[16].mxu0 %vm52_vm0, %v12546_v23 }
 0x354   :  { %10637 = vmatprep.mubr.msk.f32.mxu0 %vm52_vm0, %v12550_v24 }
 0x357   :  { %10638 = vmatmul.mubr.msk.f32.gmra.mrb[18].mxu0 %vm52_vm0, %v12556_v25 }
 0x358   :  { %10665 = vmatprep.mubr.msk.f32.mxu0 %vm12413_vm3, %v12414_v47 }
 0x416   :  { %v10584_v12 = vpop.f32.mrb[8].mxu0  ;;  %v10570_v22 = vpop.f32.mrb[28].mxu1 }
 0x417   :  { %v1623_v62 = vpop.f32.mrb[9].mxu0  ;;  %v1534_v63 = vpop.f32.mrb[29].mxu1 }
 0x418   :  { %v1644_v23 = vpack.c.bf16 %v10584_v12, %v1623_v62  ;;  %v1555_v0 = vpack.c.bf16 %v10570_v22, %v1534_v63 }
 0x41a   :  { %v10587_v1 = vpop.f32.mrb[10].mxu0  ;;  %10590 = vmatprep.mubr.msk.bf16.mxu1 %vm1652_vm4, %v1644_v23  ;;  %v10573_v24 = vpop.f32.mrb[30].mxu1 }
 0x41b   :  { %v1633_v25 = vpop.f32.mrb[11].mxu0  ;;  %v1544_v2 = vpop.f32.mrb[31].mxu1 }
 0x41c   :  { %v1645_v4 = vpack.c.bf16 %v10587_v1, %v1633_v25  ;;  %v1556_v7 = vpack.c.bf16 %v10573_v24, %v1544_v2  ;;  %v2155_v1 = vld [vmem:[#allocation4 + $0x150] sm:$0x3] }
 0x41e   :  { %10591 = vmatmul.mubr.msk.bf16.vlgmr.msra.gmra.mrb[32].mxu1 %vm1652_vm4, %v1645_v4  ;;  %v10616_v11 = vpop.f32.mrb[12].mxu0 }
 0x41f   :  { %10595 = vmatpush3.bf16.msra.mxu1 %v12206_v10  ;;  %10596 = vmatprep.mubr.msk.bf16.mxu1 %vm1652_vm4, %v1555_v0  ;;  %v1904_v13 = vpop.f32.mrb[13].mxu0 }
 0x420   :  { %10600 = vmatprep.subr.bf16.mxu1 %v12207_v9  ;;  %v1925_v26 = vpack.c.bf16 %v10616_v11, %v1904_v13  ;;  %v2332_v11 = vrot.slane %v2155_v1, %v12634_v33 }
 0x422   :  { %v10619_v27 = vpop.f32.mrb[14].mxu0 }
 0x423   :  { %v1914_v28 = vpop.f32.mrb[15].mxu0 }
 0x424   :  { %v1926_v29 = vpack.c.bf16 %v10619_v27, %v1914_v28 }
 0x426   :  { %v10636_v31 = vpop.f32.mrb[16].mxu0 }
 0x427   :  { %v2058_v32 = vpop.f32.mrb[17].mxu0 }
 0x428   :  { %v2079_v5 = vpack.c.bf16 %v10636_v31, %v2058_v32 }
 0x42a   :  { %10597 = vmatmul.mubr.msk.bf16.vlgmr.msra.gmra.mrb[32].mxu1 %vm1652_vm4, %v1556_v7  ;;  %v10639_v35 = vpop.f32.mrb[18].mxu0 }
 0x42b   :  { %10601 = vmatpush3.bf16.msra.mxu1 %v12207_v9  ;;  %10602 = vmatprep.mubr.msk.bf16.mxu1 %vm1652_vm4, %v12639_v59  ;;  %v2068_v36 = vpop.f32.mrb[19].mxu0  ;;  %v12211_v59 = vld [vmem:[#allocation2 + $0x68] sm:$0xff]  }
 0x42c   :  { %10620 = vmatprep.subr.bf16.mxu1 %v12208_v34  ;;  %v2080_v37 = vpack.c.bf16 %v10639_v35, %v2068_v36 }
 0x436   :  { %10603 = vmatmul.mubr.msk.bf16.vlgmr.msra.gmra.mrb[32].mxu1 %vm1652_vm4, %v12641_v60 }
 0x437   :  { %10621 = vmatpush3.bf16.msra.mxu1 %v12208_v34  ;;  %10622 = vmatprep.mubr.msk.bf16.mxu1 %vm1652_vm4, %v1925_v26 }
 0x438   :  { %10640 = vmatprep.subr.bf16.mxu1 %v12209_v38 }
 0x442   :  { %10623 = vmatmul.mubr.msk.bf16.vlgmr.msra.gmra.mrb[32].mxu1 %vm1652_vm4, %v1926_v29 }
 0x443   :  { %10641 = vmatpush3.bf16.msra.mxu1 %v12209_v38  ;;  %10642 = vmatprep.mubr.msk.bf16.mxu1 %vm1652_vm4, %v2079_v5 }
 0x444   :  { %11669 = vmatprep.subr.bf16.mxu1 %v12412_v46 }
 0x44e   :  { %10643 = vmatmul.mubr.msk.bf16.vlgmr.msra.gmra.mrb[32].mxu1 %vm1652_vm4, %v2080_v37 }
 0x44f   :  { %10654 = vmatprep.mubr.msk.f32.mxu1 %vm12413_vm3, %v12414_v47 }
 0x521   :  { %v10644_v40 = vpop.f32.mrb[32].mxu1 }
 0x522   :  { %v2127_v41 = vpop.f32.mrb[33].mxu1  ;;  %v2153_v49 = vadd.f32 %v10644_v40, %v9495_v39 }
 0x523   :  { %v2151_v42 = vadd.f32 %v9495_v39, %v2127_v41  ;;  %v10645_v43 = vpop.f32.mrb[34].mxu1 }
 0x524   :  { %v2130_v44 = vpop.f32.mrb[35].mxu1  ;;  %v2154_v45 = vadd.f32 %v10645_v43, %v9495_v39  ;;  %v2228_v58 = vmul.f32 %v2153_v49, %v2153_v49 }
 0x525   :  { %v2152_v48 = vadd.f32 %v9495_v39, %v2130_v44  ;;  %v2226_v50 = vmul.f32 %v2151_v42, %v2151_v42  ;;  %v2719_v44 = vld [vmem:[#allocation2 + $0x80] sm:$0x3] }
 0x526   :  { %v2229_v53 = vmul.f32 %v2154_v45, %v2154_v45  ;;  %v11673_v54 = vpack.c.bf16 %v2154_v45, %v2153_v49 }
 0x527   :  { %v11670_v51 = vpack.c.bf16 %v2152_v48, %v2151_v42  ;;  %v2227_v52 = vmul.f32 %v2152_v48, %v2152_v48 }
 0x528   :  { %v11679_v57 = vpack.c.bf16 %v2229_v53, %v2228_v58 }
 0x529   :  { %v11676_v56 = vpack.c.bf16 %v2227_v52, %v2226_v50  ;;  %11671 = vmatpush3.bf16.msra.mxu1 %v11670_v51  ;;  %v9516_v52 = vld [vmem:[#allocation4 + $0x108] ss:$0 sm:$0xff] }
 0x52a   :  { %11672 = vmatprep.subr.bf16.mxu1 %v12412_v46 }
 0x52b   :  { %11677 = vmatpush3.bf16.msra.mxu0 %v11676_v56 }
 0x52c   :  { %11678 = vmatprep.subr.bf16.mxu0 %v12412_v46 }
 0x52d   :  { %11674 = vmatpush3.bf16.msra.mxu1 %v11673_v54 }
 0x52e   :  { %10682 = vmatprep.subr.bf16.mxu1 %v12210_v55 }
 0x52f   :  { %11680 = vmatpush3.bf16.msra.mxu0 %v11679_v57 }
 0x530   :  { %10655 = vmatmul.mubr.msk.f32.vlgmr.msra.gmra.mrb[36].mxu1 %vm52_vm0, %v12619_v61 }
 0x531   :  { %10683 = vmatpush3.bf16.msra.mxu1 %v12210_v55 }
 0x532   :  { %10666 = vmatmul.mubr.msk.f32.vlgmr.msra.gmra.mrb[20].mxu0 %vm52_vm0, %v12619_v61  ;;  %10688 = vmatprep.subr.bf16.mxu1 %v12211_v59 }
 0x533   :  { %10676 = vmatprep.mubr.msk.f32.mxu0 %vm52_vm0, %v12498_v14  ;;  %v2324_v14 = vrot.slane %v2155_v1, %v12631_v30  ;;  %v9515_v1 = vld [vmem:[#allocation4 + $0x100] ss:$0 sm:$0xff] }
 0x603   :  { %v2222_v60 = vpop.f32.mrb[36].mxu1 }
 0x604   :  { %v2300_v8 = vmul.f32 %v2222_v60, %v2222_v60  ;;  %v10656_v10 = vpop.f32.mrb[37].mxu1  ;;  %v2306_v0 = vrot.slane %v2222_v60, %v12631_v30 }
 0x605   :  { %v2296_v12 = vpop.f32.mrb[20].mxu0 }
 0x606   :  { %v10667_v22 = vpop.f32.mrb[21].mxu0  ;;  %v2301_v62 = vsub.f32 %v2296_v12, %v2300_v8  ;;  %v2307_v25 = vsub.f32 %v2151_v42, %v2306_v0  ;;  %v2308_v2 = vsub.f32 %v2152_v48, %v2306_v0  ;;  %v2309_v4 = vsub.f32 %v2153_v49, %v2306_v0 }
 0x607   :  { %v2310_v7 = vsub.f32 %v2154_v45, %v2306_v0  ;;  %v2726_v45 = vsel %vm264_vm1, %v2719_v44, 0 }
 0x608   :  { %v2302_v63 = vmax.f32 %v2301_v62, 0.0 }
 0x60a   :  { %v2311_v23 = vadd.f32 1e-05, %v2302_v63 }
 0x60c   :  { %12274 = vrsqrt.f32 %v2311_v23 }
 0x616   :  { %v12275_v24 = vpop.eup %12274 }
 0x617   :  { %v2316_v9 = vrot.slane %v12275_v24, %v12631_v30 }
 0x619   :  { %v2317_v13 = vmul.f32 %v2316_v9, %v2307_v25  ;;  %v2318_v26 = vmul.f32 %v2316_v9, %v2308_v2  ;;  %v2319_v27 = vmul.f32 %v2316_v9, %v2309_v4  ;;  %v2320_v28 = vmul.f32 %v2316_v9, %v2310_v7 }
 0x61b   :  { %v2325_v29 = vmul.f32 %v2324_v14, %v2317_v13  ;;  %v2326_v31 = vmul.f32 %v2324_v14, %v2318_v26  ;;  %v2327_v32 = vmul.f32 %v2324_v14, %v2319_v27  ;;  %v2328_v34 = vmul.f32 %v2324_v14, %v2320_v28 }
 0x61d   :  { %v2333_v5 = vadd.f32 %v2332_v11, %v2325_v29  ;;  %v2334_v35 = vadd.f32 %v2332_v11, %v2326_v31  ;;  %v2335_v36 = vadd.f32 %v2332_v11, %v2327_v32  ;;  %v2336_v37 = vadd.f32 %v2332_v11, %v2328_v34 }
 0x61f   :  { %v2337_v38 = vmax.f32 %v2333_v5, 0.0  ;;  %v2338_v39 = vmax.f32 %v2334_v35, 0.0  ;;  %v2339_v40 = vmax.f32 %v2335_v36, 0.0  ;;  %v2340_v41 = vmax.f32 %v2336_v37, 0.0 }
 0x621   :  { %v11681_v42 = vpack.c.bf16 %v2338_v39, %v2337_v38  ;;  %v11685_v43 = vpack.c.bf16 %v2340_v41, %v2339_v40  ;;  %v12300_v40 = vld [vmem:[#allocation4] sm:$0xff] }
 0x623   :  { %11682 = vmatprep.subr.bf16.mxu0 %v11681_v42  ;;  %10684 = vmatprep.mubr.msk.bf16.mxu1 %vm1652_vm4, %v11681_v42 }
 0x624   :  { %11684 = vmatpush3.bf16.msra.mxu0 %v11681_v42  ;;  %10685 = vmatmul.mubr.msk.bf16.vlgmr.msra.gmra.mrb[40].mxu1 %vm1652_vm4, %v11685_v43 }
 0x625   :  { %11686 = vmatprep.subr.bf16.mxu0 %v11685_v43  ;;  %10689 = vmatpush3.bf16.msra.mxu1 %v12211_v59 }
 0x628   :  { %11688 = vmatpush3.bf16.msra.mxu0 %v11685_v43 }
 0x629   :  { %11690 = vmatprep.subr.bf16.mxu0 %v11681_v42 }
 0x62b   :  { %10677 = vmatmul.mubr.msk.f32.vlgmr.msra.gmra.mrb[22].mxu0 %vm52_vm0, %v12508_v15  ;;  %v12212_v15 = vld [vmem:[#allocation2 + $0x78] sm:$0xff]  }
 0x62c   :  { %11692 = vmatpush3.bf16.msra.mxu0 %v11681_v42  ;;  %10679 = vmatprep.mubr.msk.f32.mxu0 %vm52_vm0, %v12512_v16  ;;  %v12808_v42 = vld [vmem:[#allocation4 + $0x20] sm:$0xff] }
 0x62d   :  { %11694 = vmatprep.subr.bf16.mxu0 %v11685_v43  ;;  %10708 = vmatprep.subr.bf16.mxu1 %v12212_v15 }
 0x62f   :  { %10680 = vmatmul.mubr.msk.f32.gmra.mrb[24].mxu0 %vm52_vm0, %v12516_v17 }
 0x630   :  { %11696 = vmatpush3.bf16.msra.mxu0 %v11685_v43  ;;  %10702 = vmatprep.mubr.msk.f32.mxu0 %vm52_vm0, %v12520_v18 }
 0x631   :  { %12195 = vmatprep.subr.msk.bf16.mxu0 %vm264_vm1, %v2719_v44 }
 0x633   :  { %10703 = vmatmul.mubr.msk.f32.vlgmr.msra.gmra.mrb[26].mxu0 %vm52_vm0, %v12526_v19 }
 0x634   :  { %10705 = vmatprep.mubr.msk.f32.mxu0 %vm52_vm0, %v12530_v20  ;;  %10715 = vmatpush3.bf16.msra.mxu0 %v2726_v45 }
 0x635   :  { %11697 = vmatprep.subr.bf16.mxu0 %v12412_v46 }
 0x637   :  { %10706 = vmatmul.mubr.msk.f32.gmra.mrb[28].mxu0 %vm52_vm0, %v12536_v21 }
 0x638   :  { %10716 = vmatprep.mubr.msk.bf16.mxu0 %vm257_vm2, %v12468_v3 }
 0x63b   :  { %10717 = vmatmul.mubr.msk.bf16.vlgmr.msra.gmra.mrb[32].mxu0 %vm257_vm2, %v12475_v6 }
 0x63c   :  { %10728 = vmatprep.mubr.msk.f32.mxu0 %vm12413_vm3, %v12414_v47 }
 0x6fe   :  { %v10678_v16 = vpop.f32.mrb[22].mxu0 }
 0x6ff   :  { %v2407_v17 = vpop.f32.mrb[23].mxu0 }
 0x700   :  { %v2428_v18 = vpack.c.bf16 %v10678_v16, %v2407_v17 }
 0x702   :  { %v10681_v19 = vpop.f32.mrb[24].mxu0  ;;  %10690 = vmatprep.mubr.msk.bf16.mxu1 %vm1652_vm4, %v2428_v18 }
 0x703   :  { %v2417_v20 = vpop.f32.mrb[25].mxu0 }
 0x704   :  { %v2429_v48 = vpack.c.bf16 %v10681_v19, %v2417_v20 }
 0x706   :  { %10691 = vmatmul.mubr.msk.bf16.vlgmr.msra.gmra.mrb[40].mxu1 %vm1652_vm4, %v2429_v48  ;;  %v10704_v21 = vpop.f32.mrb[26].mxu0 }
 0x707   :  { %10709 = vmatpush3.bf16.msra.mxu1 %v12212_v15  ;;  %v2622_v3 = vpop.f32.mrb[27].mxu0 }
 0x708   :  { %v2643_v49 = vpack.c.bf16 %v10704_v21, %v2622_v3  ;;  %11703 = vmatprep.subr.bf16.mxu1 %v12412_v46 }
 0x70a   :  { %v10707_v6 = vpop.f32.mrb[28].mxu0  ;;  %10710 = vmatprep.mubr.msk.bf16.mxu1 %vm1652_vm4, %v2643_v49 }
 0x70b   :  { %v2632_v50 = vpop.f32.mrb[29].mxu0 }
 0x70c   :  { %v2644_v51 = vpack.c.bf16 %v10707_v6, %v2632_v50 }
 0x70e   :  { %v10718_v53 = vpop.f32.mrb[32].mxu0 }
 0x70f   :  { %v2762_v56 = vpop.f32.mrb[33].mxu0  ;;  %v12746_v58 = vadd.f32 %v10718_v53, %v9516_v52 }
 0x710   :  { %v12748_v54 = vadd.f32 %v9516_v52, %v2762_v56  ;;  %v10719_v57 = vpop.f32.mrb[34].mxu0 }
 0x711   :  { %v12750_v55 = vadd.f32 %v10719_v57, %v9516_v52  ;;  %v2765_v59 = vpop.f32.mrb[35].mxu0  ;;  %v2849_v10 = vmul.f32 %v12746_v58, %v12746_v58 }
 0x712   :  { %v2847_v60 = vmul.f32 %v12748_v54, %v12748_v54  ;;  %v12754_v8 = vadd.f32 %v9516_v52, %v2765_v59  ;;  %10711 = vmatmul.mubr.msk.bf16.vlgmr.msra.gmra.mrb[40].mxu1 %vm1652_vm4, %v2644_v51 }
 0x713   :  { %10739 = vmatprep.mubr.msk.f32.mxu1 %vm12413_vm3, %v12414_v47  ;;  %v2850_v12 = vmul.f32 %v12750_v55, %v12750_v55  ;;  %v11701_v63 = vpack.c.bf16 %v12750_v55, %v12746_v58 }
 0x714   :  { %v11698_v22 = vpack.c.bf16 %v12754_v8, %v12748_v54  ;;  %v2848_v62 = vmul.f32 %v12754_v8, %v12754_v8 }
 0x715   :  { %v11707_v0 = vpack.c.bf16 %v2850_v12, %v2849_v10 }
 0x716   :  { %v11704_v23 = vpack.c.bf16 %v2848_v62, %v2847_v60  ;;  %11699 = vmatpush3.bf16.msra.mxu0 %v11698_v22 }
 0x717   :  { %11700 = vmatprep.subr.bf16.mxu0 %v12412_v46 }
 0x718   :  { %11705 = vmatpush3.bf16.msra.mxu1 %v11704_v23 }
 0x719   :  { %11706 = vmatprep.subr.bf16.mxu1 %v12412_v46 }
 0x71a   :  { %11702 = vmatpush3.bf16.msra.mxu0 %v11701_v63 }
 0x71b   :  { %11709 = vmatprep.subr.bf16.mxu0 %v12412_v46 }
 0x71c   :  { %11708 = vmatpush3.bf16.msra.mxu1 %v11707_v0 }
 0x71d   :  { %10729 = vmatmul.mubr.msk.f32.vlgmr.msra.gmra.mrb[30].mxu0 %vm52_vm0, %v12619_v61  ;;  %11715 = vmatprep.subr.bf16.mxu1 %v12412_v46 }
 0x71e   :  { %10750 = vmatprep.mubr.msk.f32.mxu0 %vm12413_vm3, %v12414_v47 }
 0x71f   :  { %10740 = vmatmul.mubr.msk.f32.vlgmr.msra.gmra.mrb[38].mxu1 %vm52_vm0, %v12619_v61 }
 0x720   :  { %10761 = vmatprep.mubr.msk.f32.mxu1 %vm12413_vm3, %v12414_v47 }
 0x7e5   :  { %v10712_v24 = vpop.f32.mrb[40].mxu1 }
 0x7e6   :  { %v2691_v25 = vpop.f32.mrb[41].mxu1  ;;  %v12787_v11 = vadd.f32 %v10712_v24, %v9515_v1 }
 0x7e7   :  { %v12781_v14 = vadd.f32 %v9515_v1, %v2691_v25  ;;  %v10713_v2 = vpop.f32.mrb[42].mxu1 }
 0x7e8   :  { %v2694_v4 = vpop.f32.mrb[43].mxu1  ;;  %v12783_v7 = vadd.f32 %v10713_v2, %v9515_v1  ;;  %v3015_v31 = vmul.f32 %v12787_v11, %v12787_v11 }
 0x7e9   :  { %v12785_v9 = vadd.f32 %v9515_v1, %v2694_v4  ;;  %v3013_v13 = vmul.f32 %v12781_v14, %v12781_v14 }
 0x7ea   :  { %v3016_v28 = vmul.f32 %v12783_v7, %v12783_v7  ;;  %v11713_v32 = vpack.c.bf16 %v12783_v7, %v12787_v11 }
 0x7eb   :  { %v11710_v26 = vpack.c.bf16 %v12785_v9, %v12781_v14  ;;  %v3014_v27 = vmul.f32 %v12785_v9, %v12785_v9 }
 0x7ec   :  { %v11719_v5 = vpack.c.bf16 %v3016_v28, %v3015_v31 }
 0x7ed   :  { %v11716_v29 = vpack.c.bf16 %v3014_v27, %v3013_v13  ;;  %11711 = vmatpush3.bf16.msra.mxu0 %v11710_v26 }
 0x7ee   :  { %11712 = vmatprep.subr.bf16.mxu0 %v12412_v46 }
 0x7ef   :  { %11717 = vmatpush3.bf16.msra.mxu1 %v11716_v29 }
 0x7f0   :  { %v2843_v34 = vpop.f32.mrb[30].mxu0  ;;  %11718 = vmatprep.subr.bf16.mxu1 %v12412_v46 }
 0x7f1   :  { %v2921_v35 = vmul.f32 %v2843_v34, %v2843_v34  ;;  %11714 = vmatpush3.bf16.msra.mxu0 %v11713_v32  ;;  %v10730_v36 = vpop.f32.mrb[31].mxu0  ;;  %v2927_v44 = vrot.slane %v2843_v34, %v12631_v30 }
 0x7f2   :  { %v2917_v37 = vpop.f32.mrb[38].mxu1  ;;  %v12303_v36 = vld [vmem:[#allocation4 + $0x8] sm:$0xff] }
 0x7f3   :  { %11720 = vmatpush3.bf16.msra.mxu1 %v11719_v5  ;;  %v10741_v38 = vpop.f32.mrb[39].mxu1  ;;  %v2922_v39 = vsub.f32 %v2917_v37, %v2921_v35  ;;  %v2928_v15 = vsub.f32 %v12748_v54, %v2927_v44  ;;  %v2929_v16 = vsub.f32 %v12754_v8, %v2927_v44  ;;  %v2930_v17 = vsub.f32 %v12746_v58, %v2927_v44  ;;  %v2942_v58 = vld [vmem:[#allocation4 + $0x158] sm:$0x3]  ;;  %v12839_v35 = vld [vmem:[#allocation4 + $0x28] sm:$0xff]  ;;  %v12845_v37 = vld [vmem:[#allocation4 + $0x30] sm:$0xff] }
 0x7f4   :  { %10751 = vmatmul.mubr.msk.f32.vlgmr.msra.gmra.mrb[36].mxu0 %vm52_vm0, %v12619_v61  ;;  %v2931_v18 = vsub.f32 %v12750_v55, %v2927_v44  ;;  %v3111_v59 = vrot.slane %v2942_v58, %v12631_v30  ;;  %v3119_v22 = vrot.slane %v2942_v58, %v12634_v33  ;;  %v12305_v38 = vld [vmem:[#allocation4 + $0x10] sm:$0xff] }
 0x7f5   :  { %10772 = vmatprep.mubr.msk.f32.mxu0 %vm52_vm0, %v12300_v40  ;;  %v2923_v41 = vmax.f32 %v2922_v39, 0.0  ;;  %v12851_v39 = vld [vmem:[#allocation4 + $0x38] sm:$0xff]  ;;  %v12867_v44 = vld [vmem:[#allocation4 + $0x50] sm:$0xff] }
 0x7f6   :  { %10762 = vmatmul.mubr.msk.f32.vlgmr.msra.gmra.mrb[44].mxu1 %vm52_vm0, %v12619_v61  ;;  %v12307_v40 = vld [vmem:[#allocation4 + $0x18] sm:$0xff] }
 0x7f7   :  { %10786 = vmatprep.mubr.msk.f32.mxu1 %vm52_vm0, %v12808_v42  ;;  %v2932_v43 = vadd.f32 1e-05, %v2923_v41  ;;  %v12857_v41 = vld [vmem:[#allocation4 + $0x40] sm:$0xff] }
 0x7f9   :  { %12276 = vrsqrt.f32 %v2932_v43  ;;  %v12862_v43 = vld [vmem:[#allocation4 + $0x48] sm:$0xff] }
 0x803   :  { %v12277_v45 = vpop.eup %12276 }
 0x804   :  { %v2937_v61 = vrot.slane %v12277_v45, %v12631_v30  ;;  %v12872_v45 = vld [vmem:[#allocation4 + $0x58] sm:$0xff] }
 0x806   :  { %v2938_v19 = vmul.f32 %v2937_v61, %v2928_v15  ;;  %v2939_v20 = vmul.f32 %v2937_v61, %v2929_v16  ;;  %v2940_v48 = vmul.f32 %v2937_v61, %v2930_v17  ;;  %v2941_v21 = vmul.f32 %v2937_v61, %v2931_v18  ;;  %v12877_v15 = vld [vmem:[#allocation4 + $0x60] sm:$0xff]  ;;  %v12882_v16 = vld [vmem:[#allocation4 + $0x68] sm:$0xff]  ;;  %v12887_v17 = vld [vmem:[#allocation4 + $0x70] sm:$0xff] }
 0x807   :  { %v12892_v18 = vld [vmem:[#allocation4 + $0x78] sm:$0xff]  ;;  %v12897_v61 = vld [vmem:[#allocation4 + $0x80] sm:$0xff] }
 0x8c7   :  { %v3009_v3 = vpop.f32.mrb[36].mxu0 }
 0x8c8   :  { %v3087_v49 = vmul.f32 %v3009_v3, %v3009_v3  ;;  %v10752_v6 = vpop.f32.mrb[37].mxu0  ;;  %v3093_v54 = vrot.slane %v3009_v3, %v12631_v30  ;;  %v12321_v3 = vld [vmem:[#allocation4 + $0xa8] sm:$0xff] }
 0x8c9   :  { %v3083_v50 = vpop.f32.mrb[44].mxu1  ;;  %v12323_v6 = vld [vmem:[#allocation4 + $0xb8] sm:$0xff] }
 0x8ca   :  { %v10763_v51 = vpop.f32.mrb[45].mxu1  ;;  %v3088_v52 = vsub.f32 %v3083_v50, %v3087_v49  ;;  %v3094_v55 = vsub.f32 %v12781_v14, %v3093_v54  ;;  %v3095_v60 = vsub.f32 %v12785_v9, %v3093_v54  ;;  %v3096_v8 = vsub.f32 %v12787_v11, %v3093_v54  ;;  %v12322_v49 = vld [vmem:[#allocation4 + $0xb0] sm:$0xff]  ;;  %v12324_v50 = vld [vmem:[#allocation4 + $0xc0] sm:$0xff] }
 0x8cb   :  { %v3097_v10 = vsub.f32 %v12783_v7, %v3093_v54  ;;  %v12325_v51 = vld [vmem:[#allocation4 + $0xc8] sm:$0xff] }
 0x8cc   :  { %v3089_v53 = vmax.f32 %v3088_v52, 0.0  ;;  %v12326_v52 = vld [vmem:[#allocation4 + $0xd0] sm:$0xff]  ;;  %v12214_v54 = vld [vmem:[#allocation2 + $0x88] sm:$0xff]  }
 0x8ce   :  { %v3098_v56 = vadd.f32 1e-05, %v3089_v53  ;;  %v12327_v53 = vld [vmem:[#allocation4 + $0xd8] sm:$0xff] }
 0x8d0   :  { %12278 = vrsqrt.f32 %v3098_v56  ;;  %v12213_v56 = vld [vmem:[#allocation2 + $0x90] sm:$0xff]  }
 0x8da   :  { %v12279_v57 = vpop.eup %12278 }
 0x8db   :  { %v3103_v12 = vrot.slane %v12279_v57, %v12631_v30 }
 0x8dd   :  { %v3104_v62 = vmul.f32 %v3103_v12, %v3094_v55  ;;  %v3105_v63 = vmul.f32 %v3103_v12, %v3095_v60  ;;  %v3106_v23 = vmul.f32 %v3103_v12, %v3096_v8  ;;  %v3107_v0 = vmul.f32 %v3103_v12, %v3097_v10 }
 0x8df   :  { %v3112_v1 = vmul.f32 %v3111_v59, %v3104_v62  ;;  %v3113_v24 = vmul.f32 %v3111_v59, %v3105_v63  ;;  %v3114_v25 = vmul.f32 %v3111_v59, %v3106_v23  ;;  %v3115_v14 = vmul.f32 %v3111_v59, %v3107_v0  ;;  %v12215_v0 = vld [vmem:[#allocation2 + $0x98] sm:$0xff]  }
 0x8e1   :  { %v3120_v2 = vadd.f32 %v3119_v22, %v3112_v1  ;;  %v3121_v4 = vadd.f32 %v3119_v22, %v3113_v24  ;;  %v3122_v13 = vadd.f32 %v3119_v22, %v3114_v25  ;;  %v3123_v9 = vadd.f32 %v3119_v22, %v3115_v14 }
 0x8e3   :  { %v3124_v26 = vadd.f32 %v3120_v2, %v2938_v19  ;;  %v3125_v11 = vadd.f32 %v3121_v4, %v2939_v20  ;;  %v3126_v27 = vadd.f32 %v3122_v13, %v2940_v48  ;;  %v3127_v7 = vadd.f32 %v3123_v9, %v2941_v21  ;;  %v12902_v19 = vld [vmem:[#allocation4 + $0x88] sm:$0xff]  ;;  %v12907_v20 = vld [vmem:[#allocation4 + $0x90] sm:$0xff]  ;;  %v12912_v48 = vld [vmem:[#allocation4 + $0x98] sm:$0xff] }
 0x8e4   :  { %v12320_v21 = vld [vmem:[#allocation4 + $0xa0] sm:$0xff] }
 0x8e5   :  { %v3128_v28 = vmax.f32 %v3124_v26, 0.0  ;;  %v3129_v29 = vmax.f32 %v3125_v11, 0.0  ;;  %v3130_v31 = vmax.f32 %v3126_v27, 0.0  ;;  %v3131_v32 = vmax.f32 %v3127_v7, 0.0  ;;  %v12216_v26 = vld [vmem:[#allocation2 + $0xa0] sm:$0xff]  }
 0x8e7   :  { %v12826_v34 = vpack.c.bf16 %v3129_v29, %v3128_v28  ;;  %v12828_v5 = vpack.c.bf16 %v3131_v32, %v3130_v31 }
 0x8e9   :  { %11722 = vmatprep.subr.bf16.mxu0 %v12826_v34  ;;  %11730 = vmatprep.subr.bf16.mxu1 %v12826_v34 }
 0x8ea   :  { %11724 = vmatpush3.bf16.msra.mxu0 %v12826_v34  ;;  %11732 = vmatpush3.bf16.msra.mxu1 %v12826_v34 }
 0x8eb   :  { %11726 = vmatprep.subr.bf16.mxu0 %v12828_v5  ;;  %11734 = vmatprep.subr.bf16.mxu1 %v12828_v5 }
 0x8ee   :  { %11728 = vmatpush3.bf16.msra.mxu0 %v12828_v5  ;;  %11736 = vmatpush3.bf16.msra.mxu1 %v12828_v5 }
 0x8ef   :  { %11738 = vmatprep.subr.bf16.mxu1 %v12826_v34  ;;  %10792 = vmatprep.subr.bf16.mxu0 %v12213_v56 }
 0x8f1   :  { %10787 = vmatmul.mubr.msk.f32.vlgmr.msra.gmra.mrb[46].mxu1 %vm52_vm0, %v12839_v35  ;;  %10773 = vmatmul.mubr.msk.f32.vlgmr.msra.gmra.mrb[38].mxu0 %vm52_vm0, %v12303_v36 }
 0x8f2   :  { %11740 = vmatpush3.bf16.msra.mxu1 %v12826_v34  ;;  %10789 = vmatprep.mubr.msk.f32.mxu1 %vm52_vm0, %v12845_v37 }
 0x8f3   :  { %11742 = vmatprep.subr.bf16.mxu1 %v12828_v5  ;;  %10775 = vmatprep.mubr.msk.f32.mxu0 %vm52_vm0, %v12305_v38 }
 0x8f4   :  { %10793 = vmatpush3.bf16.msra.mxu0 %v12213_v56 }
 0x8f5   :  { %10790 = vmatmul.mubr.msk.f32.gmra.mrb[48].mxu1 %vm52_vm0, %v12851_v39  ;;  %10776 = vmatmul.mubr.msk.f32.gmra.mrb[40].mxu0 %vm52_vm0, %v12307_v40  ;;  %v12217_v40 = vld [vmem:[#allocation2 + $0xa8] sm:$0xff]  }
 0x8f6   :  { %11744 = vmatpush3.bf16.msra.mxu1 %v12828_v5  ;;  %10812 = vmatprep.mubr.msk.f32.mxu1 %vm52_vm0, %v12857_v41 }
 0x8f7   :  { %11746 = vmatprep.subr.bf16.mxu1 %v12826_v34  ;;  %10798 = vmatprep.subr.bf16.mxu0 %v12214_v54 }
 0x8f9   :  { %10813 = vmatmul.mubr.msk.f32.vlgmr.msra.gmra.mrb[50].mxu1 %vm52_vm0, %v12862_v43 }
 0x8fa   :  { %11748 = vmatpush3.bf16.msra.mxu1 %v12826_v34  ;;  %10815 = vmatprep.mubr.msk.f32.mxu1 %vm52_vm0, %v12867_v44 }
 0x8fb   :  { %11750 = vmatprep.subr.bf16.mxu1 %v12828_v5 }
 0x8fd   :  { %10816 = vmatmul.mubr.msk.f32.gmra.mrb[52].mxu1 %vm52_vm0, %v12872_v45 }
 0x8fe   :  { %11752 = vmatpush3.bf16.msra.mxu1 %v12828_v5  ;;  %10838 = vmatprep.mubr.msk.f32.mxu1 %vm52_vm0, %v12877_v15 }
 0x8ff   :  { %11754 = vmatprep.subr.bf16.mxu1 %v12826_v34 }
 0x901   :  { %10839 = vmatmul.mubr.msk.f32.vlgmr.msra.gmra.mrb[54].mxu1 %vm52_vm0, %v12882_v16 }
 0x902   :  { %11756 = vmatpush3.bf16.msra.mxu1 %v12826_v34  ;;  %10841 = vmatprep.mubr.msk.f32.mxu1 %vm52_vm0, %v12887_v17 }
 0x903   :  { %11758 = vmatprep.subr.bf16.mxu1 %v12828_v5 }
 0x905   :  { %10842 = vmatmul.mubr.msk.f32.gmra.mrb[56].mxu1 %vm52_vm0, %v12892_v18 }
 0x906   :  { %11760 = vmatpush3.bf16.msra.mxu1 %v12828_v5  ;;  %10858 = vmatprep.mubr.msk.f32.mxu1 %vm52_vm0, %v12897_v61 }
 0x907   :  { %11762 = vmatprep.subr.bf16.mxu1 %v12826_v34 }
 0x909   :  { %10859 = vmatmul.mubr.msk.f32.vlgmr.msra.gmra.mrb[58].mxu1 %vm52_vm0, %v12902_v19 }
 0x90a   :  { %11764 = vmatpush3.bf16.msra.mxu1 %v12826_v34  ;;  %10861 = vmatprep.mubr.msk.f32.mxu1 %vm52_vm0, %v12907_v20 }
 0x90b   :  { %11766 = vmatprep.subr.bf16.mxu1 %v12828_v5 }
 0x90d   :  { %10862 = vmatmul.mubr.msk.f32.gmra.mrb[60].mxu1 %vm52_vm0, %v12912_v48 }
 0x90e   :  { %11768 = vmatpush3.bf16.msra.mxu1 %v12828_v5  ;;  %10878 = vmatprep.mubr.msk.f32.mxu1 %vm52_vm0, %v12320_v21 }
 0x90f   :  { %11770 = vmatprep.subr.bf16.mxu1 %v12826_v34 }
 0x911   :  { %10879 = vmatmul.mubr.msk.f32.vlgmr.msra.gmra.mrb[62].mxu1 %vm52_vm0, %v12321_v3 }
 0x912   :  { %11772 = vmatpush3.bf16.msra.mxu1 %v12826_v34  ;;  %10881 = vmatprep.mubr.msk.f32.mxu1 %vm52_vm0, %v12322_v49 }
 0x913   :  { %11774 = vmatprep.subr.bf16.mxu1 %v12828_v5 }
 0x915   :  { %10882 = vmatmul.mubr.msk.f32.gmra.mrb[64].mxu1 %vm52_vm0, %v12323_v6 }
 0x916   :  { %11776 = vmatpush3.bf16.msra.mxu1 %v12828_v5  ;;  %10898 = vmatprep.mubr.msk.f32.mxu1 %vm52_vm0, %v12324_v50 }
 0x917   :  { %11777 = vmatprep.subr.bf16.mxu1 %v12412_v46 }
 0x919   :  { %10899 = vmatmul.mubr.msk.f32.vlgmr.msra.gmra.mrb[66].mxu1 %vm52_vm0, %v12325_v51 }
 0x91a   :  { %10901 = vmatprep.mubr.msk.f32.mxu1 %vm52_vm0, %v12326_v52 }
 0x91d   :  { %10902 = vmatmul.mubr.msk.f32.gmra.mrb[68].mxu1 %vm52_vm0, %v12327_v53 }
 0x91e   :  { %10918 = vmatprep.mubr.msk.f32.mxu1 %vm12413_vm3, %v12414_v47 }
 0x9c4   :  { %v10788_v58 = vpop.f32.mrb[46].mxu1  ;;  %v10774_v57 = vpop.f32.mrb[38].mxu0 }
 0x9c5   :  { %v3287_v55 = vpop.f32.mrb[47].mxu1  ;;  %v3198_v59 = vpop.f32.mrb[39].mxu0 }
 0x9c6   :  { %v3308_v60 = vpack.c.bf16 %v10788_v58, %v3287_v55  ;;  %v3219_v8 = vpack.c.bf16 %v10774_v57, %v3198_v59 }
 0x9c8   :  { %v10791_v10 = vpop.f32.mrb[48].mxu1  ;;  %10794 = vmatprep.mubr.msk.bf16.mxu0 %vm1652_vm4, %v3308_v60  ;;  %v10777_v12 = vpop.f32.mrb[40].mxu0  ;;  %v12219_v60 = vld [vmem:[#allocation2 + $0xb8] sm:$0xff]  }
 0x9c9   :  { %v3297_v22 = vpop.f32.mrb[49].mxu1  ;;  %v3208_v62 = vpop.f32.mrb[41].mxu0 }
 0x9ca   :  { %v3309_v63 = vpack.c.bf16 %v10791_v10, %v3297_v22  ;;  %v3220_v23 = vpack.c.bf16 %v10777_v12, %v3208_v62  ;;  %v9575_v12 = vld [vmem:[#allocation4 + $0x110] ss:$0 sm:$0xff] }
 0x9cc   :  { %10795 = vmatmul.mubr.msk.bf16.vlgmr.msra.gmra.mrb[44].mxu0 %vm1652_vm4, %v3309_v63  ;;  %v10814_v1 = vpop.f32.mrb[50].mxu1 }
 0x9cd   :  { %10799 = vmatpush3.bf16.msra.mxu0 %v12214_v54  ;;  %10800 = vmatprep.mubr.msk.bf16.mxu0 %vm1652_vm4, %v3219_v8  ;;  %v3498_v24 = vpop.f32.mrb[51].mxu1  ;;  %v12218_v54 = vld [vmem:[#allocation2 + $0xb0] sm:$0xff]   ;;  %v12220_v8 = vld [vmem:[#allocation2 + $0xc0] sm:$0xff]  }
 0x9ce   :  { %10818 = vmatprep.subr.bf16.mxu0 %v12215_v0  ;;  %v3519_v25 = vpack.c.bf16 %v10814_v1, %v3498_v24 }
 0x9d0   :  { %v10817_v14 = vpop.f32.mrb[52].mxu1 }
 0x9d1   :  { %v3508_v2 = vpop.f32.mrb[53].mxu1 }
 0x9d2   :  { %v3520_v4 = vpack.c.bf16 %v10817_v14, %v3508_v2 }
 0x9d4   :  { %v10840_v13 = vpop.f32.mrb[54].mxu1 }
 0x9d5   :  { %v3721_v9 = vpop.f32.mrb[55].mxu1 }
 0x9d6   :  { %v3742_v11 = vpack.c.bf16 %v10840_v13, %v3721_v9 }
 0x9d8   :  { %10801 = vmatmul.mubr.msk.bf16.vlgmr.msra.gmra.mrb[44].mxu0 %vm1652_vm4, %v3220_v23  ;;  %v10843_v27 = vpop.f32.mrb[56].mxu1 }
 0x9d9   :  { %10819 = vmatpush3.bf16.msra.mxu0 %v12215_v0  ;;  %10820 = vmatprep.mubr.msk.bf16.mxu0 %vm1652_vm4, %v3519_v25  ;;  %v3731_v7 = vpop.f32.mrb[57].mxu1 }
 0x9da   :  { %10824 = vmatprep.subr.bf16.mxu0 %v12216_v26  ;;  %v3743_v28 = vpack.c.bf16 %v10843_v27, %v3731_v7 }
 0x9dc   :  { %v10860_v29 = vpop.f32.mrb[58].mxu1 }
 0x9dd   :  { %v3875_v31 = vpop.f32.mrb[59].mxu1 }
 0x9de   :  { %v3896_v32 = vpack.c.bf16 %v10860_v29, %v3875_v31 }
 0x9e0   :  { %v10863_v36 = vpop.f32.mrb[60].mxu1 }
 0x9e1   :  { %v3885_v38 = vpop.f32.mrb[61].mxu1 }
 0x9e2   :  { %v3897_v21 = vpack.c.bf16 %v10863_v36, %v3885_v38 }
 0x9e4   :  { %10821 = vmatmul.mubr.msk.bf16.vlgmr.msra.gmra.mrb[44].mxu0 %vm1652_vm4, %v3520_v4  ;;  %v10880_v3 = vpop.f32.mrb[62].mxu1 }
 0x9e5   :  { %10825 = vmatpush3.bf16.msra.mxu0 %v12216_v26  ;;  %10826 = vmatprep.mubr.msk.bf16.mxu0 %vm1652_vm4, %v12826_v34  ;;  %v4029_v49 = vpop.f32.mrb[63].mxu1  ;;  %v12954_v26 = vld [vmem:[#allocation4 + $0xe0] sm:$0xff] }
 0x9e6   :  { %10844 = vmatprep.subr.bf16.mxu0 %v12217_v40  ;;  %v4050_v6 = vpack.c.bf16 %v10880_v3, %v4029_v49  ;;  %v4280_v3 = vld [vmem:[#allocation4 + $0x160] sm:$0x3] }
 0x9e8   :  { %v10883_v50 = vpop.f32.mrb[64].mxu1 }
 0x9e9   :  { %v4039_v51 = vpop.f32.mrb[65].mxu1 }
 0x9ea   :  { %v4051_v52 = vpack.c.bf16 %v10883_v50, %v4039_v51  ;;  %v4449_v50 = vrot.slane %v4280_v3, %v12631_v30 }
 0x9ec   :  { %v10900_v53 = vpop.f32.mrb[66].mxu1 }
 0x9ed   :  { %v4183_v56 = vpop.f32.mrb[67].mxu1 }
 0x9ee   :  { %v4204_v58 = vpack.c.bf16 %v10900_v53, %v4183_v56  ;;  %v4457_v56 = vrot.slane %v4280_v3, %v12634_v33 }
 0x9f0   :  { %10827 = vmatmul.mubr.msk.bf16.vlgmr.msra.gmra.mrb[44].mxu0 %vm1652_vm4, %v12828_v5  ;;  %v10903_v57 = vpop.f32.mrb[68].mxu1 }
 0x9f1   :  { %10845 = vmatpush3.bf16.msra.mxu0 %v12217_v40  ;;  %10846 = vmatprep.mubr.msk.bf16.mxu0 %vm1652_vm4, %v3742_v11  ;;  %v4193_v55 = vpop.f32.mrb[69].mxu1 }
 0x9f2   :  { %10864 = vmatprep.subr.bf16.mxu0 %v12218_v54  ;;  %v4205_v59 = vpack.c.bf16 %v10903_v57, %v4193_v55 }
 0x9fc   :  { %10847 = vmatmul.mubr.msk.bf16.vlgmr.msra.gmra.mrb[44].mxu0 %vm1652_vm4, %v3743_v28 }
 0x9fd   :  { %10865 = vmatpush3.bf16.msra.mxu0 %v12218_v54  ;;  %10866 = vmatprep.mubr.msk.bf16.mxu0 %vm1652_vm4, %v3896_v32 }
 0x9fe   :  { %10884 = vmatprep.subr.bf16.mxu0 %v12219_v60 }
 0xa08   :  { %10867 = vmatmul.mubr.msk.bf16.vlgmr.msra.gmra.mrb[44].mxu0 %vm1652_vm4, %v3897_v21 }
 0xa09   :  { %10885 = vmatpush3.bf16.msra.mxu0 %v12219_v60  ;;  %10886 = vmatprep.mubr.msk.bf16.mxu0 %vm1652_vm4, %v4050_v6 }
 0xa0a   :  { %10904 = vmatprep.subr.bf16.mxu0 %v12220_v8 }
 0xa14   :  { %10887 = vmatmul.mubr.msk.bf16.vlgmr.msra.gmra.mrb[44].mxu0 %vm1652_vm4, %v4051_v52 }
 0xa15   :  { %10905 = vmatpush3.bf16.msra.mxu0 %v12220_v8  ;;  %10906 = vmatprep.mubr.msk.bf16.mxu0 %vm1652_vm4, %v4204_v58 }
 0xa20   :  { %10907 = vmatmul.mubr.msk.bf16.vlgmr.msra.gmra.mrb[44].mxu0 %vm1652_vm4, %v4205_v59 }
 0xa21   :  { %10954 = vmatprep.mubr.msk.f32.mxu0 %vm52_vm0, %v12857_v41 }
 0xaf3   :  { %v10908_v10 = vpop.f32.mrb[44].mxu0 }
 0xaf4   :  { %v4252_v22 = vpop.f32.mrb[45].mxu0  ;;  %v4278_v25 = vadd.f32 %v10908_v10, %v9575_v12 }
 0xaf5   :  { %v10909_v62 = vpop.f32.mrb[46].mxu0  ;;  %v4276_v23 = vadd.f32 %v9575_v12, %v4252_v22 }
 0xaf6   :  { %v4255_v63 = vpop.f32.mrb[47].mxu0  ;;  %v4279_v1 = vadd.f32 %v10909_v62, %v9575_v12  ;;  %v4353_v11 = vmul.f32 %v4278_v25, %v4278_v25 }
 0xaf7   :  { %v4277_v0 = vadd.f32 %v9575_v12, %v4255_v63  ;;  %v4351_v4 = vmul.f32 %v4276_v23, %v4276_v23 }
 0xaf8   :  { %v11781_v14 = vpack.c.bf16 %v4279_v1, %v4278_v25  ;;  %v4354_v13 = vmul.f32 %v4279_v1, %v4279_v1 }
 0xaf9   :  { %v11778_v24 = vpack.c.bf16 %v4277_v0, %v4276_v23  ;;  %v4352_v2 = vmul.f32 %v4277_v0, %v4277_v0 }
 0xafa   :  { %v11787_v27 = vpack.c.bf16 %v4354_v13, %v4353_v11 }
 0xafb   :  { %11779 = vmatpush3.bf16.msra.mxu1 %v11778_v24  ;;  %v11784_v9 = vpack.c.bf16 %v4352_v2, %v4351_v4 }
 0xafc   :  { %11780 = vmatprep.subr.bf16.mxu1 %v12412_v46 }
 0xaff   :  { %11782 = vmatpush3.bf16.msra.mxu1 %v11781_v14 }
 0xb00   :  { %11783 = vmatprep.subr.bf16.mxu1 %v12412_v46 }
 0xb02   :  { %10919 = vmatmul.mubr.msk.f32.vlgmr.msra.gmra.mrb[70].mxu1 %vm52_vm0, %v12954_v26 }
 0xb03   :  { %11785 = vmatpush3.bf16.msra.mxu1 %v11784_v9  ;;  %10929 = vmatprep.mubr.msk.f32.mxu1 %vm12413_vm3, %v12414_v47 }
 0xb04   :  { %11786 = vmatprep.subr.bf16.mxu1 %v12412_v46 }
 0xb07   :  { %11788 = vmatpush3.bf16.msra.mxu1 %v11787_v27 }
 0xb0a   :  { %10930 = vmatmul.mubr.msk.f32.vlgmr.msra.gmra.mrb[72].mxu1 %vm52_vm0, %v12954_v26 }
 0xb0b   :  { %10940 = vmatprep.mubr.msk.f32.mxu1 %vm52_vm0, %v12808_v42 }
 0xbd5   :  { %v4347_v7 = vpop.f32.mrb[70].mxu1 }
 0xbd6   :  { %v10920_v28 = vpop.f32.mrb[71].mxu1  ;;  %v4425_v29 = vmul.f32 %v4347_v7, %v4347_v7  ;;  %v4431_v21 = vrot.slane %v4347_v7, %v12631_v30 }
 0xbd7   :  { %v12224_v28 = vld [vmem:[#allocation2 + $0xd0] sm:$0xff]  }
 0xbd8   :  { %v4432_v6 = vsub.f32 %v4276_v23, %v4431_v21  ;;  %v4433_v51 = vsub.f32 %v4277_v0, %v4431_v21  ;;  %v4434_v52 = vsub.f32 %v4278_v25, %v4431_v21  ;;  %v4435_v53 = vsub.f32 %v4279_v1, %v4431_v21 }
 0xbdd   :  { %v4421_v31 = vpop.f32.mrb[72].mxu1 }
 0xbde   :  { %v4426_v32 = vsub.f32 %v4421_v31, %v4425_v29  ;;  %v10931_v36 = vpop.f32.mrb[73].mxu1 }
 0xbdf   :  { %v12225_v36 = vld [vmem:[#allocation2 + $0xe8] sm:$0xff]  }
 0xbe0   :  { %v4427_v38 = vmax.f32 %v4426_v32, 0.0 }
 0xbe2   :  { %v4436_v40 = vadd.f32 1e-05, %v4427_v38 }
 0xbe4   :  { %12280 = vrsqrt.f32 %v4436_v40 }
 0xbee   :  { %v12281_v49 = vpop.eup %12280 }
 0xbef   :  { %v4441_v42 = vrot.slane %v12281_v49, %v12631_v30 }
 0xbf1   :  { %v4442_v54 = vmul.f32 %v4441_v42, %v4432_v6  ;;  %v4443_v58 = vmul.f32 %v4441_v42, %v4433_v51  ;;  %v4444_v57 = vmul.f32 %v4441_v42, %v4434_v52  ;;  %v4445_v55 = vmul.f32 %v4441_v42, %v4435_v53  ;;  %v12227_v42 = vld [vmem:[#allocation2 + $0xf8] sm:$0xff]  }
 0xbf3   :  { %v4450_v59 = vmul.f32 %v4449_v50, %v4442_v54  ;;  %v4451_v60 = vmul.f32 %v4449_v50, %v4443_v58  ;;  %v4452_v8 = vmul.f32 %v4449_v50, %v4444_v57  ;;  %v4453_v10 = vmul.f32 %v4449_v50, %v4445_v55  ;;  %v12226_v50 = vld [vmem:[#allocation2 + $0xf0] sm:$0xff]   ;;  %v12228_v54 = vld [vmem:[#allocation2 + $0x100] sm:$0xff]   ;;  %v12229_v58 = vld [vmem:[#allocation2 + $0x108] sm:$0xff]  }
 0xbf4   :  { %v12230_v57 = vld [vmem:[#allocation2 + $0x110] sm:$0xff]  }
 0xbf5   :  { %v4458_v12 = vadd.f32 %v4457_v56, %v4450_v59  ;;  %v4459_v22 = vadd.f32 %v4457_v56, %v4451_v60  ;;  %v4460_v62 = vadd.f32 %v4457_v56, %v4452_v8  ;;  %v4461_v63 = vadd.f32 %v4457_v56, %v4453_v10  ;;  %v9614_v59 = vld [vmem:[#allocation4 + $0x118] ss:$0 sm:$0xff] }
 0xbf7   :  { %v4462_v23 = vmax.f32 %v4458_v12, 0.0  ;;  %v4463_v0 = vmax.f32 %v4459_v22, 0.0  ;;  %v4464_v24 = vmax.f32 %v4460_v62, 0.0  ;;  %v4465_v1 = vmax.f32 %v4461_v63, 0.0 }
 0xbf9   :  { %v12969_v25 = vpack.c.bf16 %v4463_v0, %v4462_v23  ;;  %v12971_v14 = vpack.c.bf16 %v4465_v1, %v4464_v24 }
 0xbfb   :  { %11790 = vmatprep.subr.bf16.mxu1 %v12969_v25  ;;  %11798 = vmatprep.subr.bf16.mxu0 %v12969_v25 }
 0xbfc   :  { %11792 = vmatpush3.bf16.msra.mxu1 %v12969_v25  ;;  %11800 = vmatpush3.bf16.msra.mxu0 %v12969_v25 }
 0xbfd   :  { %11794 = vmatprep.subr.bf16.mxu1 %v12971_v14  ;;  %11802 = vmatprep.subr.bf16.mxu0 %v12971_v14 }
 0xc00   :  { %11796 = vmatpush3.bf16.msra.mxu1 %v12971_v14  ;;  %11804 = vmatpush3.bf16.msra.mxu0 %v12971_v14 }
 0xc01   :  { %11806 = vmatprep.subr.bf16.mxu0 %v12969_v25 }
 0xc03   :  { %10955 = vmatmul.mubr.msk.f32.vlgmr.msra.gmra.mrb[42].mxu0 %vm52_vm0, %v12862_v43  ;;  %10941 = vmatmul.mubr.msk.f32.vlgmr.msra.gmra.mrb[74].mxu1 %vm52_vm0, %v12839_v35  ;;  %v12221_v35 = vld [vmem:[#allocation2 + $0xd8] sm:$0xff]  }
 0xc04   :  { %11808 = vmatpush3.bf16.msra.mxu0 %v12969_v25  ;;  %10957 = vmatprep.mubr.msk.f32.mxu0 %vm52_vm0, %v12867_v44 }
 0xc05   :  { %11810 = vmatprep.subr.bf16.mxu0 %v12971_v14  ;;  %10943 = vmatprep.mubr.msk.f32.mxu1 %vm52_vm0, %v12845_v37  ;;  %v12222_v37 = vld [vmem:[#allocation2 + $0xe0] sm:$0xff]  }
 0xc06   :  { %10960 = vmatprep.subr.bf16.mxu1 %v12221_v35 }
 0xc07   :  { %10958 = vmatmul.mubr.msk.f32.gmra.mrb[48].mxu0 %vm52_vm0, %v12872_v45  ;;  %10944 = vmatmul.mubr.msk.f32.gmra.mrb[76].mxu1 %vm52_vm0, %v12851_v39  ;;  %v12223_v39 = vld [vmem:[#allocation2 + $0xc8] sm:$0xff]  }
 0xc08   :  { %11812 = vmatpush3.bf16.msra.mxu0 %v12971_v14  ;;  %10992 = vmatprep.mubr.msk.f32.mxu0 %vm52_vm0, %v12877_v15 }
 0xc09   :  { %11814 = vmatprep.subr.bf16.mxu0 %v12969_v25  ;;  %10961 = vmatpush3.bf16.msra.mxu1 %v12221_v35 }
 0xc0a   :  { %10962 = vmatprep.subr.bf16.mxu1 %v12222_v37 }
 0xc0b   :  { %10993 = vmatmul.mubr.msk.f32.vlgmr.msra.gmra.mrb[50].mxu0 %vm52_vm0, %v12882_v16 }
 0xc0c   :  { %11816 = vmatpush3.bf16.msra.mxu0 %v12969_v25  ;;  %10995 = vmatprep.mubr.msk.f32.mxu0 %vm52_vm0, %v12887_v17 }
 0xc0d   :  { %11818 = vmatprep.subr.bf16.mxu0 %v12971_v14  ;;  %10963 = vmatpush3.bf16.msra.mxu1 %v12222_v37 }
 0xc0e   :  { %10968 = vmatprep.subr.bf16.mxu1 %v12223_v39 }
 0xc0f   :  { %10996 = vmatmul.mubr.msk.f32.gmra.mrb[52].mxu0 %vm52_vm0, %v12892_v18 }
 0xc10   :  { %11820 = vmatpush3.bf16.msra.mxu0 %v12971_v14  ;;  %11014 = vmatprep.mubr.msk.f32.mxu0 %vm52_vm0, %v12897_v61 }
 0xc11   :  { %11821 = vmatprep.subr.bf16.mxu0 %v12412_v46 }
 0xc13   :  { %11015 = vmatmul.mubr.msk.f32.vlgmr.msra.gmra.mrb[54].mxu0 %vm52_vm0, %v12902_v19 }
 0xc14   :  { %11017 = vmatprep.mubr.msk.f32.mxu0 %vm52_vm0, %v12907_v20 }
 0xc17   :  { %11018 = vmatmul.mubr.msk.f32.gmra.mrb[56].mxu0 %vm52_vm0, %v12912_v48 }
 0xc18   :  { %11036 = vmatprep.mubr.msk.f32.mxu0 %vm12413_vm3, %v12414_v47 }
 0xcd6   :  { %v10956_v61 = vpop.f32.mrb[42].mxu0  ;;  %v10942_v2 = vpop.f32.mrb[74].mxu1 }
 0xcd7   :  { %v4623_v19 = vpop.f32.mrb[43].mxu0  ;;  %v4532_v4 = vpop.f32.mrb[75].mxu1 }
 0xcd8   :  { %v4646_v13 = vpack.c.bf16 %v10956_v61, %v4623_v19  ;;  %v4555_v20 = vpack.c.bf16 %v10942_v2, %v4532_v4  ;;  %v12232_v61 = vld [vmem:[#allocation2 + $0x130] sm:$0xff]   ;;  %v12234_v2 = vld [vmem:[#allocation2 + $0x118] sm:$0xff]  }
 0xcda   :  { %v10959_v9 = vpop.f32.mrb[48].mxu0  ;;  %10964 = vmatprep.mubr.msk.bf16.mxu1 %vm52_vm0, %v4646_v13  ;;  %v10945_v48 = vpop.f32.mrb[76].mxu1 }
 0xcdb   :  { %v4633_v11 = vpop.f32.mrb[49].mxu0  ;;  %v4542_v27 = vpop.f32.mrb[77].mxu1 }
 0xcdc   :  { %v4647_v7 = vpack.c.bf16 %v10959_v9, %v4633_v11  ;;  %v4556_v29 = vpack.c.bf16 %v10945_v48, %v4542_v27 }
 0xcde   :  { %10965 = vmatmul.mubr.msk.bf16.vlgmr.msra.gmra.mrb[80].mxu1 %vm52_vm0, %v4647_v7  ;;  %v10994_v31 = vpop.f32.mrb[50].mxu0 }
 0xcdf   :  { %10969 = vmatpush3.bf16.msra.mxu1 %v12223_v39  ;;  %10972 = vmatprep.mubr.msk.bf16.mxu1 %vm52_vm0, %v4555_v20  ;;  %v4925_v32 = vpop.f32.mrb[51].mxu0  ;;  %v12231_v39 = vld [vmem:[#allocation2 + $0x128] sm:$0xff]  }
 0xce0   :  { %10970 = vmatprep.subr.bf16.mxu1 %v12224_v28  ;;  %v4948_v38 = vpack.c.bf16 %v10994_v31, %v4925_v32 }
 0xce2   :  { %v10997_v40 = vpop.f32.mrb[52].mxu0 }
 0xce3   :  { %10971 = vmatpush3.bf16.msra.mxu1 %v12224_v28  ;;  %v4935_v21 = vpop.f32.mrb[53].mxu0 }
 0xce4   :  { %10976 = vmatprep.subr.bf16.mxu1 %v12225_v36  ;;  %v4949_v3 = vpack.c.bf16 %v10997_v40, %v4935_v21 }
 0xce6   :  { %v11016_v49 = vpop.f32.mrb[54].mxu0 }
 0xce7   :  { %v5087_v6 = vpop.f32.mrb[55].mxu0 }
 0xce8   :  { %v5110_v51 = vpack.c.bf16 %v11016_v49, %v5087_v6 }
 0xcea   :  { %10973 = vmatmul.mubr.msk.bf16.vlgmr.msra.gmra.mrb[80].mxu1 %vm52_vm0, %v4556_v29  ;;  %v11019_v52 = vpop.f32.mrb[56].mxu0 }
 0xceb   :  { %10977 = vmatpush3.bf16.msra.mxu1 %v12225_v36  ;;  %10980 = vmatprep.mubr.msk.bf16.mxu1 %vm52_vm0, %v12969_v25  ;;  %v5097_v53 = vpop.f32.mrb[57].mxu0 }
 0xcec   :  { %10978 = vmatprep.subr.bf16.mxu1 %v12226_v50  ;;  %v5111_v56 = vpack.c.bf16 %v11019_v52, %v5097_v53 }
 0xcef   :  { %10979 = vmatpush3.bf16.msra.mxu1 %v12226_v50 }
 0xcf0   :  { %10998 = vmatprep.subr.bf16.mxu1 %v12227_v42 }
 0xcf6   :  { %10981 = vmatmul.mubr.msk.bf16.vlgmr.msra.gmra.mrb[80].mxu1 %vm52_vm0, %v12971_v14 }
 0xcf7   :  { %10999 = vmatpush3.bf16.msra.mxu1 %v12227_v42  ;;  %11002 = vmatprep.mubr.msk.bf16.mxu1 %vm52_vm0, %v4948_v38 }
 0xcf8   :  { %11000 = vmatprep.subr.bf16.mxu1 %v12228_v54 }
 0xcfb   :  { %11001 = vmatpush3.bf16.msra.mxu1 %v12228_v54 }
 0xcfc   :  { %11020 = vmatprep.subr.bf16.mxu1 %v12229_v58 }
 0xd02   :  { %11003 = vmatmul.mubr.msk.bf16.vlgmr.msra.gmra.mrb[80].mxu1 %vm52_vm0, %v4949_v3 }
 0xd03   :  { %11021 = vmatpush3.bf16.msra.mxu1 %v12229_v58  ;;  %11024 = vmatprep.mubr.msk.bf16.mxu1 %vm52_vm0, %v5110_v51 }
 0xd04   :  { %11022 = vmatprep.subr.bf16.mxu1 %v12230_v57 }
 0xd07   :  { %11023 = vmatpush3.bf16.msra.mxu1 %v12230_v57 }
 0xd08   :  { %11064 = vmatprep.subr.bf16.mxu1 %v12231_v39 }
 0xd0e   :  { %11025 = vmatmul.mubr.msk.bf16.vlgmr.msra.gmra.mrb[80].mxu1 %vm52_vm0, %v5111_v56 }
 0xd0f   :  { %11065 = vmatpush3.bf16.msra.mxu1 %v12231_v39 }
 0xd10   :  { %11066 = vmatprep.subr.bf16.mxu1 %v12232_v61 }
 0xd13   :  { %11067 = vmatpush3.bf16.msra.mxu1 %v12232_v61 }
 0xd14   :  { %11072 = vmatprep.subr.bf16.mxu1 %v12234_v2 }
 0xde1   :  { %v11026_v55 = vpop.f32.mrb[80].mxu1 }
 0xde2   :  { %v5164_v60 = vpop.f32.mrb[81].mxu1  ;;  %v5190_v23 = vadd.f32 %v11026_v55, %v9614_v59 }
 0xde3   :  { %v11027_v8 = vpop.f32.mrb[82].mxu1  ;;  %v5188_v12 = vadd.f32 %v9614_v59, %v5164_v60 }
 0xde4   :  { %v5167_v10 = vpop.f32.mrb[83].mxu1  ;;  %v5191_v62 = vadd.f32 %v11027_v8, %v9614_v59  ;;  %v5265_v35 = vmul.f32 %v5190_v23, %v5190_v23 }
 0xde5   :  { %v5189_v22 = vadd.f32 %v9614_v59, %v5167_v10  ;;  %v5263_v1 = vmul.f32 %v5188_v12, %v5188_v12 }
 0xde6   :  { %v11825_v0 = vpack.c.bf16 %v5191_v62, %v5190_v23  ;;  %v5266_v25 = vmul.f32 %v5191_v62, %v5191_v62 }
 0xde7   :  { %v11822_v63 = vpack.c.bf16 %v5189_v22, %v5188_v12  ;;  %v5264_v24 = vmul.f32 %v5189_v22, %v5189_v22 }
 0xde8   :  { %v11831_v37 = vpack.c.bf16 %v5266_v25, %v5265_v35  ;;  %v9638_v25 = vld [vmem:[#allocation4 + $0x128] ss:$0 sm:$0xff] }
 0xde9   :  { %11823 = vmatpush3.bf16.msra.mxu0 %v11822_v63  ;;  %v11828_v14 = vpack.c.bf16 %v5264_v24, %v5263_v1 }
 0xdea   :  { %11824 = vmatprep.subr.bf16.mxu0 %v12412_v46 }
 0xded   :  { %11826 = vmatpush3.bf16.msra.mxu0 %v11825_v0 }
 0xdee   :  { %11827 = vmatprep.subr.bf16.mxu0 %v12412_v46 }
 0xdf0   :  { %11037 = vmatmul.mubr.msk.f32.vlgmr.msra.gmra.mrb[58].mxu0 %vm52_vm0, %v12954_v26 }
 0xdf1   :  { %11829 = vmatpush3.bf16.msra.mxu0 %v11828_v14  ;;  %11047 = vmatprep.mubr.msk.f32.mxu0 %vm12413_vm3, %v12414_v47 }
 0xdf2   :  { %11830 = vmatprep.subr.bf16.mxu0 %v12412_v46 }
 0xdf5   :  { %11832 = vmatpush3.bf16.msra.mxu0 %v11831_v37 }
 0xdf8   :  { %11048 = vmatmul.mubr.msk.f32.vlgmr.msra.gmra.mrb[60].mxu0 %vm52_vm0, %v12954_v26 }
 0xdf9   :  { %11058 = vmatprep.mubr.msk.f32.mxu0 %vm52_vm0, %v12857_v41  ;;  %v5192_v41 = vld [vmem:[#allocation4 + $0x168] sm:$0x3] }
 0xdfa   :  { %v5361_v31 = vrot.slane %v5192_v41, %v12631_v30  ;;  %v5369_v21 = vrot.slane %v5192_v41, %v12634_v33 }
 0xec3   :  { %v5259_v19 = vpop.f32.mrb[58].mxu0 }
 0xec4   :  { %v11038_v4 = vpop.f32.mrb[59].mxu0  ;;  %v5337_v13 = vmul.f32 %v5259_v19, %v5259_v19  ;;  %v5343_v7 = vrot.slane %v5259_v19, %v12631_v30 }
 0xec6   :  { %v5344_v29 = vsub.f32 %v5188_v12, %v5343_v7  ;;  %v5345_v32 = vsub.f32 %v5189_v22, %v5343_v7  ;;  %v5346_v36 = vsub.f32 %v5190_v23, %v5343_v7  ;;  %v5347_v38 = vsub.f32 %v5191_v62, %v5343_v7  ;;  %v12233_v22 = vld [vmem:[#allocation2 + $0x148] sm:$0xff]  }
 0xecb   :  { %v5333_v20 = vpop.f32.mrb[60].mxu0 }
 0xecc   :  { %v5338_v9 = vsub.f32 %v5333_v20, %v5337_v13  ;;  %v11049_v48 = vpop.f32.mrb[61].mxu0 }
 0xece   :  { %v5339_v11 = vmax.f32 %v5338_v9, 0.0 }
 0xed0   :  { %v5348_v27 = vadd.f32 1e-05, %v5339_v11 }
 0xed2   :  { %12282 = vrsqrt.f32 %v5348_v27 }
 0xedc   :  { %v12283_v28 = vpop.eup %12282 }
 0xedd   :  { %v5353_v40 = vrot.slane %v12283_v28, %v12631_v30  ;;  %v9637_v28 = vld [vmem:[#allocation4 + $0x120] ss:$0 sm:$0xff] }
 0xedf   :  { %v5354_v3 = vmul.f32 %v5353_v40, %v5344_v29  ;;  %v5355_v49 = vmul.f32 %v5353_v40, %v5345_v32  ;;  %v5356_v6 = vmul.f32 %v5353_v40, %v5346_v36  ;;  %v5357_v50 = vmul.f32 %v5353_v40, %v5347_v38 }
 0xee1   :  { %v5362_v51 = vmul.f32 %v5361_v31, %v5354_v3  ;;  %v5363_v52 = vmul.f32 %v5361_v31, %v5355_v49  ;;  %v5364_v53 = vmul.f32 %v5361_v31, %v5356_v6  ;;  %v5365_v42 = vmul.f32 %v5361_v31, %v5357_v50 }
 0xee3   :  { %v5370_v56 = vadd.f32 %v5369_v21, %v5362_v51  ;;  %v5371_v54 = vadd.f32 %v5369_v21, %v5363_v52  ;;  %v5372_v58 = vadd.f32 %v5369_v21, %v5364_v53  ;;  %v5373_v57 = vadd.f32 %v5369_v21, %v5365_v42 }
 0xee5   :  { %v5374_v55 = vmax.f32 %v5370_v56, 0.0  ;;  %v5375_v59 = vmax.f32 %v5371_v54, 0.0  ;;  %v5376_v60 = vmax.f32 %v5372_v58, 0.0  ;;  %v5377_v8 = vmax.f32 %v5373_v57, 0.0 }
 0xee7   :  { %v11833_v10 = vpack.c.bf16 %v5375_v59, %v5374_v55  ;;  %v11837_v12 = vpack.c.bf16 %v5377_v8, %v5376_v60  ;;  %v12329_v8 = vld [vmem:[#allocation4] sm:$0xff] }
 0xee9   :  { %11834 = vmatprep.subr.bf16.mxu0 %v11833_v10  ;;  %11068 = vmatprep.mubr.msk.bf16.mxu1 %vm52_vm0, %v11833_v10 }
 0xeea   :  { %11836 = vmatpush3.bf16.msra.mxu0 %v11833_v10  ;;  %11069 = vmatmul.mubr.msk.bf16.vlgmr.msra.gmra.mrb[84].mxu1 %vm52_vm0, %v11837_v12 }
 0xeeb   :  { %11838 = vmatprep.subr.bf16.mxu0 %v11837_v12  ;;  %11073 = vmatpush3.bf16.msra.mxu1 %v12234_v2 }
 0xeee   :  { %11840 = vmatpush3.bf16.msra.mxu0 %v11837_v12 }
 0xeef   :  { %11842 = vmatprep.subr.bf16.mxu0 %v11833_v10 }
 0xef1   :  { %11059 = vmatmul.mubr.msk.f32.vlgmr.msra.gmra.mrb[62].mxu0 %vm52_vm0, %v12862_v43  ;;  %v12235_v43 = vld [vmem:[#allocation2 + $0x120] sm:$0xff]  }
 0xef2   :  { %11844 = vmatpush3.bf16.msra.mxu0 %v11833_v10  ;;  %11061 = vmatprep.mubr.msk.f32.mxu0 %vm52_vm0, %v12867_v44  ;;  %v12236_v44 = vld [vmem:[#allocation2 + $0x138] sm:$0xff]  }
 0xef3   :  { %11846 = vmatprep.subr.bf16.mxu0 %v11837_v12  ;;  %11074 = vmatprep.subr.bf16.mxu1 %v12235_v43 }
 0xef4   :  { %11075 = vmatpush3.bf16.msra.mxu1 %v12235_v43 }
 0xef5   :  { %11062 = vmatmul.mubr.msk.f32.gmra.mrb[64].mxu0 %vm52_vm0, %v12872_v45  ;;  %11094 = vmatprep.subr.bf16.mxu1 %v12236_v44 }
 0xef6   :  { %11848 = vmatpush3.bf16.msra.mxu0 %v11837_v12  ;;  %11088 = vmatprep.mubr.msk.f32.mxu0 %vm52_vm0, %v12877_v15  ;;  %v13136_v12 = vld [vmem:[#allocation4 + $0x20] sm:$0xff] }
 0xef7   :  { %11102 = vmatprep.subr.bf16.mxu0 %v12233_v22 }
 0xef9   :  { %11089 = vmatmul.mubr.msk.f32.vlgmr.msra.gmra.mrb[66].mxu0 %vm52_vm0, %v12882_v16 }
 0xefa   :  { %11091 = vmatprep.mubr.msk.f32.mxu0 %vm52_vm0, %v12887_v17  ;;  %11103 = vmatpush3.bf16.msra.mxu0 %v12233_v22 }
 0xefb   :  { %11849 = vmatprep.subr.bf16.mxu0 %v12412_v46 }
 0xefd   :  { %11092 = vmatmul.mubr.msk.f32.gmra.mrb[68].mxu0 %vm52_vm0, %v12892_v18 }
 0xefe   :  { %11104 = vmatprep.mubr.msk.bf16.mxu0 %vm1652_vm4, %v12826_v34  ;;  %v12237_v34 = vld [vmem:[#allocation2 + $0x140] sm:$0xff]  }
 0xf01   :  { %11105 = vmatmul.mubr.msk.bf16.vlgmr.msra.gmra.mrb[72].mxu0 %vm1652_vm4, %v12828_v5 }
 0xf02   :  { %11116 = vmatprep.mubr.msk.f32.mxu0 %vm12413_vm3, %v12414_v47 }
 0xfc4   :  { %v11060_v45 = vpop.f32.mrb[62].mxu0 }
 0xfc5   :  { %v5444_v15 = vpop.f32.mrb[63].mxu0 }
 0xfc6   :  { %v5467_v16 = vpack.c.bf16 %v11060_v45, %v5444_v15 }
 0xfc8   :  { %v11063_v17 = vpop.f32.mrb[64].mxu0  ;;  %11076 = vmatprep.mubr.msk.bf16.mxu1 %vm52_vm0, %v5467_v16 }
 0xfc9   :  { %v5454_v18 = vpop.f32.mrb[65].mxu0 }
 0xfca   :  { %v5468_v62 = vpack.c.bf16 %v11063_v17, %v5454_v18 }
 0xfcc   :  { %11077 = vmatmul.mubr.msk.bf16.vlgmr.msra.gmra.mrb[84].mxu1 %vm52_vm0, %v5468_v62  ;;  %v11090_v5 = vpop.f32.mrb[66].mxu0 }
 0xfcd   :  { %11095 = vmatpush3.bf16.msra.mxu1 %v12236_v44  ;;  %v5675_v63 = vpop.f32.mrb[67].mxu0 }
 0xfce   :  { %v5698_v23 = vpack.c.bf16 %v11090_v5, %v5675_v63  ;;  %11096 = vmatprep.subr.bf16.mxu1 %v12237_v34 }
 0xfd0   :  { %v11093_v0 = vpop.f32.mrb[68].mxu0  ;;  %11098 = vmatprep.mubr.msk.bf16.mxu1 %vm52_vm0, %v5698_v23 }
 0xfd1   :  { %v5685_v24 = vpop.f32.mrb[69].mxu0  ;;  %11097 = vmatpush3.bf16.msra.mxu1 %v12237_v34 }
 0xfd2   :  { %v5699_v1 = vpack.c.bf16 %v11093_v0, %v5685_v24  ;;  %11855 = vmatprep.subr.bf16.mxu1 %v12412_v46 }
 0xfd4   :  { %v11106_v14 = vpop.f32.mrb[72].mxu0 }
 0xfd5   :  { %v5827_v35 = vpop.f32.mrb[73].mxu0  ;;  %v13083_v4 = vadd.f32 %v11106_v14, %v9638_v25 }
 0xfd6   :  { %v13074_v37 = vadd.f32 %v9638_v25, %v5827_v35  ;;  %v11107_v39 = vpop.f32.mrb[74].mxu0 }
 0xfd7   :  { %v5830_v61 = vpop.f32.mrb[75].mxu0  ;;  %v13076_v2 = vadd.f32 %v11107_v39, %v9638_v25  ;;  %v5914_v27 = vmul.f32 %v13083_v4, %v13083_v4  ;;  %v6007_v39 = vld [vmem:[#allocation4 + $0x170] sm:$0x3] }
 0xfd8   :  { %v13078_v19 = vadd.f32 %v9638_v25, %v5830_v61  ;;  %11099 = vmatmul.mubr.msk.bf16.vlgmr.msra.gmra.mrb[84].mxu1 %vm52_vm0, %v5699_v1  ;;  %v5912_v13 = vmul.f32 %v13074_v37, %v13074_v37 }
 0xfd9   :  { %11127 = vmatprep.mubr.msk.f32.mxu1 %vm12413_vm3, %v12414_v47  ;;  %v5915_v48 = vmul.f32 %v13076_v2, %v13076_v2  ;;  %v11853_v7 = vpack.c.bf16 %v13076_v2, %v13083_v4 }
 0xfda   :  { %v11850_v20 = vpack.c.bf16 %v13078_v19, %v13074_v37  ;;  %v5913_v9 = vmul.f32 %v13078_v19, %v13078_v19 }
 0xfdb   :  { %v11859_v41 = vpack.c.bf16 %v5915_v48, %v5914_v27  ;;  %v6184_v48 = vrot.slane %v6007_v39, %v12634_v33 }
 0xfdc   :  { %v11856_v11 = vpack.c.bf16 %v5913_v9, %v5912_v13  ;;  %11851 = vmatpush3.bf16.msra.mxu0 %v11850_v20 }
 0xfdd   :  { %11852 = vmatprep.subr.bf16.mxu0 %v12412_v46 }
 0xfde   :  { %11857 = vmatpush3.bf16.msra.mxu1 %v11856_v11 }
 0xfdf   :  { %11858 = vmatprep.subr.bf16.mxu1 %v12412_v46 }
 0xfe0   :  { %11854 = vmatpush3.bf16.msra.mxu0 %v11853_v7 }
 0xfe1   :  { %11861 = vmatprep.subr.bf16.mxu0 %v12412_v46 }
 0xfe2   :  { %11860 = vmatpush3.bf16.msra.mxu1 %v11859_v41 }
 0xfe3   :  { %11117 = vmatmul.mubr.msk.f32.vlgmr.msra.gmra.mrb[70].mxu0 %vm52_vm0, %v12954_v26  ;;  %11867 = vmatprep.subr.bf16.mxu1 %v12412_v46 }
 0xfe4   :  { %11138 = vmatprep.mubr.msk.f32.mxu0 %vm12413_vm3, %v12414_v47 }
 0xfe5   :  { %11128 = vmatmul.mubr.msk.f32.vlgmr.msra.gmra.mrb[78].mxu1 %vm52_vm0, %v12954_v26 }
 0xfe6   :  { %11149 = vmatprep.mubr.msk.f32.mxu1 %vm12413_vm3, %v12414_v47 }
0x10ab   :  { %v11100_v29 = vpop.f32.mrb[84].mxu1 }
0x10ac   :  { %v5752_v31 = vpop.f32.mrb[85].mxu1  ;;  %v13115_v3 = vadd.f32 %v11100_v29, %v9637_v28 }
0x10ad   :  { %v13109_v32 = vadd.f32 %v9637_v28, %v5752_v31  ;;  %v11101_v36 = vpop.f32.mrb[86].mxu1 }
0x10ae   :  { %v5755_v38 = vpop.f32.mrb[87].mxu1  ;;  %v13111_v40 = vadd.f32 %v11101_v36, %v9637_v28  ;;  %v6080_v53 = vmul.f32 %v13115_v3, %v13115_v3 }
0x10af   :  { %v13113_v21 = vadd.f32 %v9637_v28, %v5755_v38  ;;  %v6078_v49 = vmul.f32 %v13109_v32, %v13109_v32 }
0x10b0   :  { %v6081_v51 = vmul.f32 %v13111_v40, %v13111_v40  ;;  %v11865_v42 = vpack.c.bf16 %v13111_v40, %v13115_v3 }
0x10b1   :  { %v11862_v6 = vpack.c.bf16 %v13113_v21, %v13109_v32  ;;  %v6079_v50 = vmul.f32 %v13113_v21, %v13113_v21 }
0x10b2   :  { %v11871_v54 = vpack.c.bf16 %v6081_v51, %v6080_v53 }
0x10b3   :  { %v11868_v52 = vpack.c.bf16 %v6079_v50, %v6078_v49  ;;  %11863 = vmatpush3.bf16.msra.mxu0 %v11862_v6 }
0x10b4   :  { %11864 = vmatprep.subr.bf16.mxu0 %v12412_v46 }
0x10b5   :  { %11869 = vmatpush3.bf16.msra.mxu1 %v11868_v52 }
0x10b6   :  { %v5908_v56 = vpop.f32.mrb[70].mxu0  ;;  %11870 = vmatprep.subr.bf16.mxu1 %v12412_v46 }
0x10b7   :  { %v5986_v58 = vmul.f32 %v5908_v56, %v5908_v56  ;;  %11866 = vmatpush3.bf16.msra.mxu0 %v11865_v42  ;;  %v11118_v57 = vpop.f32.mrb[71].mxu0  ;;  %v5992_v43 = vrot.slane %v5908_v56, %v12631_v30 }
0x10b8   :  { %v5982_v55 = vpop.f32.mrb[78].mxu1  ;;  %v12332_v57 = vld [vmem:[#allocation4 + $0x8] sm:$0xff] }
0x10b9   :  { %11872 = vmatpush3.bf16.msra.mxu1 %v11871_v54  ;;  %v11129_v59 = vpop.f32.mrb[79].mxu1  ;;  %v5987_v60 = vsub.f32 %v5982_v55, %v5986_v58  ;;  %v5993_v45 = vsub.f32 %v13074_v37, %v5992_v43  ;;  %v5994_v15 = vsub.f32 %v13078_v19, %v5992_v43  ;;  %v5995_v16 = vsub.f32 %v13083_v4, %v5992_v43  ;;  %v13179_v58 = vld [vmem:[#allocation4 + $0x28] sm:$0xff]  ;;  %v13185_v55 = vld [vmem:[#allocation4 + $0x30] sm:$0xff] }
0x10ba   :  { %11139 = vmatmul.mubr.msk.f32.vlgmr.msra.gmra.mrb[76].mxu0 %vm52_vm0, %v12954_v26  ;;  %v5996_v17 = vsub.f32 %v13076_v2, %v5992_v43  ;;  %v6176_v19 = vrot.slane %v6007_v39, %v12631_v30  ;;  %v12334_v59 = vld [vmem:[#allocation4 + $0x10] sm:$0xff] }
0x10bb   :  { %11160 = vmatprep.mubr.msk.f32.mxu0 %vm52_vm0, %v12329_v8  ;;  %v5988_v10 = vmax.f32 %v5987_v60, 0.0  ;;  %v13191_v60 = vld [vmem:[#allocation4 + $0x38] sm:$0xff]  ;;  %v13207_v43 = vld [vmem:[#allocation4 + $0x50] sm:$0xff] }
0x10bc   :  { %11150 = vmatmul.mubr.msk.f32.vlgmr.msra.gmra.mrb[88].mxu1 %vm52_vm0, %v12954_v26  ;;  %v12336_v8 = vld [vmem:[#allocation4 + $0x18] sm:$0xff]  ;;  %v12240_v39 = vld [vmem:[#allocation2 + $0x150] sm:$0xff]  }
0x10bd   :  { %11174 = vmatprep.mubr.msk.f32.mxu1 %vm52_vm0, %v13136_v12  ;;  %v5997_v22 = vadd.f32 1e-05, %v5988_v10  ;;  %v13197_v10 = vld [vmem:[#allocation4 + $0x40] sm:$0xff] }
0x10bf   :  { %12284 = vrsqrt.f32 %v5997_v22  ;;  %v13202_v22 = vld [vmem:[#allocation4 + $0x48] sm:$0xff] }
0x10c9   :  { %v12285_v44 = vpop.eup %12284 }
0x10ca   :  { %v6002_v26 = vrot.slane %v12285_v44, %v12631_v30  ;;  %v13212_v44 = vld [vmem:[#allocation4 + $0x58] sm:$0xff] }
0x10cc   :  { %v6003_v18 = vmul.f32 %v6002_v26, %v5993_v45  ;;  %v6004_v62 = vmul.f32 %v6002_v26, %v5994_v15  ;;  %v6005_v34 = vmul.f32 %v6002_v26, %v5995_v16  ;;  %v6006_v5 = vmul.f32 %v6002_v26, %v5996_v17  ;;  %v13217_v45 = vld [vmem:[#allocation4 + $0x60] sm:$0xff]  ;;  %v13222_v15 = vld [vmem:[#allocation4 + $0x68] sm:$0xff]  ;;  %v13227_v16 = vld [vmem:[#allocation4 + $0x70] sm:$0xff] }
0x10cd   :  { %v13232_v17 = vld [vmem:[#allocation4 + $0x78] sm:$0xff]  ;;  %v13237_v26 = vld [vmem:[#allocation4 + $0x80] sm:$0xff] }
0x118d   :  { %v6074_v63 = vpop.f32.mrb[76].mxu0 }
0x118e   :  { %v6152_v23 = vmul.f32 %v6074_v63, %v6074_v63  ;;  %v11140_v0 = vpop.f32.mrb[77].mxu0  ;;  %v6158_v37 = vrot.slane %v6074_v63, %v12631_v30  ;;  %v12350_v63 = vld [vmem:[#allocation4 + $0xa8] sm:$0xff] }
0x118f   :  { %v6148_v24 = vpop.f32.mrb[88].mxu1  ;;  %v12352_v0 = vld [vmem:[#allocation4 + $0xb8] sm:$0xff] }
0x1190   :  { %v11151_v1 = vpop.f32.mrb[89].mxu1  ;;  %v6153_v25 = vsub.f32 %v6148_v24, %v6152_v23  ;;  %v6159_v2 = vsub.f32 %v13109_v32, %v6158_v37  ;;  %v6160_v4 = vsub.f32 %v13113_v21, %v6158_v37  ;;  %v6161_v13 = vsub.f32 %v13115_v3, %v6158_v37  ;;  %v12351_v23 = vld [vmem:[#allocation4 + $0xb0] sm:$0xff]  ;;  %v12353_v24 = vld [vmem:[#allocation4 + $0xc0] sm:$0xff] }
0x1191   :  { %v6162_v20 = vsub.f32 %v13111_v40, %v6158_v37  ;;  %v12354_v1 = vld [vmem:[#allocation4 + $0xc8] sm:$0xff] }
0x1192   :  { %v6154_v14 = vmax.f32 %v6153_v25, 0.0  ;;  %v12355_v25 = vld [vmem:[#allocation4 + $0xd0] sm:$0xff]  ;;  %v12239_v37 = vld [vmem:[#allocation2 + $0x168] sm:$0xff]  }
0x1194   :  { %v6163_v35 = vadd.f32 1e-05, %v6154_v14  ;;  %v12356_v14 = vld [vmem:[#allocation4 + $0xd8] sm:$0xff] }
0x1196   :  { %12286 = vrsqrt.f32 %v6163_v35  ;;  %v12238_v35 = vld [vmem:[#allocation2 + $0x160] sm:$0xff]  }
0x11a0   :  { %v12287_v61 = vpop.eup %12286 }
0x11a1   :  { %v6168_v9 = vrot.slane %v12287_v61, %v12631_v30 }
0x11a3   :  { %v6169_v11 = vmul.f32 %v6168_v9, %v6159_v2  ;;  %v6170_v27 = vmul.f32 %v6168_v9, %v6160_v4  ;;  %v6171_v7 = vmul.f32 %v6168_v9, %v6161_v13  ;;  %v6172_v41 = vmul.f32 %v6168_v9, %v6162_v20 }
0x11a5   :  { %v6177_v28 = vmul.f32 %v6176_v19, %v6169_v11  ;;  %v6178_v29 = vmul.f32 %v6176_v19, %v6170_v27  ;;  %v6179_v31 = vmul.f32 %v6176_v19, %v6171_v7  ;;  %v6180_v32 = vmul.f32 %v6176_v19, %v6172_v41  ;;  %v12241_v41 = vld [vmem:[#allocation2 + $0x158] sm:$0xff]  }
0x11a7   :  { %v6185_v36 = vadd.f32 %v6184_v48, %v6177_v28  ;;  %v6186_v38 = vadd.f32 %v6184_v48, %v6178_v29  ;;  %v6187_v49 = vadd.f32 %v6184_v48, %v6179_v31  ;;  %v6188_v21 = vadd.f32 %v6184_v48, %v6180_v32  ;;  %v12242_v32 = vld [vmem:[#allocation2 + $0x170] sm:$0xff]  }
0x11a9   :  { %v6189_v6 = vadd.f32 %v6185_v36, %v6003_v18  ;;  %v6190_v3 = vadd.f32 %v6186_v38, %v6004_v62  ;;  %v6191_v50 = vadd.f32 %v6187_v49, %v6005_v34  ;;  %v6192_v40 = vadd.f32 %v6188_v21, %v6006_v5  ;;  %v13242_v18 = vld [vmem:[#allocation4 + $0x88] sm:$0xff]  ;;  %v13247_v62 = vld [vmem:[#allocation4 + $0x90] sm:$0xff]  ;;  %v13252_v34 = vld [vmem:[#allocation4 + $0x98] sm:$0xff] }
0x11aa   :  { %v12349_v5 = vld [vmem:[#allocation4 + $0xa0] sm:$0xff] }
0x11ab   :  { %v13154_v51 = vmax.f32 %v6189_v6, 0.0  ;;  %v13156_v52 = vmax.f32 %v6190_v3, 0.0  ;;  %v13158_v53 = vmax.f32 %v6191_v50, 0.0  ;;  %v13160_v42 = vmax.f32 %v6192_v40, 0.0  ;;  %v12243_v50 = vld [vmem:[#allocation2 + $0x178] sm:$0xff]  }
0x11ad   :  { %v13164_v56 = vpack.c.bf16 %v13156_v52, %v13154_v51  ;;  %v13168_v54 = vpack.c.bf16 %v13160_v42, %v13158_v53 }
0x11af   :  { %11874 = vmatprep.subr.bf16.mxu0 %v13164_v56  ;;  %11882 = vmatprep.subr.bf16.mxu1 %v13164_v56 }
0x11b0   :  { %11876 = vmatpush3.bf16.msra.mxu0 %v13164_v56  ;;  %11884 = vmatpush3.bf16.msra.mxu1 %v13164_v56 }
0x11b1   :  { %11878 = vmatprep.subr.bf16.mxu0 %v13168_v54  ;;  %11886 = vmatprep.subr.bf16.mxu1 %v13168_v54 }
0x11b4   :  { %11880 = vmatpush3.bf16.msra.mxu0 %v13168_v54  ;;  %11888 = vmatpush3.bf16.msra.mxu1 %v13168_v54 }
0x11b5   :  { %11890 = vmatprep.subr.bf16.mxu1 %v13164_v56  ;;  %11180 = vmatprep.subr.bf16.mxu0 %v12238_v35 }
0x11b7   :  { %11175 = vmatmul.mubr.msk.f32.vlgmr.msra.gmra.mrb[90].mxu1 %vm52_vm0, %v13179_v58  ;;  %11161 = vmatmul.mubr.msk.f32.vlgmr.msra.gmra.mrb[78].mxu0 %vm52_vm0, %v12332_v57 }
0x11b8   :  { %11892 = vmatpush3.bf16.msra.mxu1 %v13164_v56  ;;  %11177 = vmatprep.mubr.msk.f32.mxu1 %vm52_vm0, %v13185_v55 }
0x11b9   :  { %11894 = vmatprep.subr.bf16.mxu1 %v13168_v54  ;;  %11163 = vmatprep.mubr.msk.f32.mxu0 %vm52_vm0, %v12334_v59 }
0x11ba   :  { %11181 = vmatpush3.bf16.msra.mxu0 %v12238_v35 }
0x11bb   :  { %11178 = vmatmul.mubr.msk.f32.gmra.mrb[92].mxu1 %vm52_vm0, %v13191_v60  ;;  %11164 = vmatmul.mubr.msk.f32.gmra.mrb[80].mxu0 %vm52_vm0, %v12336_v8  ;;  %v12244_v8 = vld [vmem:[#allocation2 + $0x180] sm:$0xff]  }
0x11bc   :  { %11896 = vmatpush3.bf16.msra.mxu1 %v13168_v54  ;;  %11204 = vmatprep.mubr.msk.f32.mxu1 %vm52_vm0, %v13197_v10 }
0x11bd   :  { %11898 = vmatprep.subr.bf16.mxu1 %v13164_v56  ;;  %11182 = vmatprep.subr.bf16.mxu0 %v12239_v37 }
0x11be   :  { %11183 = vmatpush3.bf16.msra.mxu0 %v12239_v37 }
0x11bf   :  { %11205 = vmatmul.mubr.msk.f32.vlgmr.msra.gmra.mrb[94].mxu1 %vm52_vm0, %v13202_v22  ;;  %11188 = vmatprep.subr.bf16.mxu0 %v12240_v39 }
0x11c0   :  { %11900 = vmatpush3.bf16.msra.mxu1 %v13164_v56  ;;  %11207 = vmatprep.mubr.msk.f32.mxu1 %vm52_vm0, %v13207_v43 }
0x11c1   :  { %11902 = vmatprep.subr.bf16.mxu1 %v13168_v54 }
0x11c3   :  { %11208 = vmatmul.mubr.msk.f32.gmra.mrb[96].mxu1 %vm52_vm0, %v13212_v44 }
0x11c4   :  { %11904 = vmatpush3.bf16.msra.mxu1 %v13168_v54  ;;  %11234 = vmatprep.mubr.msk.f32.mxu1 %vm52_vm0, %v13217_v45 }
0x11c5   :  { %11906 = vmatprep.subr.bf16.mxu1 %v13164_v56 }
0x11c7   :  { %11235 = vmatmul.mubr.msk.f32.vlgmr.msra.gmra.mrb[98].mxu1 %vm52_vm0, %v13222_v15 }
0x11c8   :  { %11908 = vmatpush3.bf16.msra.mxu1 %v13164_v56  ;;  %11237 = vmatprep.mubr.msk.f32.mxu1 %vm52_vm0, %v13227_v16 }
0x11c9   :  { %11910 = vmatprep.subr.bf16.mxu1 %v13168_v54 }
0x11cb   :  { %11238 = vmatmul.mubr.msk.f32.gmra.mrb[100].mxu1 %vm52_vm0, %v13232_v17 }
0x11cc   :  { %11912 = vmatpush3.bf16.msra.mxu1 %v13168_v54  ;;  %11256 = vmatprep.mubr.msk.f32.mxu1 %vm52_vm0, %v13237_v26 }
0x11cd   :  { %11914 = vmatprep.subr.bf16.mxu1 %v13164_v56 }
0x11cf   :  { %11257 = vmatmul.mubr.msk.f32.vlgmr.msra.gmra.mrb[102].mxu1 %vm52_vm0, %v13242_v18 }
0x11d0   :  { %11916 = vmatpush3.bf16.msra.mxu1 %v13164_v56  ;;  %11259 = vmatprep.mubr.msk.f32.mxu1 %vm52_vm0, %v13247_v62 }
0x11d1   :  { %11918 = vmatprep.subr.bf16.mxu1 %v13168_v54 }
0x11d3   :  { %11260 = vmatmul.mubr.msk.f32.gmra.mrb[104].mxu1 %vm52_vm0, %v13252_v34 }
0x11d4   :  { %11920 = vmatpush3.bf16.msra.mxu1 %v13168_v54  ;;  %11278 = vmatprep.mubr.msk.f32.mxu1 %vm52_vm0, %v12349_v5 }
0x11d5   :  { %11922 = vmatprep.subr.bf16.mxu1 %v13164_v56 }
0x11d7   :  { %11279 = vmatmul.mubr.msk.f32.vlgmr.msra.gmra.mrb[106].mxu1 %vm52_vm0, %v12350_v63 }
0x11d8   :  { %11924 = vmatpush3.bf16.msra.mxu1 %v13164_v56  ;;  %11281 = vmatprep.mubr.msk.f32.mxu1 %vm52_vm0, %v12351_v23 }
0x11d9   :  { %11926 = vmatprep.subr.bf16.mxu1 %v13168_v54 }
0x11db   :  { %11282 = vmatmul.mubr.msk.f32.gmra.mrb[108].mxu1 %vm52_vm0, %v12352_v0 }
0x11dc   :  { %11928 = vmatpush3.bf16.msra.mxu1 %v13168_v54  ;;  %11300 = vmatprep.mubr.msk.f32.mxu1 %vm52_vm0, %v12353_v24 }
0x11dd   :  { %11929 = vmatprep.subr.bf16.mxu1 %v12412_v46 }
0x11df   :  { %11301 = vmatmul.mubr.msk.f32.vlgmr.msra.gmra.mrb[110].mxu1 %vm52_vm0, %v12354_v1 }
0x11e0   :  { %11303 = vmatprep.mubr.msk.f32.mxu1 %vm52_vm0, %v12355_v25  ;;  %v12245_v25 = vld [vmem:[#allocation2 + $0x188] sm:$0xff]  }
0x11e3   :  { %11304 = vmatmul.mubr.msk.f32.gmra.mrb[112].mxu1 %vm52_vm0, %v12356_v14 }
0x11e4   :  { %11322 = vmatprep.mubr.msk.f32.mxu1 %vm12413_vm3, %v12414_v47 }
0x128a   :  { %v11176_v61 = vpop.f32.mrb[90].mxu1  ;;  %v11162_v2 = vpop.f32.mrb[78].mxu0 }
0x128b   :  { %v6354_v19 = vpop.f32.mrb[91].mxu1  ;;  %v6263_v4 = vpop.f32.mrb[79].mxu0 }
0x128c   :  { %v6377_v13 = vpack.c.bf16 %v11176_v61, %v6354_v19  ;;  %v6286_v20 = vpack.c.bf16 %v11162_v2, %v6263_v4 }
0x128e   :  { %v11179_v9 = vpop.f32.mrb[92].mxu1  ;;  %11184 = vmatprep.mubr.msk.bf16.mxu0 %vm52_vm0, %v6377_v13  ;;  %v11165_v48 = vpop.f32.mrb[80].mxu0 }
0x128f   :  { %v6364_v11 = vpop.f32.mrb[93].mxu1  ;;  %v6273_v27 = vpop.f32.mrb[81].mxu0 }
0x1290   :  { %v6378_v7 = vpack.c.bf16 %v11179_v9, %v6364_v11  ;;  %v6287_v28 = vpack.c.bf16 %v11165_v48, %v6273_v27  ;;  %v12247_v9 = vld [vmem:[#allocation2 + $0x198] sm:$0xff]  }
0x1292   :  { %11185 = vmatmul.mubr.msk.bf16.vlgmr.msra.gmra.mrb[84].mxu0 %vm52_vm0, %v6378_v7  ;;  %v11206_v29 = vpop.f32.mrb[94].mxu1  ;;  %v12248_v7 = vld [vmem:[#allocation2 + $0x1a0] sm:$0xff]  }
0x1293   :  { %11189 = vmatpush3.bf16.msra.mxu0 %v12240_v39  ;;  %11192 = vmatprep.mubr.msk.bf16.mxu0 %vm52_vm0, %v6286_v20  ;;  %v6579_v31 = vpop.f32.mrb[95].mxu1  ;;  %v12246_v39 = vld [vmem:[#allocation2 + $0x190] sm:$0xff]  }
0x1294   :  { %11190 = vmatprep.subr.bf16.mxu0 %v12241_v41  ;;  %v6602_v36 = vpack.c.bf16 %v11206_v29, %v6579_v31  ;;  %v12250_v29 = vld [vmem:[#allocation2 + $0x1b0] sm:$0xff]   ;;  %v12251_v31 = vld [vmem:[#allocation2 + $0x1b8] sm:$0xff]  }
0x1296   :  { %v11209_v38 = vpop.f32.mrb[96].mxu1 }
0x1297   :  { %11191 = vmatpush3.bf16.msra.mxu0 %v12241_v41  ;;  %v6589_v49 = vpop.f32.mrb[97].mxu1 }
0x1298   :  { %11210 = vmatprep.subr.bf16.mxu0 %v12242_v32  ;;  %v6603_v21 = vpack.c.bf16 %v11209_v38, %v6589_v49  ;;  %v9706_v49 = vld [vmem:[#allocation4 + $0x130] ss:$0 sm:$0xff] }
0x129a   :  { %v11236_v6 = vpop.f32.mrb[98].mxu1 }
0x129b   :  { %v6818_v3 = vpop.f32.mrb[99].mxu1 }
0x129c   :  { %v6841_v40 = vpack.c.bf16 %v11236_v6, %v6818_v3 }
0x129e   :  { %11193 = vmatmul.mubr.msk.bf16.vlgmr.msra.gmra.mrb[84].mxu0 %vm52_vm0, %v6287_v28  ;;  %v11239_v57 = vpop.f32.mrb[100].mxu1  ;;  %v12249_v28 = vld [vmem:[#allocation2 + $0x1a8] sm:$0xff]  }
0x129f   :  { %11211 = vmatpush3.bf16.msra.mxu0 %v12242_v32  ;;  %11214 = vmatprep.mubr.msk.bf16.mxu0 %vm52_vm0, %v6602_v36  ;;  %v6828_v59 = vpop.f32.mrb[101].mxu1  ;;  %v12252_v32 = vld [vmem:[#allocation2 + $0x1c0] sm:$0xff]   ;;  %v12253_v36 = vld [vmem:[#allocation2 + $0x1c8] sm:$0xff]  }
0x12a0   :  { %11212 = vmatprep.subr.bf16.mxu0 %v12243_v50  ;;  %v6842_v5 = vpack.c.bf16 %v11239_v57, %v6828_v59 }
0x12a2   :  { %v11258_v63 = vpop.f32.mrb[102].mxu1 }
0x12a3   :  { %11213 = vmatpush3.bf16.msra.mxu0 %v12243_v50  ;;  %v6980_v23 = vpop.f32.mrb[103].mxu1 }
0x12a4   :  { %11218 = vmatprep.subr.bf16.mxu0 %v12244_v8  ;;  %v7003_v0 = vpack.c.bf16 %v11258_v63, %v6980_v23 }
0x12a6   :  { %v11261_v24 = vpop.f32.mrb[104].mxu1 }
0x12a7   :  { %v6990_v1 = vpop.f32.mrb[105].mxu1 }
0x12a8   :  { %v7004_v14 = vpack.c.bf16 %v11261_v24, %v6990_v1  ;;  %v13294_v1 = vld [vmem:[#allocation4 + $0xe0] sm:$0xff] }
0x12aa   :  { %11215 = vmatmul.mubr.msk.bf16.vlgmr.msra.gmra.mrb[84].mxu0 %vm52_vm0, %v6603_v21  ;;  %v11280_v35 = vpop.f32.mrb[106].mxu1 }
0x12ab   :  { %11219 = vmatpush3.bf16.msra.mxu0 %v12244_v8  ;;  %11222 = vmatprep.mubr.msk.bf16.mxu0 %vm52_vm0, %v13164_v56  ;;  %v7142_v37 = vpop.f32.mrb[107].mxu1 }
0x12ac   :  { %11220 = vmatprep.subr.bf16.mxu0 %v12245_v25  ;;  %v7165_v61 = vpack.c.bf16 %v11280_v35, %v7142_v37 }
0x12ae   :  { %v11283_v2 = vpop.f32.mrb[108].mxu1 }
0x12af   :  { %11221 = vmatpush3.bf16.msra.mxu0 %v12245_v25  ;;  %v7152_v19 = vpop.f32.mrb[109].mxu1 }
0x12b0   :  { %11240 = vmatprep.subr.bf16.mxu0 %v12246_v39  ;;  %v7166_v4 = vpack.c.bf16 %v11283_v2, %v7152_v19 }
0x12b2   :  { %v11302_v13 = vpop.f32.mrb[110].mxu1 }
0x12b3   :  { %v7304_v20 = vpop.f32.mrb[111].mxu1 }
0x12b4   :  { %v7327_v48 = vpack.c.bf16 %v11302_v13, %v7304_v20 }
0x12b6   :  { %11223 = vmatmul.mubr.msk.bf16.vlgmr.msra.gmra.mrb[84].mxu0 %vm52_vm0, %v13168_v54  ;;  %v11305_v11 = vpop.f32.mrb[112].mxu1 }
0x12b7   :  { %11241 = vmatpush3.bf16.msra.mxu0 %v12246_v39  ;;  %11244 = vmatprep.mubr.msk.bf16.mxu0 %vm52_vm0, %v6841_v40  ;;  %v7314_v27 = vpop.f32.mrb[113].mxu1 }
0x12b8   :  { %11242 = vmatprep.subr.bf16.mxu0 %v12247_v9  ;;  %v7328_v41 = vpack.c.bf16 %v11305_v11, %v7314_v27 }
0x12bb   :  { %11243 = vmatpush3.bf16.msra.mxu0 %v12247_v9  ;;  %v7409_v9 = vld [vmem:[#allocation4 + $0x178] sm:$0x3] }
0x12bc   :  { %11262 = vmatprep.subr.bf16.mxu0 %v12248_v7  ;;  %v7578_v27 = vrot.slane %v7409_v9, %v12631_v30 }
0x12c2   :  { %11245 = vmatmul.mubr.msk.bf16.vlgmr.msra.gmra.mrb[84].mxu0 %vm52_vm0, %v6842_v5 }
0x12c3   :  { %11263 = vmatpush3.bf16.msra.mxu0 %v12248_v7  ;;  %11266 = vmatprep.mubr.msk.bf16.mxu0 %vm52_vm0, %v7003_v0 }
0x12c4   :  { %11264 = vmatprep.subr.bf16.mxu0 %v12249_v28 }
0x12c7   :  { %11265 = vmatpush3.bf16.msra.mxu0 %v12249_v28 }
0x12c8   :  { %11284 = vmatprep.subr.bf16.mxu0 %v12250_v29 }
0x12ce   :  { %11267 = vmatmul.mubr.msk.bf16.vlgmr.msra.gmra.mrb[84].mxu0 %vm52_vm0, %v7004_v14 }
0x12cf   :  { %11285 = vmatpush3.bf16.msra.mxu0 %v12250_v29  ;;  %11288 = vmatprep.mubr.msk.bf16.mxu0 %vm52_vm0, %v7165_v61  ;;  %v7586_v29 = vrot.slane %v7409_v9, %v12634_v33  ;;  %v12258_v9 = vld [vmem:[#allocation2 + $0x1f0] sm:$0xff]  }
0x12d0   :  { %11286 = vmatprep.subr.bf16.mxu0 %v12251_v31 }
0x12d3   :  { %11287 = vmatpush3.bf16.msra.mxu0 %v12251_v31 }
0x12d4   :  { %11306 = vmatprep.subr.bf16.mxu0 %v12252_v32 }
0x12da   :  { %11289 = vmatmul.mubr.msk.bf16.vlgmr.msra.gmra.mrb[84].mxu0 %vm52_vm0, %v7166_v4 }
0x12db   :  { %11307 = vmatpush3.bf16.msra.mxu0 %v12252_v32  ;;  %11310 = vmatprep.mubr.msk.bf16.mxu0 %vm52_vm0, %v7327_v48 }
0x12dc   :  { %11308 = vmatprep.subr.bf16.mxu0 %v12253_v36 }
0x12df   :  { %11309 = vmatpush3.bf16.msra.mxu0 %v12253_v36 }
0x12e6   :  { %11311 = vmatmul.mubr.msk.bf16.vlgmr.msra.gmra.mrb[84].mxu0 %vm52_vm0, %v7328_v41 }
0x12e7   :  { %11358 = vmatprep.mubr.msk.f32.mxu0 %vm52_vm0, %v13197_v10 }
0x13b9   :  { %v11312_v38 = vpop.f32.mrb[84].mxu0 }
0x13ba   :  { %v7381_v21 = vpop.f32.mrb[85].mxu0  ;;  %v7407_v8 = vadd.f32 %v11312_v38, %v9706_v49 }
0x13bb   :  { %v11313_v6 = vpop.f32.mrb[86].mxu0  ;;  %v7405_v50 = vadd.f32 %v9706_v49, %v7381_v21 }
0x13bc   :  { %v7384_v3 = vpop.f32.mrb[87].mxu0  ;;  %v7408_v57 = vadd.f32 %v11313_v6, %v9706_v49  ;;  %v7482_v25 = vmul.f32 %v7407_v8, %v7407_v8 }
0x13bd   :  { %v7406_v40 = vadd.f32 %v9706_v49, %v7384_v3  ;;  %v7480_v23 = vmul.f32 %v7405_v50, %v7405_v50 }
0x13be   :  { %v11933_v5 = vpack.c.bf16 %v7408_v57, %v7407_v8  ;;  %v7483_v0 = vmul.f32 %v7408_v57, %v7408_v57 }
0x13bf   :  { %v11930_v59 = vpack.c.bf16 %v7406_v40, %v7405_v50  ;;  %v7481_v63 = vmul.f32 %v7406_v40, %v7406_v40 }
0x13c0   :  { %v11939_v14 = vpack.c.bf16 %v7483_v0, %v7482_v25 }
0x13c1   :  { %11931 = vmatpush3.bf16.msra.mxu1 %v11930_v59  ;;  %v11936_v24 = vpack.c.bf16 %v7481_v63, %v7480_v23 }
0x13c2   :  { %11932 = vmatprep.subr.bf16.mxu1 %v12412_v46 }
0x13c5   :  { %11934 = vmatpush3.bf16.msra.mxu1 %v11933_v5 }
0x13c6   :  { %11935 = vmatprep.subr.bf16.mxu1 %v12412_v46 }
0x13c8   :  { %11323 = vmatmul.mubr.msk.f32.vlgmr.msra.gmra.mrb[114].mxu1 %vm52_vm0, %v13294_v1 }
0x13c9   :  { %11937 = vmatpush3.bf16.msra.mxu1 %v11936_v24  ;;  %11333 = vmatprep.mubr.msk.f32.mxu1 %vm12413_vm3, %v12414_v47 }
0x13ca   :  { %11938 = vmatprep.subr.bf16.mxu1 %v12412_v46 }
0x13cd   :  { %11940 = vmatpush3.bf16.msra.mxu1 %v11939_v14 }
0x13d0   :  { %11334 = vmatmul.mubr.msk.f32.vlgmr.msra.gmra.mrb[116].mxu1 %vm52_vm0, %v13294_v1 }
0x13d1   :  { %11344 = vmatprep.mubr.msk.f32.mxu1 %vm52_vm0, %v13136_v12 }
0x149b   :  { %v7476_v35 = vpop.f32.mrb[114].mxu1 }
0x149c   :  { %v11324_v37 = vpop.f32.mrb[115].mxu1  ;;  %v7554_v39 = vmul.f32 %v7476_v35, %v7476_v35  ;;  %v7560_v20 = vrot.slane %v7476_v35, %v12631_v30 }
0x149e   :  { %v7561_v11 = vsub.f32 %v7405_v50, %v7560_v20  ;;  %v7562_v7 = vsub.f32 %v7406_v40, %v7560_v20  ;;  %v7563_v41 = vsub.f32 %v7407_v8, %v7560_v20  ;;  %v7564_v28 = vsub.f32 %v7408_v57, %v7560_v20 }
0x14a3   :  { %v7550_v61 = vpop.f32.mrb[116].mxu1 }
0x14a4   :  { %v7555_v2 = vsub.f32 %v7550_v61, %v7554_v39  ;;  %v11335_v19 = vpop.f32.mrb[117].mxu1 }
0x14a5   :  { %v12257_v19 = vld [vmem:[#allocation2 + $0x1d8] sm:$0xff]  }
0x14a6   :  { %v7556_v4 = vmax.f32 %v7555_v2, 0.0 }
0x14a8   :  { %v7565_v13 = vadd.f32 1e-05, %v7556_v4 }
0x14aa   :  { %12288 = vrsqrt.f32 %v7565_v13 }
0x14b4   :  { %v12289_v48 = vpop.eup %12288 }
0x14b5   :  { %v7570_v12 = vrot.slane %v12289_v48, %v12631_v30 }
0x14b7   :  { %v7571_v31 = vmul.f32 %v7570_v12, %v7561_v11  ;;  %v7572_v32 = vmul.f32 %v7570_v12, %v7562_v7  ;;  %v7573_v36 = vmul.f32 %v7570_v12, %v7563_v41  ;;  %v7574_v38 = vmul.f32 %v7570_v12, %v7564_v28  ;;  %v12259_v12 = vld [vmem:[#allocation2 + $0x1f8] sm:$0xff]  }
0x14b9   :  { %v7579_v49 = vmul.f32 %v7578_v27, %v7571_v31  ;;  %v7580_v21 = vmul.f32 %v7578_v27, %v7572_v32  ;;  %v7581_v6 = vmul.f32 %v7578_v27, %v7573_v36  ;;  %v7582_v3 = vmul.f32 %v7578_v27, %v7574_v38  ;;  %v12260_v36 = vld [vmem:[#allocation2 + $0x200] sm:$0xff]  }
0x14bb   :  { %v7587_v59 = vadd.f32 %v7586_v29, %v7579_v49  ;;  %v7588_v5 = vadd.f32 %v7586_v29, %v7580_v21  ;;  %v7589_v50 = vadd.f32 %v7586_v29, %v7581_v6  ;;  %v7590_v63 = vadd.f32 %v7586_v29, %v7582_v3  ;;  %v12261_v49 = vld [vmem:[#allocation2 + $0x208] sm:$0xff]   ;;  %v12262_v21 = vld [vmem:[#allocation2 + $0x210] sm:$0xff]   ;;  %v12263_v6 = vld [vmem:[#allocation2 + $0x218] sm:$0xff]  }
0x14bd   :  { %v7591_v23 = vmax.f32 %v7587_v59, 0.0  ;;  %v7592_v40 = vmax.f32 %v7588_v5, 0.0  ;;  %v7593_v8 = vmax.f32 %v7589_v50, 0.0  ;;  %v7594_v57 = vmax.f32 %v7590_v63, 0.0  ;;  %v9745_v59 = vld [vmem:[#allocation4 + $0x138] ss:$0 sm:$0xff] }
0x14bf   :  { %v13309_v0 = vpack.c.bf16 %v7592_v40, %v7591_v23  ;;  %v13311_v24 = vpack.c.bf16 %v7594_v57, %v7593_v8 }
0x14c1   :  { %11942 = vmatprep.subr.bf16.mxu1 %v13309_v0  ;;  %11950 = vmatprep.subr.bf16.mxu0 %v13309_v0 }
0x14c2   :  { %11944 = vmatpush3.bf16.msra.mxu1 %v13309_v0  ;;  %11952 = vmatpush3.bf16.msra.mxu0 %v13309_v0 }
0x14c3   :  { %11946 = vmatprep.subr.bf16.mxu1 %v13311_v24  ;;  %11954 = vmatprep.subr.bf16.mxu0 %v13311_v24 }
0x14c6   :  { %11948 = vmatpush3.bf16.msra.mxu1 %v13311_v24  ;;  %11956 = vmatpush3.bf16.msra.mxu0 %v13311_v24 }
0x14c7   :  { %11958 = vmatprep.subr.bf16.mxu0 %v13309_v0 }
0x14c9   :  { %11359 = vmatmul.mubr.msk.f32.vlgmr.msra.gmra.mrb[82].mxu0 %vm52_vm0, %v13202_v22  ;;  %11345 = vmatmul.mubr.msk.f32.vlgmr.msra.gmra.mrb[118].mxu1 %vm52_vm0, %v13179_v58  ;;  %v12254_v58 = vld [vmem:[#allocation2 + $0x1e0] sm:$0xff]  }
0x14ca   :  { %11960 = vmatpush3.bf16.msra.mxu0 %v13309_v0  ;;  %11361 = vmatprep.mubr.msk.f32.mxu0 %vm52_vm0, %v13207_v43 }
0x14cb   :  { %11962 = vmatprep.subr.bf16.mxu0 %v13311_v24  ;;  %11347 = vmatprep.mubr.msk.f32.mxu1 %vm52_vm0, %v13185_v55  ;;  %v12255_v55 = vld [vmem:[#allocation2 + $0x1e8] sm:$0xff]  }
0x14cc   :  { %11364 = vmatprep.subr.bf16.mxu1 %v12254_v58 }
0x14cd   :  { %11362 = vmatmul.mubr.msk.f32.gmra.mrb[88].mxu0 %vm52_vm0, %v13212_v44  ;;  %11348 = vmatmul.mubr.msk.f32.gmra.mrb[120].mxu1 %vm52_vm0, %v13191_v60  ;;  %v12256_v60 = vld [vmem:[#allocation2 + $0x1d0] sm:$0xff]  }
0x14ce   :  { %11964 = vmatpush3.bf16.msra.mxu0 %v13311_v24  ;;  %11396 = vmatprep.mubr.msk.f32.mxu0 %vm52_vm0, %v13217_v45 }
0x14cf   :  { %11966 = vmatprep.subr.bf16.mxu0 %v13309_v0  ;;  %11365 = vmatpush3.bf16.msra.mxu1 %v12254_v58 }
0x14d0   :  { %11366 = vmatprep.subr.bf16.mxu1 %v12255_v55 }
0x14d1   :  { %11397 = vmatmul.mubr.msk.f32.vlgmr.msra.gmra.mrb[90].mxu0 %vm52_vm0, %v13222_v15 }
0x14d2   :  { %11968 = vmatpush3.bf16.msra.mxu0 %v13309_v0  ;;  %11399 = vmatprep.mubr.msk.f32.mxu0 %vm52_vm0, %v13227_v16 }
0x14d3   :  { %11970 = vmatprep.subr.bf16.mxu0 %v13311_v24  ;;  %11367 = vmatpush3.bf16.msra.mxu1 %v12255_v55 }
0x14d4   :  { %11372 = vmatprep.subr.bf16.mxu1 %v12256_v60 }
0x14d5   :  { %11400 = vmatmul.mubr.msk.f32.gmra.mrb[92].mxu0 %vm52_vm0, %v13232_v17 }
0x14d6   :  { %11972 = vmatpush3.bf16.msra.mxu0 %v13311_v24  ;;  %11418 = vmatprep.mubr.msk.f32.mxu0 %vm52_vm0, %v13237_v26 }
0x14d7   :  { %11973 = vmatprep.subr.bf16.mxu0 %v12412_v46 }
0x14d9   :  { %11419 = vmatmul.mubr.msk.f32.vlgmr.msra.gmra.mrb[94].mxu0 %vm52_vm0, %v13242_v18 }
0x14da   :  { %11421 = vmatprep.mubr.msk.f32.mxu0 %vm52_vm0, %v13247_v62 }
0x14dd   :  { %11422 = vmatmul.mubr.msk.f32.gmra.mrb[96].mxu0 %vm52_vm0, %v13252_v34 }
0x14de   :  { %11440 = vmatprep.mubr.msk.f32.mxu0 %vm12413_vm3, %v12414_v47 }
0x159c   :  { %v11360_v26 = vpop.f32.mrb[82].mxu0  ;;  %v11346_v25 = vpop.f32.mrb[118].mxu1 }
0x159d   :  { %v7752_v18 = vpop.f32.mrb[83].mxu0  ;;  %v7661_v14 = vpop.f32.mrb[119].mxu1 }
0x159e   :  { %v7775_v35 = vpack.c.bf16 %v11360_v26, %v7752_v18  ;;  %v7684_v62 = vpack.c.bf16 %v11346_v25, %v7661_v14  ;;  %v12264_v14 = vld [vmem:[#allocation2 + $0x230] sm:$0xff]  }
0x15a0   :  { %v11363_v37 = vpop.f32.mrb[88].mxu0  ;;  %11368 = vmatprep.mubr.msk.bf16.mxu1 %vm52_vm0, %v7775_v35  ;;  %v11349_v34 = vpop.f32.mrb[120].mxu1  ;;  %v12265_v35 = vld [vmem:[#allocation2 + $0x238] sm:$0xff]  }
0x15a1   :  { %v7762_v39 = vpop.f32.mrb[89].mxu0  ;;  %v7671_v61 = vpop.f32.mrb[121].mxu1 }
0x15a2   :  { %v7776_v2 = vpack.c.bf16 %v11363_v37, %v7762_v39  ;;  %v7685_v4 = vpack.c.bf16 %v11349_v34, %v7671_v61 }
0x15a4   :  { %11369 = vmatmul.mubr.msk.bf16.vlgmr.msra.gmra.mrb[124].mxu1 %vm52_vm0, %v7776_v2  ;;  %v11398_v13 = vpop.f32.mrb[90].mxu0 }
0x15a5   :  { %11373 = vmatpush3.bf16.msra.mxu1 %v12256_v60  ;;  %11376 = vmatprep.mubr.msk.bf16.mxu1 %vm52_vm0, %v7684_v62  ;;  %v8054_v20 = vpop.f32.mrb[91].mxu0  ;;  %v12266_v62 = vld [vmem:[#allocation2 + $0x220] sm:$0xff]  }
0x15a6   :  { %11374 = vmatprep.subr.bf16.mxu1 %v12257_v19  ;;  %v8077_v48 = vpack.c.bf16 %v11398_v13, %v8054_v20 }
0x15a8   :  { %v11401_v11 = vpop.f32.mrb[92].mxu0 }
0x15a9   :  { %11375 = vmatpush3.bf16.msra.mxu1 %v12257_v19  ;;  %v8064_v27 = vpop.f32.mrb[93].mxu0 }
0x15aa   :  { %11380 = vmatprep.subr.bf16.mxu1 %v12258_v9  ;;  %v8078_v7 = vpack.c.bf16 %v11401_v11, %v8064_v27 }
0x15ac   :  { %v11420_v41 = vpop.f32.mrb[94].mxu0 }
0x15ad   :  { %v8216_v28 = vpop.f32.mrb[95].mxu0 }
0x15ae   :  { %v8239_v29 = vpack.c.bf16 %v11420_v41, %v8216_v28 }
0x15b0   :  { %11377 = vmatmul.mubr.msk.bf16.vlgmr.msra.gmra.mrb[124].mxu1 %vm52_vm0, %v7685_v4  ;;  %v11423_v31 = vpop.f32.mrb[96].mxu0 }
0x15b1   :  { %11381 = vmatpush3.bf16.msra.mxu1 %v12258_v9  ;;  %11384 = vmatprep.mubr.msk.bf16.mxu1 %vm52_vm0, %v13309_v0  ;;  %v8226_v32 = vpop.f32.mrb[97].mxu0 }
0x15b2   :  { %11382 = vmatprep.subr.bf16.mxu1 %v12259_v12  ;;  %v8240_v38 = vpack.c.bf16 %v11423_v31, %v8226_v32 }
0x15b5   :  { %11383 = vmatpush3.bf16.msra.mxu1 %v12259_v12 }
0x15b6   :  { %11402 = vmatprep.subr.bf16.mxu1 %v12260_v36 }
0x15bc   :  { %11385 = vmatmul.mubr.msk.bf16.vlgmr.msra.gmra.mrb[124].mxu1 %vm52_vm0, %v13311_v24 }
0x15bd   :  { %11403 = vmatpush3.bf16.msra.mxu1 %v12260_v36  ;;  %11406 = vmatprep.mubr.msk.bf16.mxu1 %vm52_vm0, %v8077_v48 }
0x15be   :  { %11404 = vmatprep.subr.bf16.mxu1 %v12261_v49 }
0x15c1   :  { %11405 = vmatpush3.bf16.msra.mxu1 %v12261_v49 }
0x15c2   :  { %11424 = vmatprep.subr.bf16.mxu1 %v12262_v21 }
0x15c8   :  { %11407 = vmatmul.mubr.msk.bf16.vlgmr.msra.gmra.mrb[124].mxu1 %vm52_vm0, %v8078_v7 }
0x15c9   :  { %11425 = vmatpush3.bf16.msra.mxu1 %v12262_v21  ;;  %11428 = vmatprep.mubr.msk.bf16.mxu1 %vm52_vm0, %v8239_v29 }
0x15ca   :  { %11426 = vmatprep.subr.bf16.mxu1 %v12263_v6 }
0x15cd   :  { %11427 = vmatpush3.bf16.msra.mxu1 %v12263_v6 }
0x15ce   :  { %11468 = vmatprep.subr.bf16.mxu1 %v12264_v14 }
0x15d4   :  { %11429 = vmatmul.mubr.msk.bf16.vlgmr.msra.gmra.mrb[124].mxu1 %vm52_vm0, %v8240_v38 }
0x15d5   :  { %11469 = vmatpush3.bf16.msra.mxu1 %v12264_v14 }
0x15d6   :  { %11470 = vmatprep.subr.bf16.mxu1 %v12265_v35 }
0x15d9   :  { %11471 = vmatpush3.bf16.msra.mxu1 %v12265_v35 }
0x15da   :  { %11476 = vmatprep.subr.bf16.mxu1 %v12266_v62 }
0x16a7   :  { %v11430_v3 = vpop.f32.mrb[124].mxu1 }
0x16a8   :  { %v8293_v5 = vpop.f32.mrb[125].mxu1  ;;  %v8319_v0 = vadd.f32 %v11430_v3, %v9745_v59 }
0x16a9   :  { %v11431_v50 = vpop.f32.mrb[126].mxu1  ;;  %v8317_v23 = vadd.f32 %v9745_v59, %v8293_v5 }
0x16aa   :  { %v8296_v63 = vpop.f32.mrb[127].mxu1  ;;  %v8320_v8 = vadd.f32 %v11431_v50, %v9745_v59  ;;  %v8394_v25 = vmul.f32 %v8319_v0, %v8319_v0 }
0x16ab   :  { %v8318_v40 = vadd.f32 %v9745_v59, %v8296_v63  ;;  %v8392_v55 = vmul.f32 %v8317_v23, %v8317_v23 }
0x16ac   :  { %v11977_v24 = vpack.c.bf16 %v8320_v8, %v8319_v0  ;;  %v8395_v60 = vmul.f32 %v8320_v8, %v8320_v8 }
0x16ad   :  { %v11974_v57 = vpack.c.bf16 %v8318_v40, %v8317_v23  ;;  %v8393_v58 = vmul.f32 %v8318_v40, %v8318_v40 }
0x16ae   :  { %v11983_v18 = vpack.c.bf16 %v8395_v60, %v8394_v25  ;;  %v12269_v25 = vld [vmem:[#allocation2 + $0x248] sm:$0xff]  }
0x16af   :  { %11975 = vmatpush3.bf16.msra.mxu0 %v11974_v57  ;;  %v11980_v26 = vpack.c.bf16 %v8393_v58, %v8392_v55 }
0x16b0   :  { %11976 = vmatprep.subr.bf16.mxu0 %v12412_v46 }
0x16b3   :  { %11978 = vmatpush3.bf16.msra.mxu0 %v11977_v24 }
0x16b4   :  { %11979 = vmatprep.subr.bf16.mxu0 %v12412_v46 }
0x16b6   :  { %11441 = vmatmul.mubr.msk.f32.vlgmr.msra.gmra.mrb[98].mxu0 %vm52_vm0, %v13294_v1 }
0x16b7   :  { %11981 = vmatpush3.bf16.msra.mxu0 %v11980_v26  ;;  %11451 = vmatprep.mubr.msk.f32.mxu0 %vm12413_vm3, %v12414_v47 }
0x16b8   :  { %11982 = vmatprep.subr.bf16.mxu0 %v12412_v46 }
0x16bb   :  { %11984 = vmatpush3.bf16.msra.mxu0 %v11983_v18 }
0x16be   :  { %11452 = vmatmul.mubr.msk.f32.vlgmr.msra.gmra.mrb[100].mxu0 %vm52_vm0, %v13294_v1 }
0x16bf   :  { %11462 = vmatprep.mubr.msk.f32.mxu0 %vm52_vm0, %v13197_v10  ;;  %v8321_v10 = vld [vmem:[#allocation4 + $0x180] sm:$0x3] }
0x16c0   :  { %v8490_v11 = vrot.slane %v8321_v10, %v12631_v30  ;;  %v8498_v12 = vrot.slane %v8321_v10, %v12634_v33 }
0x1789   :  { %v8388_v37 = vpop.f32.mrb[98].mxu0 }
0x178a   :  { %v11442_v34 = vpop.f32.mrb[99].mxu0  ;;  %v8466_v39 = vmul.f32 %v8388_v37, %v8388_v37  ;;  %v8472_v20 = vrot.slane %v8388_v37, %v12631_v30 }
0x178c   :  { %v8473_v48 = vsub.f32 %v8317_v23, %v8472_v20  ;;  %v8474_v27 = vsub.f32 %v8318_v40, %v8472_v20  ;;  %v8475_v7 = vsub.f32 %v8319_v0, %v8472_v20  ;;  %v8476_v41 = vsub.f32 %v8320_v8, %v8472_v20 }
0x1791   :  { %v8462_v61 = vpop.f32.mrb[100].mxu0 }
0x1792   :  { %v8467_v2 = vsub.f32 %v8462_v61, %v8466_v39  ;;  %v11453_v19 = vpop.f32.mrb[101].mxu0 }
0x1794   :  { %v8468_v4 = vmax.f32 %v8467_v2, 0.0 }
0x1796   :  { %v8477_v13 = vadd.f32 1e-05, %v8468_v4 }
0x1798   :  { %12290 = vrsqrt.f32 %v8477_v13 }
0x17a2   :  { %v12291_v9 = vpop.eup %12290 }
0x17a3   :  { %v8482_v28 = vrot.slane %v12291_v9, %v12631_v30 }
0x17a5   :  { %v8483_v29 = vmul.f32 %v8482_v28, %v8473_v48  ;;  %v8484_v31 = vmul.f32 %v8482_v28, %v8474_v27  ;;  %v8485_v32 = vmul.f32 %v8482_v28, %v8475_v7  ;;  %v8486_v36 = vmul.f32 %v8482_v28, %v8476_v41 }
0x17a7   :  { %v8491_v38 = vmul.f32 %v8490_v11, %v8483_v29  ;;  %v8492_v49 = vmul.f32 %v8490_v11, %v8484_v31  ;;  %v8493_v21 = vmul.f32 %v8490_v11, %v8485_v32  ;;  %v8494_v6 = vmul.f32 %v8490_v11, %v8486_v36  ;;  %v9768_v36 = vld [vmem:[#allocation4 + $0x140] ss:$0 sm:$0xff] }
0x17a9   :  { %v8499_v3 = vadd.f32 %v8498_v12, %v8491_v38  ;;  %v8500_v59 = vadd.f32 %v8498_v12, %v8492_v49  ;;  %v8501_v5 = vadd.f32 %v8498_v12, %v8493_v21  ;;  %v8502_v50 = vadd.f32 %v8498_v12, %v8494_v6 }
0x17ab   :  { %v8503_v63 = vmax.f32 %v8499_v3, 0.0  ;;  %v8504_v23 = vmax.f32 %v8500_v59, 0.0  ;;  %v8505_v40 = vmax.f32 %v8501_v5, 0.0  ;;  %v8506_v8 = vmax.f32 %v8502_v50, 0.0 }
0x17ad   :  { %v11985_v57 = vpack.c.bf16 %v8504_v23, %v8503_v63  ;;  %v11989_v0 = vpack.c.bf16 %v8506_v8, %v8505_v40 }
0x17af   :  { %11986 = vmatprep.subr.bf16.mxu0 %v11985_v57  ;;  %11472 = vmatprep.mubr.msk.bf16.mxu1 %vm52_vm0, %v11985_v57 }
0x17b0   :  { %11988 = vmatpush3.bf16.msra.mxu0 %v11985_v57  ;;  %11473 = vmatmul.mubr.msk.bf16.vlgmr.msra.gmra.mrb[128].mxu1 %vm52_vm0, %v11989_v0 }
0x17b1   :  { %11990 = vmatprep.subr.bf16.mxu0 %v11989_v0  ;;  %11477 = vmatpush3.bf16.msra.mxu1 %v12266_v62 }
0x17b4   :  { %11992 = vmatpush3.bf16.msra.mxu0 %v11989_v0 }
0x17b5   :  { %11994 = vmatprep.subr.bf16.mxu0 %v11985_v57 }
0x17b7   :  { %11463 = vmatmul.mubr.msk.f32.vlgmr.msra.gmra.mrb[102].mxu0 %vm52_vm0, %v13202_v22  ;;  %v8979_v22 = vmul.f32 %v13154_v51, %v13154_v51 }
0x17b8   :  { %11996 = vmatpush3.bf16.msra.mxu0 %v11985_v57  ;;  %11465 = vmatprep.mubr.msk.f32.mxu0 %vm52_vm0, %v13207_v43  ;;  %v8980_v43 = vmul.f32 %v13156_v52, %v13156_v52  ;;  %v12270_v57 = vld [vmem:[#allocation2 + $0x250] sm:$0xff]  }
0x17b9   :  { %11998 = vmatprep.subr.bf16.mxu0 %v11989_v0 }
0x17bb   :  { %11466 = vmatmul.mubr.msk.f32.gmra.mrb[104].mxu0 %vm52_vm0, %v13212_v44  ;;  %v8981_v44 = vmul.f32 %v13158_v53, %v13158_v53 }
0x17bc   :  { %12000 = vmatpush3.bf16.msra.mxu0 %v11989_v0  ;;  %11492 = vmatprep.mubr.msk.f32.mxu0 %vm52_vm0, %v13217_v45  ;;  %v8982_v45 = vmul.f32 %v13160_v42, %v13160_v42 }
0x17bd   :  { %12001 = vmatprep.subr.bf16.mxu0 %v12412_v46 }
0x17bf   :  { %11493 = vmatmul.mubr.msk.f32.vlgmr.msra.gmra.mrb[106].mxu0 %vm52_vm0, %v13222_v15  ;;  %v12267_v15 = vld [vmem:[#allocation2 + $0x228] sm:$0xff]  }
0x17c0   :  { %12003 = vmatpush3.bf16.msra.mxu0 %v13164_v56  ;;  %11495 = vmatprep.mubr.msk.f32.mxu0 %vm52_vm0, %v13227_v16  ;;  %v12008_v56 = vpack.c.bf16 %v8980_v43, %v8979_v22  ;;  %v12268_v16 = vld [vmem:[#allocation2 + $0x240] sm:$0xff]  }
0x17c1   :  { %12004 = vmatprep.subr.bf16.mxu0 %v12412_v46  ;;  %11478 = vmatprep.subr.bf16.mxu1 %v12267_v15 }
0x17c2   :  { %11479 = vmatpush3.bf16.msra.mxu1 %v12267_v15 }
0x17c3   :  { %11496 = vmatmul.mubr.msk.f32.gmra.mrb[108].mxu0 %vm52_vm0, %v13232_v17  ;;  %11498 = vmatprep.subr.bf16.mxu1 %v12268_v16 }
0x17c4   :  { %12006 = vmatpush3.bf16.msra.mxu0 %v13168_v54  ;;  %11514 = vmatprep.mubr.msk.f32.mxu0 %vm12413_vm3, %v12414_v47  ;;  %v12011_v54 = vpack.c.bf16 %v8982_v45, %v8981_v44 }
0x17c5   :  { %12007 = vmatprep.subr.bf16.mxu0 %v12412_v46 }
0x17c7   :  { %11515 = vmatmul.mubr.msk.f32.vlgmr.msra.gmra.mrb[110].mxu0 %vm52_vm0, %v13294_v1 }
0x17c8   :  { %12009 = vmatpush3.bf16.msra.mxu0 %v12008_v56  ;;  %11525 = vmatprep.mubr.msk.f32.mxu0 %vm12413_vm3, %v12414_v47 }
0x17c9   :  { %12010 = vmatprep.subr.bf16.mxu0 %v12412_v46 }
0x17cc   :  { %12012 = vmatpush3.bf16.msra.mxu0 %v12011_v54 }
0x17cd   :  { %12019 = vmatprep.subr.bf16.mxu0 %v12412_v46 }
0x17cf   :  { %11526 = vmatmul.mubr.msk.f32.vlgmr.msra.gmra.mrb[112].mxu0 %vm52_vm0, %v13294_v1 }
0x17d0   :  { %11547 = vmatprep.mubr.msk.f32.mxu0 %vm12413_vm3, %v12414_v47 }
0x188a   :  { %v11464_v17 = vpop.f32.mrb[102].mxu0 }
0x188b   :  { %v8573_v24 = vpop.f32.mrb[103].mxu0 }
0x188c   :  { %v8596_v58 = vpack.c.bf16 %v11464_v17, %v8573_v24  ;;  %v9074_v17 = vld [vmem:[#allocation4 + $0x188] sm:$0x3] }
0x188e   :  { %v11467_v55 = vpop.f32.mrb[104].mxu0  ;;  %11480 = vmatprep.mubr.msk.bf16.mxu1 %vm52_vm0, %v8596_v58  ;;  %v9243_v58 = vrot.slane %v9074_v17, %v12631_v30 }
0x188f   :  { %v8583_v60 = vpop.f32.mrb[105].mxu0 }
0x1890   :  { %v8597_v26 = vpack.c.bf16 %v11467_v55, %v8583_v60 }
0x1892   :  { %11481 = vmatmul.mubr.msk.bf16.vlgmr.msra.gmra.mrb[128].mxu1 %vm52_vm0, %v8597_v26  ;;  %v11494_v18 = vpop.f32.mrb[106].mxu0 }
0x1893   :  { %11499 = vmatpush3.bf16.msra.mxu1 %v12268_v16  ;;  %v8804_v14 = vpop.f32.mrb[107].mxu0 }
0x1894   :  { %v8827_v35 = vpack.c.bf16 %v11494_v18, %v8804_v14  ;;  %11500 = vmatprep.subr.bf16.mxu1 %v12269_v25 }
0x1896   :  { %v11497_v62 = vpop.f32.mrb[108].mxu0  ;;  %11502 = vmatprep.mubr.msk.bf16.mxu1 %vm52_vm0, %v8827_v35 }
0x1897   :  { %v8814_v37 = vpop.f32.mrb[109].mxu0  ;;  %11501 = vmatpush3.bf16.msra.mxu1 %v12269_v25  ;;  %v9251_v25 = vrot.slane %v9074_v17, %v12634_v33 }
0x1898   :  { %v8828_v34 = vpack.c.bf16 %v11497_v62, %v8814_v37  ;;  %12013 = vmatprep.subr.bf16.mxu1 %v12412_v46 }
0x189a   :  { %v8975_v39 = vpop.f32.mrb[110].mxu0 }
0x189b   :  { %v11516_v61 = vpop.f32.mrb[111].mxu0  ;;  %v9053_v2 = vmul.f32 %v8975_v39, %v8975_v39  ;;  %v9059_v9 = vrot.slane %v8975_v39, %v12631_v30 }
0x189d   :  { %v9060_v11 = vsub.f32 %v13154_v51, %v9059_v9  ;;  %v9061_v27 = vsub.f32 %v13156_v52, %v9059_v9  ;;  %v9062_v7 = vsub.f32 %v13158_v53, %v9059_v9  ;;  %v9063_v41 = vsub.f32 %v13160_v42, %v9059_v9 }
0x189e   :  { %11503 = vmatmul.mubr.msk.bf16.vlgmr.msra.gmra.mrb[128].mxu1 %vm52_vm0, %v8828_v34 }
0x189f   :  { %11536 = vmatprep.mubr.msk.f32.mxu1 %vm12413_vm3, %v12414_v47 }
0x18a2   :  { %v9049_v19 = vpop.f32.mrb[112].mxu0 }
0x18a3   :  { %v9054_v4 = vsub.f32 %v9049_v19, %v9053_v2  ;;  %v11527_v13 = vpop.f32.mrb[113].mxu0 }
0x18a5   :  { %v9055_v20 = vmax.f32 %v9054_v4, 0.0 }
0x18a7   :  { %v9064_v10 = vadd.f32 1e-05, %v9055_v20 }
0x18a9   :  { %12292 = vrsqrt.f32 %v9064_v10 }
0x18b3   :  { %v12293_v48 = vpop.eup %12292 }
0x18b4   :  { %v9069_v28 = vrot.slane %v12293_v48, %v12631_v30 }
0x18b6   :  { %v13441_v12 = vmul.f32 %v9069_v28, %v9060_v11  ;;  %v13443_v29 = vmul.f32 %v9069_v28, %v9061_v27  ;;  %v13445_v31 = vmul.f32 %v9069_v28, %v9062_v7  ;;  %v13447_v32 = vmul.f32 %v9069_v28, %v9063_v41  ;;  %v9264_v28 = vld [vmem:[#allocation4 + $0xe8] sm:$0x3] }
0x1971   :  { %v11504_v38 = vpop.f32.mrb[128].mxu1 }
0x1972   :  { %v8881_v49 = vpop.f32.mrb[129].mxu1  ;;  %v8907_v3 = vadd.f32 %v11504_v38, %v9768_v36 }
0x1973   :  { %v8905_v51 = vadd.f32 %v9768_v36, %v8881_v49  ;;  %v11505_v21 = vpop.f32.mrb[130].mxu1 }
0x1974   :  { %v8884_v52 = vpop.f32.mrb[131].mxu1  ;;  %v8908_v6 = vadd.f32 %v11505_v21, %v9768_v36  ;;  %v9147_v23 = vmul.f32 %v8907_v3, %v8907_v3 }
0x1975   :  { %v8906_v53 = vadd.f32 %v9768_v36, %v8884_v52  ;;  %v9145_v42 = vmul.f32 %v8905_v51, %v8905_v51 }
0x1976   :  { %v9148_v50 = vmul.f32 %v8908_v6, %v8908_v6  ;;  %v12017_v40 = vpack.c.bf16 %v8908_v6, %v8907_v3 }
0x1977   :  { %v12014_v59 = vpack.c.bf16 %v8906_v53, %v8905_v51  ;;  %v9146_v5 = vmul.f32 %v8906_v53, %v8906_v53 }
0x1978   :  { %v12023_v8 = vpack.c.bf16 %v9148_v50, %v9147_v23 }
0x1979   :  { %v12020_v63 = vpack.c.bf16 %v9146_v5, %v9145_v42  ;;  %12015 = vmatpush3.bf16.msra.mxu1 %v12014_v59 }
0x197a   :  { %12016 = vmatprep.subr.bf16.mxu1 %v12412_v46 }
0x197b   :  { %12021 = vmatpush3.bf16.msra.mxu0 %v12020_v63 }
0x197c   :  { %12022 = vmatprep.subr.bf16.mxu0 %v12412_v46 }
0x197d   :  { %12018 = vmatpush3.bf16.msra.mxu1 %v12017_v40 }
0x197e   :  { %12025 = vmatprep.subr.bf16.mxu1 %v12412_v46 }
0x197f   :  { %12024 = vmatpush3.bf16.msra.mxu0 %v12023_v8 }
0x1980   :  { %11537 = vmatmul.mubr.msk.f32.vlgmr.msra.gmra.mrb[122].mxu1 %vm52_vm0, %v13294_v1  ;;  %11561 = vmatprep.subr.bf16.mxu0 %v12414_v47 }
0x1981   :  { %11558 = vmatprep.mubr.msk.f32.mxu1 %vm12413_vm3, %v12414_v47 }
0x1982   :  { %11548 = vmatmul.mubr.msk.f32.vlgmr.msra.gmra.mrb[114].mxu0 %vm52_vm0, %v13294_v1 }
0x1983   :  { %11565 = vmatprep.mubr.msk.bf16.mxu0 %vm12413_vm3, %v12414_v47  ;;  %11562 = vmatpush3.bf16.msra.mxu0 %v12270_v57 }
0x1984   :  { %11563 = vmatprep.subr.bf16.mxu0 %v12414_v47 }
0x1a53   :  { %v9141_v0 = vpop.f32.mrb[122].mxu1 }
0x1a54   :  { %v9219_v22 = vmul.f32 %v9141_v0, %v9141_v0  ;;  %v11538_v43 = vpop.f32.mrb[123].mxu1  ;;  %v9225_v16 = vrot.slane %v9141_v0, %v12631_v30 }
0x1a55   :  { %v9215_v56 = vpop.f32.mrb[114].mxu0 }
0x1a56   :  { %v11549_v44 = vpop.f32.mrb[115].mxu0  ;;  %v9220_v45 = vsub.f32 %v9215_v56, %v9219_v22  ;;  %v9226_v24 = vsub.f32 %v8905_v51, %v9225_v16  ;;  %v9227_v55 = vsub.f32 %v8906_v53, %v9225_v16  ;;  %v9228_v60 = vsub.f32 %v8907_v3, %v9225_v16 }
0x1a57   :  { %v9229_v26 = vsub.f32 %v8908_v6, %v9225_v16 }
0x1a58   :  { %v9221_v54 = vmax.f32 %v9220_v45, 0.0 }
0x1a5a   :  { %v9230_v15 = vadd.f32 1e-05, %v9221_v54 }
0x1a5c   :  { %12294 = vrsqrt.f32 %v9230_v15 }
0x1a66   :  { %v12295_v1 = vpop.eup %12294 }
0x1a67   :  { %v9235_v47 = vrot.slane %v12295_v1, %v12631_v30 }
0x1a69   :  { %v9236_v18 = vmul.f32 %v9235_v47, %v9226_v24  ;;  %v9237_v14 = vmul.f32 %v9235_v47, %v9227_v55  ;;  %v9238_v35 = vmul.f32 %v9235_v47, %v9228_v60  ;;  %v9239_v62 = vmul.f32 %v9235_v47, %v9229_v26 }
0x1a6b   :  { %v9244_v37 = vmul.f32 %v9243_v58, %v9236_v18  ;;  %v9245_v34 = vmul.f32 %v9243_v58, %v9237_v14  ;;  %v9246_v39 = vmul.f32 %v9243_v58, %v9238_v35  ;;  %v9247_v61 = vmul.f32 %v9243_v58, %v9239_v62 }
0x1a6d   :  { %v9252_v2 = vadd.f32 %v9251_v25, %v9244_v37  ;;  %v9253_v19 = vadd.f32 %v9251_v25, %v9245_v34  ;;  %v9254_v4 = vadd.f32 %v9251_v25, %v9246_v39  ;;  %v9255_v13 = vadd.f32 %v9251_v25, %v9247_v61 }
0x1a6f   :  { %v9256_v20 = vadd.f32 %v9252_v2, %v13441_v12  ;;  %v9257_v10 = vadd.f32 %v9253_v19, %v13443_v29  ;;  %v9258_v30 = vadd.f32 %v9254_v4, %v13445_v31  ;;  %v9259_v33 = vadd.f32 %v9255_v13, %v13447_v32  ;;  %v12271_v12 = vld [vmem:[#allocation2 + $0x258] sm:$0xff]   ;;  %v9774_v32 = vld [vmem:[#allocation4 + $0x190] ss:$0 sm:$0xff] }
0x1a70   :  { %11564 = vmatpush3.bf16.msra.mxu0 %v12271_v12 }
0x1a71   :  { %v9260_v9 = vmax.f32 %v9256_v20, 0.0  ;;  %v9261_v48 = vmax.f32 %v9257_v10, 0.0  ;;  %v9262_v11 = vmax.f32 %v9258_v30, 0.0  ;;  %v9263_v27 = vmax.f32 %v9259_v33, 0.0 }
0x1a73   :  { %v12026_v7 = vpack.c.bf16 %v9261_v48, %v9260_v9  ;;  %v12029_v41 = vpack.c.bf16 %v9263_v27, %v9262_v11 }
0x1a75   :  { %12027 = vmatpush3.bf16.msra.mxu1 %v12026_v7 }
0x1a76   :  { %12028 = vmatprep.subr.bf16.mxu1 %v12412_v46 }
0x1a79   :  { %12030 = vmatpush3.bf16.msra.mxu1 %v12029_v41 }
0x1a7c   :  { %11559 = vmatmul.mubr.msk.f32.vlgmr.msra.gmra.mrb[132].mxu1 %vm52_vm0, %v9264_v28 }
0x1b4f   :  { %v9334_v29 = vpop.f32.mrb[132].mxu1 }
0x1b50   :  { %v9342_v36 = vpack.c.bf16 %v9334_v29, %v9334_v29  ;;  %v11560_v31 = vpop.f32.mrb[133].mxu1 }
0x1b52   :  { %11566 = vmatmul.mubr.msk.bf16.vlgmr.msra.gmra.mrb[116].mxu0 %vm52_vm0, %v9342_v36 }
0x1c25   :  { %v9397_v38 = vpop.f32.mrb[116].mxu0 }
0x1c26   :  { %v9398_v49 = vadd.f32 %v9774_v32, %v9397_v38  ;;  %v11567_v51 = vpop.f32.mrb[117].mxu0 }
0x1c27   :  { %v9400_v21 = vpop.f32.mrb[118].mxu0 }
0x1c28   :  { %v9403_v52 = vsub.f32 0.0, %v9398_v49  ;;  %v11568_v6 = vpop.f32.mrb[119].mxu0 }
0x1c2a   :  { %v9404_v53 = vmul.f32 1.442695, %v9403_v52 }
0x1c2c   :  { %12296 = vpow2.f32 %v9404_v53 }
0x1c36   :  { %v12297_v46 = vpop.eup %12296 }
0x1c37   :  { %v9406_v3 = vadd.f32 1.0, %v12297_v46 }
0x1c39   :  { %12298 = vrcp.f32 %v9406_v3 }
0x1c43   :  { %v12299_v42 = vpop.eup %12298 }
0x1c44   :  { %9410 = vst.msk [vmem:[%s13479_s3] sm:$0x3] %vm9409_vm5, %v12299_v42 }
0x1c45   :  { %9415 = vsyncpa [#allocation3], 1 }
0x1c46   :  { %9416 = vsyncpa [#allocation5], 1 }

</bundles_post_ra>
